<compile_context>
chip_gen: v7x
topology: tpu7x:2x2x1
jax: 0.10.0
libtpu: 0.0.40
codegen_flags: <defaults>
</compile_context>

<pallas_src>
import jax
import jax.numpy as jnp
from jax.experimental import pallas as pl
from jax.experimental.pallas import tpu as pltpu


def _round_up(x, m):
    return (x + m - 1) // m * m


def _choose_chunk(T, target=32):
    """Largest multiple-of-8 divisor of T that is <= target; fall back to full T."""
    mult8 = [tc for tc in range(8, min(T, target) + 1, 8) if T % tc == 0]
    return max(mult8) if mult8 else T   # full-dim block is always BlockSpec-legal


def lstm_kernel(x_ref, wih_ref, whh_ref, b_ref, wlin_ref, blin_ref,
                out_ref, xp_ref, h_ref, c_ref):
    """One (batch-tile, time-chunk) grid step of the LSTM recurrence + final Linear head.

    x_ref   : (Bt, Tc, Ip)   f32   batch-first input chunk
    wih_ref : (Ip, 4*Hp)     bf16  W_ih^T (padded per-gate blocks), resident
    whh_ref : (Hp, 4*Hp)     bf16  W_hh^T, resident
    b_ref   : (1, 4*Hp)      f32   b_ih + b_hh
    wlin_ref: (Hp, Op)       f32   W_linear^T
    blin_ref: (1, Op)        f32
    out_ref : (Bt, Op)       f32   written only on the last time chunk
    xp_ref  : (Bt, Tc, 4*Hp) f32   scratch: hoisted input projection for this chunk
    h_ref/c_ref : (Bt, Hp)   f32   scratch: recurrent state carried across time chunks
    """
    t_chunk = pl.program_id(1)
    n_chunks = pl.num_programs(1)
    Bt, Tc, Ip = x_ref.shape
    Hp = whh_ref.shape[0]

    # Reset the carried state at the start of each sequence (first time chunk).
    @pl.when(t_chunk == 0)
    def _():
        h_ref[...] = jnp.zeros_like(h_ref)
        c_ref[...] = jnp.zeros_like(c_ref)

    # ---- Hoisted per-chunk input projection: ONE MXU GEMM, off the serial chain. ----
    # x is f32 so the (Bt, Tc, Ip) -> (Bt*Tc, Ip) collapse is a free (8,128)-tiled
    # reshape; cast to bf16 only at the MXU boundary, accumulate in f32, fold bias once.
    x2 = x_ref[...].reshape(Bt * Tc, Ip).astype(jnp.bfloat16)
    xp = jnp.dot(x2, wih_ref[...], preferred_element_type=jnp.float32) + b_ref[...]
    xp_ref[...] = xp.reshape(Bt, Tc, 4 * Hp)

    whh = whh_ref[...]          # bf16, stays resident; only h @ W_hh^T is per-step work
    h = h_ref[...]
    c = c_ref[...]

    # Tc is a small static constant (large T is handled by the grid), so a static unroll
    # keeps cross-step MXU/EUP/VPU overlap without blowing instruction memory or vregs.
    for t in range(Tc):
        gates = xp_ref[:, t, :] + jnp.dot(h.astype(jnp.bfloat16), whh,
                                          preferred_element_type=jnp.float32)
        # Hp is a multiple of 128 -> every gate slice is lane-aligned.
        i_g = jax.nn.sigmoid(gates[:, 0 * Hp:1 * Hp])
        f_g = jax.nn.sigmoid(gates[:, 1 * Hp:2 * Hp])
        g_g = jnp.tanh(gates[:, 2 * Hp:3 * Hp])
        o_g = jax.nn.sigmoid(gates[:, 3 * Hp:4 * Hp])
        c = f_g * c + i_g * g_g
        h = o_g * jnp.tanh(c)

    h_ref[...] = h
    c_ref[...] = c

    # Linear head on the final hidden state only; lane-dense (Bt, Op) store.
    @pl.when(t_chunk == n_chunks - 1)
    def _():
        out_ref[...] = (jnp.dot(h, wlin_ref[...], preferred_element_type=jnp.float32)
                        + blin_ref[...])


def lstm_forward(x, w_ih, w_hh, b_ih, b_hh, w_lin, b_lin,
                 *, batch_tile=128, time_chunk=32):
    """x: (B, T, I) batch_first like the PyTorch module. Returns (B, O)."""
    B, T, I = x.shape
    H = w_hh.shape[1]
    O = w_lin.shape[0]

    f32, bf16 = jnp.float32, jnp.bfloat16

    Bt = min(_round_up(B, 8), batch_tile)   # per-grid-step batch tile (sublane multiple)
    Bp = _round_up(B, Bt)
    Ip = _round_up(I, 128)                  # lane-dense input
    Hp = _round_up(H, 128)                  # lane-aligned gate boundaries
    Op = _round_up(O, 128)                  # lane-dense output store
    Tc = _choose_chunk(T, time_chunk)
    n_b, n_t = Bp // Bt, T // Tc

    # ---- Weight / bias layout prep: one pad + reshape each (no Python .at[].set loops).
    # Zero padding keeps padded hidden lanes of h/c exactly 0 (sigma(0)=0.5, tanh(0)=0 =>
    # c_pad, h_pad stay 0) and padded weight rows/cols contribute nothing.
    def gate_weight_t(w, in_dim, in_dim_p):
        # (4H, in) torch gate order [Wi; Wf; Wg; Wo] -> padded (in_p, 4Hp) = W^T
        w4 = jnp.pad(w.astype(f32).reshape(4, H, in_dim),
                     ((0, 0), (0, Hp - H), (0, in_dim_p - in_dim)))
        return w4.reshape(4 * Hp, in_dim_p).T

    wih_t = gate_weight_t(w_ih, I, Ip).astype(bf16)                       # (Ip, 4Hp)
    whh_t = gate_weight_t(w_hh, H, Hp).astype(bf16)                       # (Hp, 4Hp)
    bsum = jnp.pad((b_ih + b_hh).astype(f32).reshape(4, H),
                   ((0, 0), (0, Hp - H))).reshape(1, 4 * Hp)              # (1, 4Hp)
    wlin_t = jnp.pad(w_lin.astype(f32).T, ((0, Hp - H), (0, Op - O)))     # (Hp, Op)
    blin_p = jnp.pad(b_lin.astype(f32).reshape(1, O), ((0, 0), (0, Op - O)))

    # x stays batch-first in HBM (no materialized wrapper transpose); single zero pad.
    x_p = jnp.pad(x.astype(f32), ((0, Bp - B), (0, 0), (0, Ip - I)))      # (Bp, T, Ip)

    # Scoped-VMEM limit sized from the actual buffers (double-buffered blocks + scratch),
    # capped at v7x's 64 MiB physical VMEM.
    resident = (2 * Bt * Tc * Ip * 4                    # x block (double-buffered)
                + Ip * 4 * Hp * 2 + Hp * 4 * Hp * 2     # bf16 weights (resident)
                + 4 * Hp * 4 + Hp * Op * 4 + Op * 4     # bias / head
                + 2 * Bt * Op * 4                       # out block
                + Bt * Tc * 4 * Hp * 4                  # xp scratch
                + 2 * Bt * Hp * 4)                      # h, c scratch
    vmem_limit = int(min(max(2 * resident, 16 << 20), 64 << 20))

    grid_spec = pltpu.PrefetchScalarGridSpec(
        num_scalar_prefetch=0,
        grid=(n_b, n_t),                                # batch tiles, then time chunks
        in_specs=[
            pl.BlockSpec((Bt, Tc, Ip), lambda b, t: (b, t, 0)),   # streamed x chunk
            pl.BlockSpec((Ip, 4 * Hp), lambda b, t: (0, 0)),      # resident weights
            pl.BlockSpec((Hp, 4 * Hp), lambda b, t: (0, 0)),
            pl.BlockSpec((1, 4 * Hp), lambda b, t: (0, 0)),
            pl.BlockSpec((Hp, Op), lambda b, t: (0, 0)),
            pl.BlockSpec((1, Op), lambda b, t: (0, 0)),
        ],
        out_specs=pl.BlockSpec((Bt, Op), lambda b, t: (b, 0)),    # revisited across t
        scratch_shapes=[
            pltpu.VMEM((Bt, Tc, 4 * Hp), f32),    # per-chunk hoisted projection
            pltpu.VMEM((Bt, Hp), f32),            # h (carried across time chunks)
            pltpu.VMEM((Bt, Hp), f32),            # c
        ],
    )

    out_p = pl.pallas_call(
        lstm_kernel,
        out_shape=jax.ShapeDtypeStruct((Bp, Op), f32),
        grid_spec=grid_spec,
        compiler_params=pltpu.CompilerParams(
            dimension_semantics=("parallel", "arbitrary"),
            vmem_limit_bytes=vmem_limit),
    )(x_p, wih_t, whh_t, bsum, wlin_t, blin_p)

    return out_p[:B, :O]


def lstm_reference(x, w_ih, w_hh, b_ih, b_hh, w_lin, b_lin):
    """Pure-JAX f32 reference mirroring torch.nn.LSTM(batch_first=True) + Linear."""
    B, T, I = x.shape
    H = w_hh.shape[1]
    h = jnp.zeros((B, H), jnp.float32)
    c = jnp.zeros((B, H), jnp.float32)
    for t in range(T):
        gates = x[:, t, :] @ w_ih.T + b_ih + h @ w_hh.T + b_hh
        i_g = jax.nn.sigmoid(gates[:, 0 * H:1 * H])
        f_g = jax.nn.sigmoid(gates[:, 1 * H:2 * H])
        g_g = jnp.tanh(gates[:, 2 * H:3 * H])
        o_g = jax.nn.sigmoid(gates[:, 3 * H:4 * H])
        c = f_g * c + i_g * g_g
        h = o_g * jnp.tanh(c)
    return h @ w_lin.T + b_lin


if __name__ == "__main__":
    # Small shapes consistent with the module: (batch, seq, input_size).
    B, T, INPUT_SIZE, HIDDEN, OUTPUT = 2, 8, 8, 32, 2

    key = jax.random.PRNGKey(0)
    ks = jax.random.split(key, 7)
    bound = 1.0 / jnp.sqrt(HIDDEN)  # matches PyTorch's default uniform init range

    x = jax.random.normal(ks[0], (B, T, INPUT_SIZE), jnp.float32)
    w_ih = jax.random.uniform(ks[1], (4 * HIDDEN, INPUT_SIZE), jnp.float32, -bound, bound)
    w_hh = jax.random.uniform(ks[2], (4 * HIDDEN, HIDDEN), jnp.float32, -bound, bound)
    b_ih = jax.random.uniform(ks[3], (4 * HIDDEN,), jnp.float32, -bound, bound)
    b_hh = jax.random.uniform(ks[4], (4 * HIDDEN,), jnp.float32, -bound, bound)
    w_lin = jax.random.uniform(ks[5], (OUTPUT, HIDDEN), jnp.float32, -bound, bound)
    b_lin = jax.random.uniform(ks[6], (OUTPUT,), jnp.float32, -bound, bound)

    out = lstm_forward(x, w_ih, w_hh, b_ih, b_hh, w_lin, b_lin)
    out = jax.block_until_ready(out)

    ref = lstm_reference(x, w_ih, w_hh, b_ih, b_hh, w_lin, b_lin)
    assert out.shape == (B, OUTPUT)
    # bf16 MXU operands (f32 accumulate / f32 state) -> relaxed tolerance vs f32 reference.
    assert jnp.allclose(out, ref, atol=2e-2, rtol=2e-2), (out, ref)

    print("KERNEL_OK")
</pallas_src>

<mosaic_0001>
module attributes {stable_mosaic.version = 11 : i64} {
  func.func @lstm_kernel(%arg0: i32, %arg1: i32, %arg2: memref<8x8x128xf32, #tpu.memory_space<vmem>>, %arg3: memref<128x512xbf16, #tpu.memory_space<vmem>>, %arg4: memref<128x512xbf16, #tpu.memory_space<vmem>>, %arg5: memref<1x512xf32, #tpu.memory_space<vmem>>, %arg6: memref<128x128xf32, #tpu.memory_space<vmem>>, %arg7: memref<1x128xf32, #tpu.memory_space<vmem>>, %arg8: memref<8x128xf32, #tpu.memory_space<vmem>>, %arg9: memref<8x8x512xf32, #tpu.memory_space<vmem>>, %arg10: memref<8x128xf32, #tpu.memory_space<vmem>>, %arg11: memref<8x128xf32, #tpu.memory_space<vmem>>) attributes {dimension_semantics = [#tpu.dimension_semantics<parallel>, #tpu.dimension_semantics<arbitrary>], iteration_bounds = array<i64: 1, 1>, scalar_prefetch = 0 : i64, scratch_operands = 3 : i64, tpu.core_type = #tpu.core_type<tc>, window_params = [{transform_indices = @transform_0, window_bounds = array<i64: 8, 8, 128>}, {pipeline_mode = #tpu.pipeline_mode<synchronous>, transform_indices = @transform_1, window_bounds = array<i64: 128, 512>}, {pipeline_mode = #tpu.pipeline_mode<synchronous>, transform_indices = @transform_2, window_bounds = array<i64: 128, 512>}, {pipeline_mode = #tpu.pipeline_mode<synchronous>, transform_indices = @transform_3, window_bounds = array<i64: 1, 512>}, {pipeline_mode = #tpu.pipeline_mode<synchronous>, transform_indices = @transform_4, window_bounds = array<i64: 128, 128>}, {pipeline_mode = #tpu.pipeline_mode<synchronous>, transform_indices = @transform_5, window_bounds = array<i64: 1, 128>}, {transform_indices = @transform_6, window_bounds = array<i64: 8, 128>}]} {
    %c0_i32 = arith.constant 0 : i32
    %0 = arith.cmpi eq, %arg1, %c0_i32 : i32
    %1 = arith.extui %0 : i1 to i32
    %c0_i32_0 = arith.constant 0 : i32
    %2 = arith.cmpi ne, %1, %c0_i32_0 : i32
    scf.if %2 {
      %cst_71 = arith.constant 0.000000e+00 : f32
      %261 = vector.broadcast %cst_71 : f32 to vector<8x128xf32>
      %c0_72 = arith.constant 0 : index
      %c0_73 = arith.constant 0 : index
      %262 = vector.load %arg10[%c0_72, %c0_73] : memref<8x128xf32, #tpu.memory_space<vmem>>, vector<8x128xf32>
      tpu.vector_store %arg10[%c0_72, %c0_73], %261 {strides = array<i32>} : memref<8x128xf32, #tpu.memory_space<vmem>>, vector<8x128xf32>,
      %cst_74 = arith.constant 0.000000e+00 : f32
      %263 = vector.broadcast %cst_74 : f32 to vector<8x128xf32>
      %c0_75 = arith.constant 0 : index
      %c0_76 = arith.constant 0 : index
      %264 = vector.load %arg11[%c0_75, %c0_76] : memref<8x128xf32, #tpu.memory_space<vmem>>, vector<8x128xf32>
      tpu.vector_store %arg11[%c0_75, %c0_76], %263 {strides = array<i32>} : memref<8x128xf32, #tpu.memory_space<vmem>>, vector<8x128xf32>,
    } else {
    }
    %c0 = arith.constant 0 : index
    %c0_1 = arith.constant 0 : index
    %c0_2 = arith.constant 0 : index
    %3 = vector.load %arg2[%c0, %c0_1, %c0_2] : memref<8x8x128xf32, #tpu.memory_space<vmem>>, vector<8x8x128xf32>
    %4 = vector.shape_cast %3 : vector<8x8x128xf32> to vector<64x128xf32>
    %5 = arith.truncf %4 : vector<64x128xf32> to vector<64x128xbf16>
    %c0_3 = arith.constant 0 : index
    %c0_4 = arith.constant 0 : index
    %6 = vector.load %arg3[%c0_3, %c0_4] : memref<128x512xbf16, #tpu.memory_space<vmem>>, vector<128x512xbf16>
    %cst = arith.constant dense<0.000000e+00> : vector<64x512xf32>
    %7 = tpu.matmul %5, %6, %cst {dimension_numbers = #tpu.dot_dimension_numbers<[1], [0], [0], [1], [0, 0, 1, 1], [], []>} : vector<64x128xbf16>, vector<128x512xbf16>, vector<64x512xf32> -> vector<64x512xf32>
    %c0_5 = arith.constant 0 : index
    %c0_6 = arith.constant 0 : index
    %8 = vector.load %arg5[%c0_5, %c0_6] : memref<1x512xf32, #tpu.memory_space<vmem>>, vector<1x512xf32>
    %9 = vector.broadcast %8 : vector<1x512xf32> to vector<64x512xf32>
    %10 = arith.addf %7, %9 : vector<64x512xf32>
    %11 = vector.shape_cast %10 : vector<64x512xf32> to vector<8x8x512xf32>
    %c0_7 = arith.constant 0 : index
    %c0_8 = arith.constant 0 : index
    %c0_9 = arith.constant 0 : index
    %12 = vector.load %arg9[%c0_7, %c0_8, %c0_9] : memref<8x8x512xf32, #tpu.memory_space<vmem>>, vector<8x8x512xf32>
    tpu.vector_store %arg9[%c0_7, %c0_8, %c0_9], %11 {strides = array<i32>} : memref<8x8x512xf32, #tpu.memory_space<vmem>>, vector<8x8x512xf32>,
    %c0_10 = arith.constant 0 : index
    %c0_11 = arith.constant 0 : index
    %13 = vector.load %arg4[%c0_10, %c0_11] : memref<128x512xbf16, #tpu.memory_space<vmem>>, vector<128x512xbf16>
    %c0_12 = arith.constant 0 : index
    %c0_13 = arith.constant 0 : index
    %14 = vector.load %arg10[%c0_12, %c0_13] : memref<8x128xf32, #tpu.memory_space<vmem>>, vector<8x128xf32>
    %c0_14 = arith.constant 0 : index
    %c0_15 = arith.constant 0 : index
    %15 = vector.load %arg11[%c0_14, %c0_15] : memref<8x128xf32, #tpu.memory_space<vmem>>, vector<8x128xf32>
    %c0_16 = arith.constant 0 : index
    %c0_17 = arith.constant 0 : index
    %c0_18 = arith.constant 0 : index
    %16 = vector.load %arg9[%c0_16, %c0_17, %c0_18] : memref<8x8x512xf32, #tpu.memory_space<vmem>>, vector<8x1x512xf32>
    %17 = vector.shape_cast %16 : vector<8x1x512xf32> to vector<8x512xf32>
    %18 = arith.truncf %14 : vector<8x128xf32> to vector<8x128xbf16>
    %cst_19 = arith.constant dense<0.000000e+00> : vector<8x512xf32>
    %19 = tpu.matmul %18, %13, %cst_19 {dimension_numbers = #tpu.dot_dimension_numbers<[1], [0], [0], [1], [0, 0, 1, 1], [], []>} : vector<8x128xbf16>, vector<128x512xbf16>, vector<8x512xf32> -> vector<8x512xf32>
    %20 = arith.addf %17, %19 : vector<8x512xf32>
    %21 = vector.extract_strided_slice %20 {offsets = [0, 0], sizes = [8, 128], strides = [1, 1]} : vector<8x512xf32> to vector<8x128xf32>
    %22 = arith.negf %21 : vector<8x128xf32>
    %23 = math.exp %22 : vector<8x128xf32>
    %cst_20 = arith.constant 1.000000e+00 : f32
    %24 = vector.broadcast %cst_20 : f32 to vector<8x128xf32>
    %25 = arith.addf %24, %23 : vector<8x128xf32>
    %26 = arith.divf %24, %25 : vector<8x128xf32>
    %27 = vector.extract_strided_slice %20 {offsets = [0, 128], sizes = [8, 128], strides = [1, 1]} : vector<8x512xf32> to vector<8x128xf32>
    %28 = arith.negf %27 : vector<8x128xf32>
    %29 = math.exp %28 : vector<8x128xf32>
    %cst_21 = arith.constant 1.000000e+00 : f32
    %30 = vector.broadcast %cst_21 : f32 to vector<8x128xf32>
    %31 = arith.addf %30, %29 : vector<8x128xf32>
    %32 = arith.divf %30, %31 : vector<8x128xf32>
    %33 = vector.extract_strided_slice %20 {offsets = [0, 256], sizes = [8, 128], strides = [1, 1]} : vector<8x512xf32> to vector<8x128xf32>
    %34 = math.tanh %33 : vector<8x128xf32>
    %35 = vector.extract_strided_slice %20 {offsets = [0, 384], sizes = [8, 128], strides = [1, 1]} : vector<8x512xf32> to vector<8x128xf32>
    %36 = arith.negf %35 : vector<8x128xf32>
    %37 = math.exp %36 : vector<8x128xf32>
    %cst_22 = arith.constant 1.000000e+00 : f32
    %38 = vector.broadcast %cst_22 : f32 to vector<8x128xf32>
    %39 = arith.addf %38, %37 : vector<8x128xf32>
    %40 = arith.divf %38, %39 : vector<8x128xf32>
    %41 = arith.mulf %32, %15 : vector<8x128xf32>
    %42 = arith.mulf %26, %34 : vector<8x128xf32>
    %43 = arith.addf %41, %42 : vector<8x128xf32>
    %44 = math.tanh %43 : vector<8x128xf32>
    %45 = arith.mulf %40, %44 : vector<8x128xf32>
    %c0_23 = arith.constant 0 : index
    %c1 = arith.constant 1 : index
    %c0_24 = arith.constant 0 : index
    %46 = vector.load %arg9[%c0_23, %c1, %c0_24] : memref<8x8x512xf32, #tpu.memory_space<vmem>>, vector<8x1x512xf32>
    %47 = vector.shape_cast %46 : vector<8x1x512xf32> to vector<8x512xf32>
    %48 = arith.truncf %45 : vector<8x128xf32> to vector<8x128xbf16>
    %cst_25 = arith.constant dense<0.000000e+00> : vector<8x512xf32>
    %49 = tpu.matmul %48, %13, %cst_25 {dimension_numbers = #tpu.dot_dimension_numbers<[1], [0], [0], [1], [0, 0, 1, 1], [], []>} : vector<8x128xbf16>, vector<128x512xbf16>, vector<8x512xf32> -> vector<8x512xf32>
    %50 = arith.addf %47, %49 : vector<8x512xf32>
    %51 = vector.extract_strided_slice %50 {offsets = [0, 0], sizes = [8, 128], strides = [1, 1]} : vector<8x512xf32> to vector<8x128xf32>
    %52 = arith.negf %51 : vector<8x128xf32>
    %53 = math.exp %52 : vector<8x128xf32>
    %cst_26 = arith.constant 1.000000e+00 : f32
    %54 = vector.broadcast %cst_26 : f32 to vector<8x128xf32>
    %55 = arith.addf %54, %53 : vector<8x128xf32>
    %56 = arith.divf %54, %55 : vector<8x128xf32>
    %57 = vector.extract_strided_slice %50 {offsets = [0, 128], sizes = [8, 128], strides = [1, 1]} : vector<8x512xf32> to vector<8x128xf32>
    %58 = arith.negf %57 : vector<8x128xf32>
    %59 = math.exp %58 : vector<8x128xf32>
    %cst_27 = arith.constant 1.000000e+00 : f32
    %60 = vector.broadcast %cst_27 : f32 to vector<8x128xf32>
    %61 = arith.addf %60, %59 : vector<8x128xf32>
    %62 = arith.divf %60, %61 : vector<8x128xf32>
    %63 = vector.extract_strided_slice %50 {offsets = [0, 256], sizes = [8, 128], strides = [1, 1]} : vector<8x512xf32> to vector<8x128xf32>
    %64 = math.tanh %63 : vector<8x128xf32>
    %65 = vector.extract_strided_slice %50 {offsets = [0, 384], sizes = [8, 128], strides = [1, 1]} : vector<8x512xf32> to vector<8x128xf32>
    %66 = arith.negf %65 : vector<8x128xf32>
    %67 = math.exp %66 : vector<8x128xf32>
    %cst_28 = arith.constant 1.000000e+00 : f32
    %68 = vector.broadcast %cst_28 : f32 to vector<8x128xf32>
    %69 = arith.addf %68, %67 : vector<8x128xf32>
    %70 = arith.divf %68, %69 : vector<8x128xf32>
    %71 = arith.mulf %62, %43 : vector<8x128xf32>
    %72 = arith.mulf %56, %64 : vector<8x128xf32>
    %73 = arith.addf %71, %72 : vector<8x128xf32>
    %74 = math.tanh %73 : vector<8x128xf32>
    %75 = arith.mulf %70, %74 : vector<8x128xf32>
    %c0_29 = arith.constant 0 : index
    %c2 = arith.constant 2 : index
    %c0_30 = arith.constant 0 : index
    %76 = vector.load %arg9[%c0_29, %c2, %c0_30] : memref<8x8x512xf32, #tpu.memory_space<vmem>>, vector<8x1x512xf32>
    %77 = vector.shape_cast %76 : vector<8x1x512xf32> to vector<8x512xf32>
    %78 = arith.truncf %75 : vector<8x128xf32> to vector<8x128xbf16>
    %cst_31 = arith.constant dense<0.000000e+00> : vector<8x512xf32>
    %79 = tpu.matmul %78, %13, %cst_31 {dimension_numbers = #tpu.dot_dimension_numbers<[1], [0], [0], [1], [0, 0, 1, 1], [], []>} : vector<8x128xbf16>, vector<128x512xbf16>, vector<8x512xf32> -> vector<8x512xf32>
    %80 = arith.addf %77, %79 : vector<8x512xf32>
    %81 = vector.extract_strided_slice %80 {offsets = [0, 0], sizes = [8, 128], strides = [1, 1]} : vector<8x512xf32> to vector<8x128xf32>
    %82 = arith.negf %81 : vector<8x128xf32>
    %83 = math.exp %82 : vector<8x128xf32>
    %cst_32 = arith.constant 1.000000e+00 : f32
    %84 = vector.broadcast %cst_32 : f32 to vector<8x128xf32>
    %85 = arith.addf %84, %83 : vector<8x128xf32>
    %86 = arith.divf %84, %85 : vector<8x128xf32>
    %87 = vector.extract_strided_slice %80 {offsets = [0, 128], sizes = [8, 128], strides = [1, 1]} : vector<8x512xf32> to vector<8x128xf32>
    %88 = arith.negf %87 : vector<8x128xf32>
    %89 = math.exp %88 : vector<8x128xf32>
    %cst_33 = arith.constant 1.000000e+00 : f32
    %90 = vector.broadcast %cst_33 : f32 to vector<8x128xf32>
    %91 = arith.addf %90, %89 : vector<8x128xf32>
    %92 = arith.divf %90, %91 : vector<8x128xf32>
    %93 = vector.extract_strided_slice %80 {offsets = [0, 256], sizes = [8, 128], strides = [1, 1]} : vector<8x512xf32> to vector<8x128xf32>
    %94 = math.tanh %93 : vector<8x128xf32>
    %95 = vector.extract_strided_slice %80 {offsets = [0, 384], sizes = [8, 128], strides = [1, 1]} : vector<8x512xf32> to vector<8x128xf32>
    %96 = arith.negf %95 : vector<8x128xf32>
    %97 = math.exp %96 : vector<8x128xf32>
    %cst_34 = arith.constant 1.000000e+00 : f32
    %98 = vector.broadcast %cst_34 : f32 to vector<8x128xf32>
    %99 = arith.addf %98, %97 : vector<8x128xf32>
    %100 = arith.divf %98, %99 : vector<8x128xf32>
    %101 = arith.mulf %92, %73 : vector<8x128xf32>
    %102 = arith.mulf %86, %94 : vector<8x128xf32>
    %103 = arith.addf %101, %102 : vector<8x128xf32>
    %104 = math.tanh %103 : vector<8x128xf32>
    %105 = arith.mulf %100, %104 : vector<8x128xf32>
    %c0_35 = arith.constant 0 : index
    %c3 = arith.constant 3 : index
    %c0_36 = arith.constant 0 : index
    %106 = vector.load %arg9[%c0_35, %c3, %c0_36] : memref<8x8x512xf32, #tpu.memory_space<vmem>>, vector<8x1x512xf32>
    %107 = vector.shape_cast %106 : vector<8x1x512xf32> to vector<8x512xf32>
    %108 = arith.truncf %105 : vector<8x128xf32> to vector<8x128xbf16>
    %cst_37 = arith.constant dense<0.000000e+00> : vector<8x512xf32>
    %109 = tpu.matmul %108, %13, %cst_37 {dimension_numbers = #tpu.dot_dimension_numbers<[1], [0], [0], [1], [0, 0, 1, 1], [], []>} : vector<8x128xbf16>, vector<128x512xbf16>, vector<8x512xf32> -> vector<8x512xf32>
    %110 = arith.addf %107, %109 : vector<8x512xf32>
    %111 = vector.extract_strided_slice %110 {offsets = [0, 0], sizes = [8, 128], strides = [1, 1]} : vector<8x512xf32> to vector<8x128xf32>
    %112 = arith.negf %111 : vector<8x128xf32>
    %113 = math.exp %112 : vector<8x128xf32>
    %cst_38 = arith.constant 1.000000e+00 : f32
    %114 = vector.broadcast %cst_38 : f32 to vector<8x128xf32>
    %115 = arith.addf %114, %113 : vector<8x128xf32>
    %116 = arith.divf %114, %115 : vector<8x128xf32>
    %117 = vector.extract_strided_slice %110 {offsets = [0, 128], sizes = [8, 128], strides = [1, 1]} : vector<8x512xf32> to vector<8x128xf32>
    %118 = arith.negf %117 : vector<8x128xf32>
    %119 = math.exp %118 : vector<8x128xf32>
    %cst_39 = arith.constant 1.000000e+00 : f32
    %120 = vector.broadcast %cst_39 : f32 to vector<8x128xf32>
    %121 = arith.addf %120, %119 : vector<8x128xf32>
    %122 = arith.divf %120, %121 : vector<8x128xf32>
    %123 = vector.extract_strided_slice %110 {offsets = [0, 256], sizes = [8, 128], strides = [1, 1]} : vector<8x512xf32> to vector<8x128xf32>
    %124 = math.tanh %123 : vector<8x128xf32>
    %125 = vector.extract_strided_slice %110 {offsets = [0, 384], sizes = [8, 128], strides = [1, 1]} : vector<8x512xf32> to vector<8x128xf32>
    %126 = arith.negf %125 : vector<8x128xf32>
    %127 = math.exp %126 : vector<8x128xf32>
    %cst_40 = arith.constant 1.000000e+00 : f32
    %128 = vector.broadcast %cst_40 : f32 to vector<8x128xf32>
    %129 = arith.addf %128, %127 : vector<8x128xf32>
    %130 = arith.divf %128, %129 : vector<8x128xf32>
    %131 = arith.mulf %122, %103 : vector<8x128xf32>
    %132 = arith.mulf %116, %124 : vector<8x128xf32>
    %133 = arith.addf %131, %132 : vector<8x128xf32>
    %134 = math.tanh %133 : vector<8x128xf32>
    %135 = arith.mulf %130, %134 : vector<8x128xf32>
    %c0_41 = arith.constant 0 : index
    %c4 = arith.constant 4 : index
    %c0_42 = arith.constant 0 : index
    %136 = vector.load %arg9[%c0_41, %c4, %c0_42] : memref<8x8x512xf32, #tpu.memory_space<vmem>>, vector<8x1x512xf32>
    %137 = vector.shape_cast %136 : vector<8x1x512xf32> to vector<8x512xf32>
    %138 = arith.truncf %135 : vector<8x128xf32> to vector<8x128xbf16>
    %cst_43 = arith.constant dense<0.000000e+00> : vector<8x512xf32>
    %139 = tpu.matmul %138, %13, %cst_43 {dimension_numbers = #tpu.dot_dimension_numbers<[1], [0], [0], [1], [0, 0, 1, 1], [], []>} : vector<8x128xbf16>, vector<128x512xbf16>, vector<8x512xf32> -> vector<8x512xf32>
    %140 = arith.addf %137, %139 : vector<8x512xf32>
    %141 = vector.extract_strided_slice %140 {offsets = [0, 0], sizes = [8, 128], strides = [1, 1]} : vector<8x512xf32> to vector<8x128xf32>
    %142 = arith.negf %141 : vector<8x128xf32>
    %143 = math.exp %142 : vector<8x128xf32>
    %cst_44 = arith.constant 1.000000e+00 : f32
    %144 = vector.broadcast %cst_44 : f32 to vector<8x128xf32>
    %145 = arith.addf %144, %143 : vector<8x128xf32>
    %146 = arith.divf %144, %145 : vector<8x128xf32>
    %147 = vector.extract_strided_slice %140 {offsets = [0, 128], sizes = [8, 128], strides = [1, 1]} : vector<8x512xf32> to vector<8x128xf32>
    %148 = arith.negf %147 : vector<8x128xf32>
    %149 = math.exp %148 : vector<8x128xf32>
    %cst_45 = arith.constant 1.000000e+00 : f32
    %150 = vector.broadcast %cst_45 : f32 to vector<8x128xf32>
    %151 = arith.addf %150, %149 : vector<8x128xf32>
    %152 = arith.divf %150, %151 : vector<8x128xf32>
    %153 = vector.extract_strided_slice %140 {offsets = [0, 256], sizes = [8, 128], strides = [1, 1]} : vector<8x512xf32> to vector<8x128xf32>
    %154 = math.tanh %153 : vector<8x128xf32>
    %155 = vector.extract_strided_slice %140 {offsets = [0, 384], sizes = [8, 128], strides = [1, 1]} : vector<8x512xf32> to vector<8x128xf32>
    %156 = arith.negf %155 : vector<8x128xf32>
    %157 = math.exp %156 : vector<8x128xf32>
    %cst_46 = arith.constant 1.000000e+00 : f32
    %158 = vector.broadcast %cst_46 : f32 to vector<8x128xf32>
    %159 = arith.addf %158, %157 : vector<8x128xf32>
    %160 = arith.divf %158, %159 : vector<8x128xf32>
    %161 = arith.mulf %152, %133 : vector<8x128xf32>
    %162 = arith.mulf %146, %154 : vector<8x128xf32>
    %163 = arith.addf %161, %162 : vector<8x128xf32>
    %164 = math.tanh %163 : vector<8x128xf32>
    %165 = arith.mulf %160, %164 : vector<8x128xf32>
    %c0_47 = arith.constant 0 : index
    %c5 = arith.constant 5 : index
    %c0_48 = arith.constant 0 : index
    %166 = vector.load %arg9[%c0_47, %c5, %c0_48] : memref<8x8x512xf32, #tpu.memory_space<vmem>>, vector<8x1x512xf32>
    %167 = vector.shape_cast %166 : vector<8x1x512xf32> to vector<8x512xf32>
    %168 = arith.truncf %165 : vector<8x128xf32> to vector<8x128xbf16>
    %cst_49 = arith.constant dense<0.000000e+00> : vector<8x512xf32>
    %169 = tpu.matmul %168, %13, %cst_49 {dimension_numbers = #tpu.dot_dimension_numbers<[1], [0], [0], [1], [0, 0, 1, 1], [], []>} : vector<8x128xbf16>, vector<128x512xbf16>, vector<8x512xf32> -> vector<8x512xf32>
    %170 = arith.addf %167, %169 : vector<8x512xf32>
    %171 = vector.extract_strided_slice %170 {offsets = [0, 0], sizes = [8, 128], strides = [1, 1]} : vector<8x512xf32> to vector<8x128xf32>
    %172 = arith.negf %171 : vector<8x128xf32>
    %173 = math.exp %172 : vector<8x128xf32>
    %cst_50 = arith.constant 1.000000e+00 : f32
    %174 = vector.broadcast %cst_50 : f32 to vector<8x128xf32>
    %175 = arith.addf %174, %173 : vector<8x128xf32>
    %176 = arith.divf %174, %175 : vector<8x128xf32>
    %177 = vector.extract_strided_slice %170 {offsets = [0, 128], sizes = [8, 128], strides = [1, 1]} : vector<8x512xf32> to vector<8x128xf32>
    %178 = arith.negf %177 : vector<8x128xf32>
    %179 = math.exp %178 : vector<8x128xf32>
    %cst_51 = arith.constant 1.000000e+00 : f32
    %180 = vector.broadcast %cst_51 : f32 to vector<8x128xf32>
    %181 = arith.addf %180, %179 : vector<8x128xf32>
    %182 = arith.divf %180, %181 : vector<8x128xf32>
    %183 = vector.extract_strided_slice %170 {offsets = [0, 256], sizes = [8, 128], strides = [1, 1]} : vector<8x512xf32> to vector<8x128xf32>
    %184 = math.tanh %183 : vector<8x128xf32>
    %185 = vector.extract_strided_slice %170 {offsets = [0, 384], sizes = [8, 128], strides = [1, 1]} : vector<8x512xf32> to vector<8x128xf32>
    %186 = arith.negf %185 : vector<8x128xf32>
    %187 = math.exp %186 : vector<8x128xf32>
    %cst_52 = arith.constant 1.000000e+00 : f32
    %188 = vector.broadcast %cst_52 : f32 to vector<8x128xf32>
    %189 = arith.addf %188, %187 : vector<8x128xf32>
    %190 = arith.divf %188, %189 : vector<8x128xf32>
    %191 = arith.mulf %182, %163 : vector<8x128xf32>
    %192 = arith.mulf %176, %184 : vector<8x128xf32>
    %193 = arith.addf %191, %192 : vector<8x128xf32>
    %194 = math.tanh %193 : vector<8x128xf32>
    %195 = arith.mulf %190, %194 : vector<8x128xf32>
    %c0_53 = arith.constant 0 : index
    %c6 = arith.constant 6 : index
    %c0_54 = arith.constant 0 : index
    %196 = vector.load %arg9[%c0_53, %c6, %c0_54] : memref<8x8x512xf32, #tpu.memory_space<vmem>>, vector<8x1x512xf32>
    %197 = vector.shape_cast %196 : vector<8x1x512xf32> to vector<8x512xf32>
    %198 = arith.truncf %195 : vector<8x128xf32> to vector<8x128xbf16>
    %cst_55 = arith.constant dense<0.000000e+00> : vector<8x512xf32>
    %199 = tpu.matmul %198, %13, %cst_55 {dimension_numbers = #tpu.dot_dimension_numbers<[1], [0], [0], [1], [0, 0, 1, 1], [], []>} : vector<8x128xbf16>, vector<128x512xbf16>, vector<8x512xf32> -> vector<8x512xf32>
    %200 = arith.addf %197, %199 : vector<8x512xf32>
    %201 = vector.extract_strided_slice %200 {offsets = [0, 0], sizes = [8, 128], strides = [1, 1]} : vector<8x512xf32> to vector<8x128xf32>
    %202 = arith.negf %201 : vector<8x128xf32>
    %203 = math.exp %202 : vector<8x128xf32>
    %cst_56 = arith.constant 1.000000e+00 : f32
    %204 = vector.broadcast %cst_56 : f32 to vector<8x128xf32>
    %205 = arith.addf %204, %203 : vector<8x128xf32>
    %206 = arith.divf %204, %205 : vector<8x128xf32>
    %207 = vector.extract_strided_slice %200 {offsets = [0, 128], sizes = [8, 128], strides = [1, 1]} : vector<8x512xf32> to vector<8x128xf32>
    %208 = arith.negf %207 : vector<8x128xf32>
    %209 = math.exp %208 : vector<8x128xf32>
    %cst_57 = arith.constant 1.000000e+00 : f32
    %210 = vector.broadcast %cst_57 : f32 to vector<8x128xf32>
    %211 = arith.addf %210, %209 : vector<8x128xf32>
    %212 = arith.divf %210, %211 : vector<8x128xf32>
    %213 = vector.extract_strided_slice %200 {offsets = [0, 256], sizes = [8, 128], strides = [1, 1]} : vector<8x512xf32> to vector<8x128xf32>
    %214 = math.tanh %213 : vector<8x128xf32>
    %215 = vector.extract_strided_slice %200 {offsets = [0, 384], sizes = [8, 128], strides = [1, 1]} : vector<8x512xf32> to vector<8x128xf32>
    %216 = arith.negf %215 : vector<8x128xf32>
    %217 = math.exp %216 : vector<8x128xf32>
    %cst_58 = arith.constant 1.000000e+00 : f32
    %218 = vector.broadcast %cst_58 : f32 to vector<8x128xf32>
    %219 = arith.addf %218, %217 : vector<8x128xf32>
    %220 = arith.divf %218, %219 : vector<8x128xf32>
    %221 = arith.mulf %212, %193 : vector<8x128xf32>
    %222 = arith.mulf %206, %214 : vector<8x128xf32>
    %223 = arith.addf %221, %222 : vector<8x128xf32>
    %224 = math.tanh %223 : vector<8x128xf32>
    %225 = arith.mulf %220, %224 : vector<8x128xf32>
    %c0_59 = arith.constant 0 : index
    %c7 = arith.constant 7 : index
    %c0_60 = arith.constant 0 : index
    %226 = vector.load %arg9[%c0_59, %c7, %c0_60] : memref<8x8x512xf32, #tpu.memory_space<vmem>>, vector<8x1x512xf32>
    %227 = vector.shape_cast %226 : vector<8x1x512xf32> to vector<8x512xf32>
    %228 = arith.truncf %225 : vector<8x128xf32> to vector<8x128xbf16>
    %cst_61 = arith.constant dense<0.000000e+00> : vector<8x512xf32>
    %229 = tpu.matmul %228, %13, %cst_61 {dimension_numbers = #tpu.dot_dimension_numbers<[1], [0], [0], [1], [0, 0, 1, 1], [], []>} : vector<8x128xbf16>, vector<128x512xbf16>, vector<8x512xf32> -> vector<8x512xf32>
    %230 = arith.addf %227, %229 : vector<8x512xf32>
    %231 = vector.extract_strided_slice %230 {offsets = [0, 0], sizes = [8, 128], strides = [1, 1]} : vector<8x512xf32> to vector<8x128xf32>
    %232 = arith.negf %231 : vector<8x128xf32>
    %233 = math.exp %232 : vector<8x128xf32>
    %cst_62 = arith.constant 1.000000e+00 : f32
    %234 = vector.broadcast %cst_62 : f32 to vector<8x128xf32>
    %235 = arith.addf %234, %233 : vector<8x128xf32>
    %236 = arith.divf %234, %235 : vector<8x128xf32>
    %237 = vector.extract_strided_slice %230 {offsets = [0, 128], sizes = [8, 128], strides = [1, 1]} : vector<8x512xf32> to vector<8x128xf32>
    %238 = arith.negf %237 : vector<8x128xf32>
    %239 = math.exp %238 : vector<8x128xf32>
    %cst_63 = arith.constant 1.000000e+00 : f32
    %240 = vector.broadcast %cst_63 : f32 to vector<8x128xf32>
    %241 = arith.addf %240, %239 : vector<8x128xf32>
    %242 = arith.divf %240, %241 : vector<8x128xf32>
    %243 = vector.extract_strided_slice %230 {offsets = [0, 256], sizes = [8, 128], strides = [1, 1]} : vector<8x512xf32> to vector<8x128xf32>
    %244 = math.tanh %243 : vector<8x128xf32>
    %245 = vector.extract_strided_slice %230 {offsets = [0, 384], sizes = [8, 128], strides = [1, 1]} : vector<8x512xf32> to vector<8x128xf32>
    %246 = arith.negf %245 : vector<8x128xf32>
    %247 = math.exp %246 : vector<8x128xf32>
    %cst_64 = arith.constant 1.000000e+00 : f32
    %248 = vector.broadcast %cst_64 : f32 to vector<8x128xf32>
    %249 = arith.addf %248, %247 : vector<8x128xf32>
    %250 = arith.divf %248, %249 : vector<8x128xf32>
    %251 = arith.mulf %242, %223 : vector<8x128xf32>
    %252 = arith.mulf %236, %244 : vector<8x128xf32>
    %253 = arith.addf %251, %252 : vector<8x128xf32>
    %254 = math.tanh %253 : vector<8x128xf32>
    %255 = arith.mulf %250, %254 : vector<8x128xf32>
    %c0_65 = arith.constant 0 : index
    %c0_66 = arith.constant 0 : index
    %256 = vector.load %arg10[%c0_65, %c0_66] : memref<8x128xf32, #tpu.memory_space<vmem>>, vector<8x128xf32>
    tpu.vector_store %arg10[%c0_65, %c0_66], %255 {strides = array<i32>} : memref<8x128xf32, #tpu.memory_space<vmem>>, vector<8x128xf32>,
    %c0_67 = arith.constant 0 : index
    %c0_68 = arith.constant 0 : index
    %257 = vector.load %arg11[%c0_67, %c0_68] : memref<8x128xf32, #tpu.memory_space<vmem>>, vector<8x128xf32>
    tpu.vector_store %arg11[%c0_67, %c0_68], %253 {strides = array<i32>} : memref<8x128xf32, #tpu.memory_space<vmem>>, vector<8x128xf32>,
    %c0_i32_69 = arith.constant 0 : i32
    %258 = arith.cmpi eq, %arg1, %c0_i32_69 : i32
    %259 = arith.extui %258 : i1 to i32
    %c0_i32_70 = arith.constant 0 : i32
    %260 = arith.cmpi ne, %259, %c0_i32_70 : i32
    scf.if %260 {
      %c0_71 = arith.constant 0 : index
      %c0_72 = arith.constant 0 : index
      %261 = vector.load %arg6[%c0_71, %c0_72] : memref<128x128xf32, #tpu.memory_space<vmem>>, vector<128x128xf32>
      %cst_73 = arith.constant dense<0.000000e+00> : vector<8x128xf32>
      %262 = tpu.matmul %255, %261, %cst_73 {dimension_numbers = #tpu.dot_dimension_numbers<[1], [0], [0], [1], [0, 0, 1, 1], [], []>} : vector<8x128xf32>, vector<128x128xf32>, vector<8x128xf32> -> vector<8x128xf32>
      %c0_74 = arith.constant 0 : index
      %c0_75 = arith.constant 0 : index
      %263 = vector.load %arg7[%c0_74, %c0_75] : memref<1x128xf32, #tpu.memory_space<vmem>>, vector<1x128xf32>
      %264 = vector.broadcast %263 : vector<1x128xf32> to vector<8x128xf32>
      %265 = arith.addf %262, %264 : vector<8x128xf32>
      %c0_76 = arith.constant 0 : index
      %c0_77 = arith.constant 0 : index
      %266 = vector.load %arg8[%c0_76, %c0_77] : memref<8x128xf32, #tpu.memory_space<vmem>>, vector<8x128xf32>
      tpu.vector_store %arg8[%c0_76, %c0_77], %265 {strides = array<i32>} : memref<8x128xf32, #tpu.memory_space<vmem>>, vector<8x128xf32>,
    } else {
    }
    return
  }
  func.func @transform_0(%arg0: i32, %arg1: i32) -> (i32, i32, i32) {
    %c0_i32 = arith.constant 0 : i32
    %c0_i32_0 = arith.constant 0 : i32
    return %arg0, %arg1, %c0_i32 : i32, i32, i32
  }
  func.func @transform_1(%arg0: i32, %arg1: i32) -> (i32, i32) {
    %c0_i32 = arith.constant 0 : i32
    %c0_i32_0 = arith.constant 0 : i32
    %c0_i32_1 = arith.constant 0 : i32
    return %c0_i32, %c0_i32_0 : i32, i32
  }
  func.func @transform_2(%arg0: i32, %arg1: i32) -> (i32, i32) {
    %c0_i32 = arith.constant 0 : i32
    %c0_i32_0 = arith.constant 0 : i32
    %c0_i32_1 = arith.constant 0 : i32
    return %c0_i32, %c0_i32_0 : i32, i32
  }
  func.func @transform_3(%arg0: i32, %arg1: i32) -> (i32, i32) {
    %c0_i32 = arith.constant 0 : i32
    %c0_i32_0 = arith.constant 0 : i32
    %c0_i32_1 = arith.constant 0 : i32
    return %c0_i32, %c0_i32_0 : i32, i32
  }
  func.func @transform_4(%arg0: i32, %arg1: i32) -> (i32, i32) {
    %c0_i32 = arith.constant 0 : i32
    %c0_i32_0 = arith.constant 0 : i32
    %c0_i32_1 = arith.constant 0 : i32
    return %c0_i32, %c0_i32_0 : i32, i32
  }
  func.func @transform_5(%arg0: i32, %arg1: i32) -> (i32, i32) {
    %c0_i32 = arith.constant 0 : i32
    %c0_i32_0 = arith.constant 0 : i32
    %c0_i32_1 = arith.constant 0 : i32
    return %c0_i32, %c0_i32_0 : i32, i32
  }
  func.func @transform_6(%arg0: i32, %arg1: i32) -> (i32, i32) {
    %c0_i32 = arith.constant 0 : i32
    %c0_i32_0 = arith.constant 0 : i32
    return %arg0, %c0_i32 : i32, i32
  }
}

</mosaic_0001>

<bundles_post_ra>
// kernel: tpu_custom_call.1
= control target key start
LH: loop header
LB: loop body
LE: loop exit
PB: predicated region body
PF: predicated region fallthrough
CT: control target
= control target key end

     0   :  { %11 = vsyncpa [#allocation6], 0  ;;  %s8018_s0 = inlined_call_operand.hbm [shape: f32[8,8,128], index: 0, kind: input, shape index: {}]   ;;  %s8019_s1 = inlined_call_operand.hbm [shape: bf16[128,512], index: 1, kind: input, shape index: {}]   ;;  %s8020_s2 = inlined_call_operand.hbm [shape: bf16[128,512], index: 2, kind: input, shape index: {}]   ;;  %s8021_s3 = inlined_call_operand.vmem [shape: f32[1,512], index: 3, kind: input, shape index: {}]   ;;  %s8022_s4 = inlined_call_operand.hbm [shape: f32[128,128], index: 4, kind: input, shape index: {}]   ;;  %s8023_s5 = inlined_call_operand.vmem [shape: f32[1,128], index: 5, kind: input, shape index: {}]   ;;  %s8024_s6 = inlined_call_operand.hbm [shape: f32[8,128], index: 6, kind: output, shape index: {}]  }
   0x1   :  { %12 = vsyncpa [#allocation9], 0 }
   0x2   :  { %13 = vsyncpa [#allocation12], 0 }
   0x3   :  { %14 = vsyncpa [#allocation7], 0  ;;  %s6414_s21 = smov [#allocation8]   ;;  %s6296_s25 = scalar_lea.hbm %s8019_s1, 4096 }
   0x4   :  { %s32_s22 = sshll.u32 %s6414_s21, 4  ;;  %p6297_p0 = scmp.ne.s32.totalorder %s8019_s1, %s6296_s25  ;;  %s33_s22 = int_to_ptr.vmem [resolvable:$true] %s32_s22 }
   0x5   :  { %p6300_p1 = scmp.lt.u32.totalorder %s6296_s25, %s8019_s1 }
   0x7   :  { %p6302_p2 = pnand %p6300_p1, %p6297_p0 }
   0x9   :  { %6305 = shalt.err (!%p6302_p2)
}
   0xa   :  { %s6306_s30 = scalar_lea.vmem %s33_s22, 4096  ;;  %p6311_p4 = scmp.lt.s32.totalorder %s33_s22, %s33_s22 }
   0xb   :  { %p6307_p3 = scmp.ne.s32.totalorder %s33_s22, %s6306_s30  ;;  %p6312_p5 = scmp.lt.s32.totalorder %s6306_s30, %s6306_s30 }
   0xd   :  { %p6313_p6 = por %p6312_p5, %p6311_p4 }
   0xf   :  { %p6314_p7 = pnand %p6313_p6, %p6307_p3 }
  0x11   :  { %6317 = shalt.err (!%p6314_p7)
}
  0x12   :  { %s6415_s7 = smov 256   ;;  %s6416_s8 = smov 16  }
  0x13   :  { %38 = dma.hbm_to_vmem [thread:$0]  %s8019_s1, 4096, %s33_s22, [#allocation9], %s6415_s7, %s6415_s7, %s6416_s8  }
  0x14   :  { %s6417_s11 = smov [#allocation5]   ;;  %s6318_s15 = scalar_lea.hbm %s8018_s0, 1024 }
  0x15   :  { %s20_s12 = sshll.u32 %s6417_s11, 4  ;;  %p6319_p8 = scmp.ne.s32.totalorder %s8018_s0, %s6318_s15  ;;  %s21_s12 = int_to_ptr.vmem [resolvable:$true] %s20_s12 }
  0x16   :  { %p6322_p9 = scmp.lt.u32.totalorder %s6318_s15, %s8018_s0 }
  0x18   :  { %p6324_p10 = pnand %p6322_p9, %p6319_p8 }
  0x1a   :  { %6327 = shalt.err (!%p6324_p10)
}
  0x1b   :  { %s6328_s20 = scalar_lea.vmem %s21_s12, 1024  ;;  %p6333_p12 = scmp.lt.s32.totalorder %s21_s12, %s21_s12 }
  0x1c   :  { %p6329_p11 = scmp.ne.s32.totalorder %s21_s12, %s6328_s20  ;;  %p6334_p13 = scmp.lt.s32.totalorder %s6328_s20, %s6328_s20 }
  0x1e   :  { %p6335_p0 = por %p6334_p13, %p6333_p12 }
  0x20   :  { %p6336_p1 = pnand %p6335_p0, %p6329_p11 }
  0x22   :  { %6339 = shalt.err (!%p6336_p1)
}
  0x23   :  { %s6418_s1 = smov 128   ;;  %s6419_s21 = smov 8  }
  0x24   :  { %26 = dma.hbm_to_vmem [thread:$0]  %s8018_s0, 1024, %s21_s12, [#allocation6], %s6418_s1, %s6418_s1, %s6419_s21  }
  0x25   :  { %s6420_s24 = smov [#allocation10]   ;;  %s6421_s26 = smov [#allocation11]  }
  0x26   :  { %s44_s25 = sshll.u32 %s6420_s24, 4  ;;  %s58_s27 = sshll.u32 %s6421_s26, 4  ;;  %s45_s25 = int_to_ptr.vmem [resolvable:$true] %s44_s25  ;;  %s6493_s27 = int_to_ptr.vmem [resolvable:$true] %s58_s27 }
  0x27   :  { %s6340_s30 = scalar_lea.hbm %s8020_s2, 4096 }
  0x28   :  { %p6341_p2 = scmp.ne.s32.totalorder %s8020_s2, %s6340_s30  ;;  %p6344_p3 = scmp.lt.u32.totalorder %s6340_s30, %s8020_s2 }
  0x2a   :  { %p6346_p4 = pnand %p6344_p3, %p6341_p2 }
  0x2c   :  { %6349 = shalt.err (!%p6346_p4)
}
  0x2d   :  { %s6350_s0 = scalar_lea.vmem %s45_s25, 4096  ;;  %p6355_p6 = scmp.lt.s32.totalorder %s45_s25, %s45_s25 }
  0x2e   :  { %p6351_p5 = scmp.ne.s32.totalorder %s45_s25, %s6350_s0  ;;  %p6356_p7 = scmp.lt.s32.totalorder %s6350_s0, %s6350_s0 }
  0x30   :  { %p6357_p8 = por %p6356_p7, %p6355_p6 }
  0x32   :  { %p6358_p9 = pnand %p6357_p8, %p6351_p5 }
  0x34   :  { %6361 = shalt.err (!%p6358_p9)
}
  0x35   :  { %50 = dma.hbm_to_vmem [thread:$0]  %s8020_s2, 4096, %s45_s25, [#allocation9], %s6415_s7, %s6415_s7, %s6416_s8  }
  0x36   :  { %s6362_s17 = scalar_lea.hbm %s8022_s4, 2048 }
  0x37   :  { %p6363_p10 = scmp.ne.s32.totalorder %s8022_s4, %s6362_s17  ;;  %p6366_p11 = scmp.lt.u32.totalorder %s6362_s17, %s8022_s4 }
  0x39   :  { %p6368_p12 = pnand %p6366_p11, %p6363_p10 }
  0x3b   :  { %6371 = shalt.err (!%p6368_p12)
}
  0x3c   :  { %s6372_s23 = scalar_lea.vmem %s6493_s27, 2048  ;;  %p6377_p0 = scmp.lt.s32.totalorder %s6493_s27, %s6493_s27 }
  0x3d   :  { %p6373_p13 = scmp.ne.s32.totalorder %s6493_s27, %s6372_s23  ;;  %p6378_p1 = scmp.lt.s32.totalorder %s6372_s23, %s6372_s23 }
  0x3f   :  { %p6379_p2 = por %p6378_p1, %p6377_p0 }
  0x41   :  { %p6380_p3 = pnand %p6379_p2, %p6373_p13 }
  0x43   :  { %6383 = shalt.err (!%p6380_p3)
}
  0x44   :  { %64 = dma.hbm_to_vmem [thread:$0]  %s8022_s4, 2048, %s6493_s27, [#allocation12], %s6418_s1, %s6418_s1, %s6419_s21  }
  0x45   :  { %6406 = dma.done.wait [#allocation6], 1024  }
  0x46   :  { %6407 = vsyncadd [#allocation6], 4294966272 }
  0x47   :  { %6408 = dma.done.wait [#allocation9], 8192  }
  0x48   :  { %6409 = vsyncadd [#allocation9], 4294959104 }
  0x49   :  { %6410 = dma.done.wait [#allocation12], 2048  }
  0x4a   :  { %6411 = vsyncadd [#allocation12], 4294965248  ;;  %v8028_v0 = vmov 0   ;;  %v5080_v1 = vld [vmem:[#allocation8 + $0x4] ss:$16 sps:$4 sm:$0xff]   ;;  %v87_v34 = vld [vmem:[#allocation5 + $0x8] sm:$0xff] }
  0x4b   :  { %344 = vmatprep.mubr.bf16.mxu0 %v8028_v0  ;;  %417 = vmatprep.mubr.bf16.mxu1 %v8028_v0  ;;  %v5082_v2 = vld [vmem:[#allocation8 + $0xc] ss:$16 sps:$4 sm:$0xff]   ;;  %v5084_v3 = vld [vmem:[#allocation8] ss:$16 sps:$4 sm:$0xff]   ;;  %v5085_v4 = vld [vmem:[#allocation8 + $0x8] ss:$16 sps:$4 sm:$0xff]  }
  0x4c   :  { %312 = vmatprep.subr.bf16.mxu0 %v5080_v1  ;;  %385 = vmatprep.subr.bf16.mxu1 %v5082_v2  ;;  %v5086_v5 = vld [vmem:[#allocation8 + $0x24] ss:$16 sps:$4 sm:$0xff]   ;;  %v5088_v6 = vld [vmem:[#allocation8 + $0x2c] ss:$16 sps:$4 sm:$0xff]   ;;  %v5090_v7 = vld [vmem:[#allocation8 + $0x20] ss:$16 sps:$4 sm:$0xff]  }
  0x4d   :  { %313 = vmatpush1.bf16.msra.mxu0 %v5084_v3  ;;  %386 = vmatpush1.bf16.msra.mxu1 %v5085_v4  ;;  %v5091_v8 = vld [vmem:[#allocation8 + $0x28] ss:$16 sps:$4 sm:$0xff]   ;;  %v5092_v9 = vld [vmem:[#allocation8 + $0x44] ss:$16 sps:$4 sm:$0xff]   ;;  %v5094_v10 = vld [vmem:[#allocation8 + $0x4c] ss:$16 sps:$4 sm:$0xff]  }
  0x4e   :  { %314 = vmatprep.subr.bf16.mxu0 %v5086_v5  ;;  %387 = vmatprep.subr.bf16.mxu1 %v5088_v6  ;;  %v5096_v11 = vld [vmem:[#allocation8 + $0x40] ss:$16 sps:$4 sm:$0xff]   ;;  %v5097_v12 = vld [vmem:[#allocation8 + $0x48] ss:$16 sps:$4 sm:$0xff]   ;;  %v5098_v13 = vld [vmem:[#allocation8 + $0x64] ss:$16 sps:$4 sm:$0xff]  }
  0x4f   :  { %v5100_v14 = vld [vmem:[#allocation8 + $0x6c] ss:$16 sps:$4 sm:$0xff]   ;;  %v5102_v15 = vld [vmem:[#allocation8 + $0x60] ss:$16 sps:$4 sm:$0xff]   ;;  %v5103_v16 = vld [vmem:[#allocation8 + $0x68] ss:$16 sps:$4 sm:$0xff]  }
  0x50   :  { %v5104_v17 = vld [vmem:[#allocation8 + $0x84] ss:$16 sps:$4 sm:$0xff]   ;;  %v5106_v18 = vld [vmem:[#allocation8 + $0x8c] ss:$16 sps:$4 sm:$0xff]   ;;  %v5108_v19 = vld [vmem:[#allocation8 + $0x80] ss:$16 sps:$4 sm:$0xff]  }
  0x51   :  { %315 = vmatpush1.bf16.msra.mxu0 %v5090_v7  ;;  %388 = vmatpush1.bf16.msra.mxu1 %v5091_v8  ;;  %v5109_v20 = vld [vmem:[#allocation8 + $0x88] ss:$16 sps:$4 sm:$0xff]   ;;  %v5110_v21 = vld [vmem:[#allocation8 + $0xa4] ss:$16 sps:$4 sm:$0xff]   ;;  %v5112_v22 = vld [vmem:[#allocation8 + $0xac] ss:$16 sps:$4 sm:$0xff]  }
  0x52   :  { %316 = vmatprep.subr.bf16.mxu0 %v5092_v9  ;;  %389 = vmatprep.subr.bf16.mxu1 %v5094_v10  ;;  %v5114_v23 = vld [vmem:[#allocation8 + $0xa0] ss:$16 sps:$4 sm:$0xff]   ;;  %v5115_v24 = vld [vmem:[#allocation8 + $0xa8] ss:$16 sps:$4 sm:$0xff]   ;;  %v5116_v25 = vld [vmem:[#allocation8 + $0xc4] ss:$16 sps:$4 sm:$0xff]  }
  0x53   :  { %v5118_v26 = vld [vmem:[#allocation8 + $0xcc] ss:$16 sps:$4 sm:$0xff]   ;;  %v5120_v27 = vld [vmem:[#allocation8 + $0xc0] ss:$16 sps:$4 sm:$0xff]   ;;  %v5121_v28 = vld [vmem:[#allocation8 + $0xc8] ss:$16 sps:$4 sm:$0xff]  }
  0x54   :  { %v5122_v29 = vld [vmem:[#allocation8 + $0xe4] ss:$16 sps:$4 sm:$0xff]   ;;  %v5124_v30 = vld [vmem:[#allocation8 + $0xec] ss:$16 sps:$4 sm:$0xff]   ;;  %v5126_v31 = vld [vmem:[#allocation8 + $0xe0] ss:$16 sps:$4 sm:$0xff]  }
  0x55   :  { %317 = vmatpush1.bf16.msra.mxu0 %v5096_v11  ;;  %390 = vmatpush1.bf16.msra.mxu1 %v5097_v12  ;;  %v5127_v32 = vld [vmem:[#allocation8 + $0xe8] ss:$16 sps:$4 sm:$0xff]   ;;  %v86_v33 = vld [vmem:[#allocation5] sm:$0xff]  ;;  %v6534_v36 = vld [vmem:[#allocation10 + $0xc] ss:$16 sps:$4 sm:$0xff]   ;;  %vm1217_vm0 = vcmask 1041409  }
  0x56   :  { %318 = vmatprep.subr.bf16.mxu0 %v5098_v13  ;;  %391 = vmatprep.subr.bf16.mxu1 %v5100_v14  ;;  %v6532_v35 = vld [vmem:[#allocation10 + $0x4] ss:$16 sps:$4 sm:$0xff]   ;;  %v94_v37 = vpack.c.bf16 %v87_v34, %v86_v33  ;;  %v6536_v38 = vld [vmem:[#allocation10] ss:$16 sps:$4 sm:$0xff]   ;;  %v6538_v39 = vld [vmem:[#allocation10 + $0x8] ss:$16 sps:$4 sm:$0xff]  }
  0x57   :  { %v6542_v40 = vld [vmem:[#allocation10 + $0x24] ss:$16 sps:$4 sm:$0xff]   ;;  %v6544_v41 = vld [vmem:[#allocation10 + $0x2c] ss:$16 sps:$4 sm:$0xff]   ;;  %v6546_v42 = vld [vmem:[#allocation10 + $0x20] ss:$16 sps:$4 sm:$0xff]  }
  0x58   :  { %v6548_v43 = vld [vmem:[#allocation10 + $0x28] ss:$16 sps:$4 sm:$0xff]   ;;  %v88_v44 = vld [vmem:[#allocation5 + $0x10] sm:$0xff]  ;;  %v6556_v47 = vld [vmem:[#allocation10 + $0x4c] ss:$16 sps:$4 sm:$0xff]   ;;  %v8026_v14 = vmov 0.0|0.0  }
  0x59   :  { %319 = vmatpush1.bf16.msra.mxu0 %v5102_v15  ;;  %392 = vmatpush1.bf16.msra.mxu1 %v5103_v16  ;;  %v89_v45 = vld [vmem:[#allocation5 + $0x18] sm:$0xff]  ;;  %v6552_v46 = vld [vmem:[#allocation10 + $0x44] ss:$16 sps:$4 sm:$0xff]   ;;  %v6560_v49 = vld [vmem:[#allocation10 + $0x40] ss:$16 sps:$4 sm:$0xff]   ;;  %v132_v15 = vlaneseq  ;;  %vm1220_vm1 = vcmask 1042434  }
  0x5a   :  { %320 = vmatprep.subr.bf16.mxu0 %v5104_v17  ;;  %393 = vmatprep.subr.bf16.mxu1 %v5106_v18  ;;  %v95_v48 = vpack.c.bf16 %v89_v45, %v88_v44  ;;  %v6562_v50 = vld [vmem:[#allocation10 + $0x48] ss:$16 sps:$4 sm:$0xff]   ;;  %v6566_v51 = vld [vmem:[#allocation10 + $0x64] ss:$16 sps:$4 sm:$0xff]   ;;  %v6570_v52 = vld [vmem:[#allocation10 + $0x6c] ss:$16 sps:$4 sm:$0xff]  }
  0x5b   :  { %v6572_v53 = vld [vmem:[#allocation10 + $0x60] ss:$16 sps:$4 sm:$0xff]   ;;  %v6574_v54 = vld [vmem:[#allocation10 + $0x68] ss:$16 sps:$4 sm:$0xff]   ;;  %v6580_v57 = vld [vmem:[#allocation10 + $0x84] ss:$16 sps:$4 sm:$0xff]  }
  0x5c   :  { %v90_v55 = vld [vmem:[#allocation5 + $0x20] sm:$0xff]  ;;  %v91_v56 = vld [vmem:[#allocation5 + $0x28] sm:$0xff]  ;;  %v92_v3 = vld [vmem:[#allocation5 + $0x30] sm:$0xff]  ;;  %v6626_v16 = vshrl.u32 %v132_v15, 7  ;;  %vm1223_vm2 = vcmask 1043459   ;;  %vm1226_vm3 = vcmask 1044484  }
  0x5d   :  { %321 = vmatpush1.bf16.msra.mxu0 %v5108_v19  ;;  %394 = vmatpush1.bf16.msra.mxu1 %v5109_v20  ;;  %v6582_v58 = vld [vmem:[#allocation10 + $0x8c] ss:$16 sps:$4 sm:$0xff]   ;;  %v96_v59 = vpack.c.bf16 %v91_v56, %v90_v55  ;;  %v6588_v60 = vld [vmem:[#allocation10 + $0x80] ss:$16 sps:$4 sm:$0xff]   ;;  %v6590_v61 = vld [vmem:[#allocation10 + $0x88] ss:$16 sps:$4 sm:$0xff]  }
  0x5e   :  { %322 = vmatprep.subr.bf16.mxu0 %v5110_v21  ;;  %395 = vmatprep.subr.bf16.mxu1 %v5112_v22  ;;  %v5158_v62 = vld [vmem:[#allocation10 + $0xa4] ss:$16 sps:$4 sm:$0xff]   ;;  %v5160_v63 = vld [vmem:[#allocation10 + $0xac] ss:$16 sps:$4 sm:$0xff]   ;;  %v5162_v1 = vld [vmem:[#allocation10 + $0xa0] ss:$16 sps:$4 sm:$0xff]  }
  0x5f   :  { %v5163_v2 = vld [vmem:[#allocation10 + $0xa8] ss:$16 sps:$4 sm:$0xff]   ;;  %v5164_v5 = vld [vmem:[#allocation10 + $0xc4] ss:$16 sps:$4 sm:$0xff]   ;;  %v5166_v6 = vld [vmem:[#allocation10 + $0xcc] ss:$16 sps:$4 sm:$0xff]  }
  0x60   :  { %v93_v4 = vld [vmem:[#allocation5 + $0x38] sm:$0xff]  ;;  %v5168_v8 = vld [vmem:[#allocation10 + $0xc0] ss:$16 sps:$4 sm:$0xff]   ;;  %v5170_v10 = vld [vmem:[#allocation10 + $0xe4] ss:$16 sps:$4 sm:$0xff]   ;;  %v134_v17 = vsub.s32 0, %v6626_v16 }
  0x61   :  { %323 = vmatpush1.bf16.msra.mxu0 %v5114_v23  ;;  %396 = vmatpush1.bf16.msra.mxu1 %v5115_v24  ;;  %v97_v7 = vpack.c.bf16 %v93_v4, %v92_v3  ;;  %v5169_v9 = vld [vmem:[#allocation10 + $0xc8] ss:$16 sps:$4 sm:$0xff]   ;;  %v5172_v11 = vld [vmem:[#allocation10 + $0xec] ss:$16 sps:$4 sm:$0xff]   ;;  %v5174_v12 = vld [vmem:[#allocation10 + $0xe0] ss:$16 sps:$4 sm:$0xff]  }
  0x62   :  { %324 = vmatprep.subr.bf16.mxu0 %v5116_v25  ;;  %397 = vmatprep.subr.bf16.mxu1 %v5118_v26  ;;  %v5175_v13 = vld [vmem:[#allocation10 + $0xe8] ss:$16 sps:$4 sm:$0xff]   ;;  %v142_v18 = vsub.s32 2, %v6626_v16  ;;  %v130_v19 = vld [vmem:[%s8021_s3] sm:$0xf]  ;;  %v138_v20 = vsub.s32 1, %v6626_v16 }
  0x63   :  { %v146_v21 = vsub.s32 3, %v6626_v16  ;;  %v6635_v22 = vrot.slane %v130_v19, %v134_v17  ;;  %vm1229_vm4 = vcmask 1045509   ;;  %vm1232_vm5 = vcmask 1046534   ;;  %s6427_s21 = smov [#allocation13]  }
  0x64   :  { %v6637_v23 = vrot.slane %v130_v19, %v142_v18  ;;  %v6639_v24 = vrot.slane %v130_v19, %v138_v20  ;;  %vm1235_vm6 = vcmask 1047559   ;;  %vm6426_vm7 = vmmov 0   ;;  %s4722_s24 = sshll.u32 %s6427_s21, 4  ;;  %s4723_s24 = int_to_ptr.vmem [resolvable:$true] %s4722_s24 }
  0x65   :  { %325 = vmatpush1.bf16.msra.mxu0 %v5120_v27  ;;  %398 = vmatpush1.bf16.msra.mxu1 %v5121_v28  ;;  %v6641_v25 = vrot.slane %v130_v19, %v146_v21  ;;  %s6384_s25 = scalar_lea.vmem %s4723_s24, 128  ;;  %p6389_p5 = scmp.lt.s32.totalorder %s4723_s24, %s4723_s24 }
  0x66   :  { %326 = vmatprep.subr.bf16.mxu0 %v5122_v29  ;;  %399 = vmatprep.subr.bf16.mxu1 %v5124_v30  ;;  %p6385_p4 = scmp.ne.s32.totalorder %s4723_s24, %s6384_s25  ;;  %p6390_p6 = scmp.lt.s32.totalorder %s6384_s25, %s6384_s25 }
  0x68   :  { %p6391_p7 = por %p6390_p6, %p6389_p5 }
  0x69   :  { %327 = vmatpush1.bf16.msra.mxu0 %v5126_v31  ;;  %400 = vmatpush1.bf16.msra.mxu1 %v5127_v32 }
  0x6a   :  { %700 = vmatprep.subr.bf16.mxu0 %v6532_v35  ;;  %741 = vmatprep.subr.bf16.mxu1 %v6534_v36  ;;  %p6392_p8 = pnand %p6391_p7, %p6385_p4 }
  0x6c   :  { %345 = vmatmul.mubr.bf16.vlgmr.msra.gmra.mrb[0].mxu0 %v94_v37  ;;  %418 = vmatmul.mubr.bf16.vlgmr.msra.gmra.mrb[0].mxu1 %v94_v37 }
  0x6d   :  { %701 = vmatpush1.bf16.msra.mxu0 %v6536_v38  ;;  %742 = vmatpush1.bf16.msra.mxu1 %v6538_v39 }
  0x6e   :  { %702 = vmatprep.subr.bf16.mxu0 %v6542_v40  ;;  %743 = vmatprep.subr.bf16.mxu1 %v6544_v41 }
  0x6f   :  { %354 = vmatprep.mubr.bf16.mxu0 %v8028_v0  ;;  %427 = vmatprep.mubr.bf16.mxu1 %v8028_v0 }
  0x71   :  { %703 = vmatpush1.bf16.msra.mxu0 %v6546_v42  ;;  %744 = vmatpush1.bf16.msra.mxu1 %v6548_v43 }
  0x72   :  { %704 = vmatprep.subr.bf16.mxu0 %v6552_v46  ;;  %745 = vmatprep.subr.bf16.mxu1 %v6556_v47 }
  0x74   :  { %355 = vmatmul.mubr.bf16.gmra.mrb[4].mxu0 %v95_v48  ;;  %428 = vmatmul.mubr.bf16.gmra.mrb[4].mxu1 %v95_v48 }
  0x75   :  { %705 = vmatpush1.bf16.msra.mxu0 %v6560_v49  ;;  %746 = vmatpush1.bf16.msra.mxu1 %v6562_v50 }
  0x76   :  { %706 = vmatprep.subr.bf16.mxu0 %v6566_v51  ;;  %747 = vmatprep.subr.bf16.mxu1 %v6570_v52 }
  0x77   :  { %364 = vmatprep.mubr.bf16.mxu0 %v8028_v0  ;;  %437 = vmatprep.mubr.bf16.mxu1 %v8028_v0 }
  0x79   :  { %707 = vmatpush1.bf16.msra.mxu0 %v6572_v53  ;;  %748 = vmatpush1.bf16.msra.mxu1 %v6574_v54 }
  0x7a   :  { %708 = vmatprep.subr.bf16.mxu0 %v6580_v57  ;;  %749 = vmatprep.subr.bf16.mxu1 %v6582_v58 }
  0x7c   :  { %365 = vmatmul.mubr.bf16.gmra.mrb[8].mxu0 %v96_v59  ;;  %438 = vmatmul.mubr.bf16.gmra.mrb[8].mxu1 %v96_v59 }
  0x7d   :  { %709 = vmatpush1.bf16.msra.mxu0 %v6588_v60  ;;  %750 = vmatpush1.bf16.msra.mxu1 %v6590_v61 }
  0x7e   :  { %710 = vmatprep.subr.bf16.mxu0 %v5158_v62  ;;  %751 = vmatprep.subr.bf16.mxu1 %v5160_v63 }
  0x7f   :  { %374 = vmatprep.mubr.bf16.mxu0 %v8028_v0  ;;  %447 = vmatprep.mubr.bf16.mxu1 %v8028_v0 }
  0x81   :  { %711 = vmatpush1.bf16.msra.mxu0 %v5162_v1  ;;  %752 = vmatpush1.bf16.msra.mxu1 %v5163_v2 }
  0x82   :  { %712 = vmatprep.subr.bf16.mxu0 %v5164_v5  ;;  %753 = vmatprep.subr.bf16.mxu1 %v5166_v6 }
  0x84   :  { %375 = vmatmul.mubr.bf16.gmra.mrb[12].mxu0 %v97_v7  ;;  %448 = vmatmul.mubr.bf16.gmra.mrb[12].mxu1 %v97_v7 }
  0x85   :  { %713 = vmatpush1.bf16.msra.mxu0 %v5168_v8  ;;  %754 = vmatpush1.bf16.msra.mxu1 %v5169_v9 }
  0x86   :  { %714 = vmatprep.subr.bf16.mxu0 %v5170_v10  ;;  %755 = vmatprep.subr.bf16.mxu1 %v5172_v11 }
  0x87   :  { %732 = vmatprep.mubr.bf16.mxu0 %v8028_v0  ;;  %773 = vmatprep.mubr.bf16.mxu1 %v8028_v0 }
  0x89   :  { %715 = vmatpush1.bf16.msra.mxu0 %v5174_v12  ;;  %756 = vmatpush1.bf16.msra.mxu1 %v5175_v13 }
  0x8a   :  { %1239 = vmatprep.subr.bf16.mxu0 %v6532_v35  ;;  %1280 = vmatprep.subr.bf16.mxu1 %v6534_v36 }
  0x8c   :  { %733 = vmatmul.mubr.bf16.vlgmr.msra.gmra.mrb[16].mxu0 %v8026_v14  ;;  %774 = vmatmul.mubr.bf16.vlgmr.msra.gmra.mrb[16].mxu1 %v8026_v14 }
  0x8d   :  { %1240 = vmatpush1.bf16.msra.mxu0 %v6536_v38  ;;  %1281 = vmatpush1.bf16.msra.mxu1 %v6538_v39 }
  0x8e   :  { %1241 = vmatprep.subr.bf16.mxu0 %v6542_v40  ;;  %1282 = vmatprep.subr.bf16.mxu1 %v6544_v41 }
  0x8f   :  { %1271 = vmatprep.mubr.bf16.mxu0 %v8028_v0  ;;  %1312 = vmatprep.mubr.bf16.mxu1 %v8028_v0 }
  0x91   :  { %1242 = vmatpush1.bf16.msra.mxu0 %v6546_v42  ;;  %1283 = vmatpush1.bf16.msra.mxu1 %v6548_v43 }
  0x92   :  { %1243 = vmatprep.subr.bf16.mxu0 %v6552_v46  ;;  %1284 = vmatprep.subr.bf16.mxu1 %v6556_v47 }
  0x95   :  { %1244 = vmatpush1.bf16.msra.mxu0 %v6560_v49  ;;  %1285 = vmatpush1.bf16.msra.mxu1 %v6562_v50 }
  0x96   :  { %1245 = vmatprep.subr.bf16.mxu0 %v6566_v51  ;;  %1286 = vmatprep.subr.bf16.mxu1 %v6570_v52 }
  0x99   :  { %1246 = vmatpush1.bf16.msra.mxu0 %v6572_v53  ;;  %1287 = vmatpush1.bf16.msra.mxu1 %v6574_v54 }
  0x9a   :  { %1247 = vmatprep.subr.bf16.mxu0 %v6580_v57  ;;  %1288 = vmatprep.subr.bf16.mxu1 %v6582_v58 }
  0x9d   :  { %1248 = vmatpush1.bf16.msra.mxu0 %v6588_v60  ;;  %1289 = vmatpush1.bf16.msra.mxu1 %v6590_v61 }
  0x9e   :  { %1249 = vmatprep.subr.bf16.mxu0 %v5158_v62  ;;  %1290 = vmatprep.subr.bf16.mxu1 %v5160_v63 }
  0xa1   :  { %1250 = vmatpush1.bf16.msra.mxu0 %v5162_v1  ;;  %1291 = vmatpush1.bf16.msra.mxu1 %v5163_v2 }
  0xa2   :  { %1251 = vmatprep.subr.bf16.mxu0 %v5164_v5  ;;  %1292 = vmatprep.subr.bf16.mxu1 %v5166_v6 }
  0xa5   :  { %1252 = vmatpush1.bf16.msra.mxu0 %v5168_v8  ;;  %1293 = vmatpush1.bf16.msra.mxu1 %v5169_v9 }
  0xa6   :  { %1253 = vmatprep.subr.bf16.mxu0 %v5170_v10  ;;  %1294 = vmatprep.subr.bf16.mxu1 %v5172_v11 }
  0xa9   :  { %1254 = vmatpush1.bf16.msra.mxu0 %v5174_v12  ;;  %1295 = vmatpush1.bf16.msra.mxu1 %v5175_v13  ;;  %v6424_v13 = vmov 1966171168  }
  0xaa   :  { %1713 = vmatprep.subr.bf16.mxu0 %v6532_v35  ;;  %1754 = vmatprep.subr.bf16.mxu1 %v6534_v36  ;;  %v791_v15 = vunpack.c.l.s4 %v6424_v13 }
 0x13f   :  { %v346_v26 = vpop.f32.mrb[0].mxu0  ;;  %v419_v27 = vpop.f32.mrb[0].mxu1 }
 0x140   :  { %v347_v28 = vadd.f32 %v346_v26, %v6635_v22  ;;  %v420_v29 = vadd.f32 %v419_v27, %v6637_v23  ;;  %v348_v30 = vpop.f32.mrb[1].mxu0  ;;  %v421_v31 = vpop.f32.mrb[1].mxu1 }
 0x141   :  { %v349_v32 = vadd.f32 %v348_v30, %v6639_v24  ;;  %v422_v33 = vadd.f32 %v421_v31, %v6641_v25  ;;  %v350_v34 = vpop.f32.mrb[2].mxu0  ;;  %v423_v35 = vpop.f32.mrb[2].mxu1 }
 0x142   :  { %458 = vst [vmem:[#allocation2] sm:$0xff] %v347_v28  ;;  %460 = vst [vmem:[#allocation2 + $0x10] sm:$0xff] %v420_v29  ;;  %v351_v36 = vadd.f32 %v350_v34, %v6635_v22  ;;  %v424_v37 = vadd.f32 %v423_v35, %v6637_v23  ;;  %v352_v38 = vpop.f32.mrb[3].mxu0  ;;  %v425_v39 = vpop.f32.mrb[3].mxu1  ;;  %v792_v35 = vunpack.c.0.s8 %v791_v15 }
 0x143   :  { %459 = vst [vmem:[#allocation2 + $0x8] sm:$0xff] %v349_v32  ;;  %461 = vst [vmem:[#allocation2 + $0x18] sm:$0xff] %v422_v33  ;;  %v353_v40 = vadd.f32 %v352_v38, %v6639_v24  ;;  %v426_v41 = vadd.f32 %v425_v39, %v6641_v25 }
 0x144   :  { %462 = vst [vmem:[#allocation2 + $0x20] sm:$0xff] %v351_v36  ;;  %464 = vst [vmem:[#allocation2 + $0x30] sm:$0xff] %v424_v37  ;;  %v6676_v38 = vsub.s32 %v792_v35, %v6626_v16 }
 0x145   :  { %463 = vst [vmem:[#allocation2 + $0x28] sm:$0xff] %v353_v40  ;;  %465 = vst [vmem:[#allocation2 + $0x38] sm:$0xff] %v426_v41 }
 0x146   :  { %8067 = vst [vmem:[#allocation18_spill] sm:$0xff] %v6676_v38 }
 0x147   :  { %v356_v42 = vpop.f32.mrb[4].mxu0  ;;  %v429_v43 = vpop.f32.mrb[4].mxu1 }
 0x148   :  { %v357_v44 = vadd.f32 %v356_v42, %v6635_v22  ;;  %v430_v45 = vadd.f32 %v429_v43, %v6637_v23  ;;  %v358_v46 = vpop.f32.mrb[5].mxu0  ;;  %v431_v47 = vpop.f32.mrb[5].mxu1 }
 0x149   :  { %v359_v48 = vadd.f32 %v358_v46, %v6639_v24  ;;  %v432_v49 = vadd.f32 %v431_v47, %v6641_v25  ;;  %v360_v50 = vpop.f32.mrb[6].mxu0  ;;  %v433_v51 = vpop.f32.mrb[6].mxu1 }
 0x14a   :  { %466 = vst [vmem:[#allocation2 + $0x40] sm:$0xff] %v357_v44  ;;  %468 = vst [vmem:[#allocation2 + $0x50] sm:$0xff] %v430_v45  ;;  %v361_v52 = vadd.f32 %v360_v50, %v6635_v22  ;;  %v434_v53 = vadd.f32 %v433_v51, %v6637_v23  ;;  %v362_v54 = vpop.f32.mrb[7].mxu0  ;;  %v435_v55 = vpop.f32.mrb[7].mxu1 }
 0x14b   :  { %467 = vst [vmem:[#allocation2 + $0x48] sm:$0xff] %v359_v48  ;;  %469 = vst [vmem:[#allocation2 + $0x58] sm:$0xff] %v432_v49  ;;  %v363_v56 = vadd.f32 %v362_v54, %v6639_v24  ;;  %v436_v57 = vadd.f32 %v435_v55, %v6641_v25 }
 0x14c   :  { %470 = vst [vmem:[#allocation2 + $0x60] sm:$0xff] %v361_v52  ;;  %472 = vst [vmem:[#allocation2 + $0x70] sm:$0xff] %v434_v53 }
 0x14d   :  { %471 = vst [vmem:[#allocation2 + $0x68] sm:$0xff] %v363_v56  ;;  %473 = vst [vmem:[#allocation2 + $0x78] sm:$0xff] %v436_v57  ;;  %v524_v56 = vld [vmem:[#allocation2] ss:$8 sm:$0xf] }
 0x14e   :  { %v526_v57 = vld [vmem:[#allocation2 + $0x20] ss:$8 sm:$0xf] }
 0x14f   :  { %v366_v58 = vpop.f32.mrb[8].mxu0  ;;  %v439_v59 = vpop.f32.mrb[8].mxu1 }
 0x150   :  { %v367_v60 = vadd.f32 %v366_v58, %v6635_v22  ;;  %v440_v61 = vadd.f32 %v439_v59, %v6637_v23  ;;  %v368_v62 = vpop.f32.mrb[9].mxu0  ;;  %v441_v63 = vpop.f32.mrb[9].mxu1 }
 0x151   :  { %v369_v1 = vadd.f32 %v368_v62, %v6639_v24  ;;  %v442_v2 = vadd.f32 %v441_v63, %v6641_v25  ;;  %v370_v3 = vpop.f32.mrb[10].mxu0  ;;  %v443_v4 = vpop.f32.mrb[10].mxu1 }
 0x152   :  { %474 = vst [vmem:[#allocation2 + $0x80] sm:$0xff] %v367_v60  ;;  %476 = vst [vmem:[#allocation2 + $0x90] sm:$0xff] %v440_v61  ;;  %v371_v5 = vadd.f32 %v370_v3, %v6635_v22  ;;  %v444_v6 = vadd.f32 %v443_v4, %v6637_v23  ;;  %v372_v7 = vpop.f32.mrb[11].mxu0  ;;  %v445_v8 = vpop.f32.mrb[11].mxu1 }
 0x153   :  { %475 = vst [vmem:[#allocation2 + $0x88] sm:$0xff] %v369_v1  ;;  %477 = vst [vmem:[#allocation2 + $0x98] sm:$0xff] %v442_v2  ;;  %v373_v9 = vadd.f32 %v372_v7, %v6639_v24  ;;  %v446_v10 = vadd.f32 %v445_v8, %v6641_v25  ;;  %v528_v58 = vld [vmem:[#allocation2 + $0x40] ss:$8 sm:$0xf] }
 0x154   :  { %478 = vst [vmem:[#allocation2 + $0xa0] sm:$0xff] %v371_v5  ;;  %480 = vst [vmem:[#allocation2 + $0xb0] sm:$0xff] %v444_v6  ;;  %v530_v1 = vld [vmem:[#allocation2 + $0x60] ss:$8 sm:$0xf] }
 0x155   :  { %479 = vst [vmem:[#allocation2 + $0xa8] sm:$0xff] %v373_v9  ;;  %481 = vst [vmem:[#allocation2 + $0xb8] sm:$0xff] %v446_v10 }
 0x157   :  { %v376_v11 = vpop.f32.mrb[12].mxu0  ;;  %v449_v12 = vpop.f32.mrb[12].mxu1 }
 0x158   :  { %v377_v17 = vadd.f32 %v376_v11, %v6635_v22  ;;  %v450_v18 = vadd.f32 %v449_v12, %v6637_v23  ;;  %v378_v19 = vpop.f32.mrb[13].mxu0  ;;  %v451_v20 = vpop.f32.mrb[13].mxu1 }
 0x159   :  { %v379_v21 = vadd.f32 %v378_v19, %v6639_v24  ;;  %v452_v26 = vadd.f32 %v451_v20, %v6641_v25  ;;  %v380_v27 = vpop.f32.mrb[14].mxu0  ;;  %v453_v28 = vpop.f32.mrb[14].mxu1 }
 0x15a   :  { %482 = vst [vmem:[#allocation2 + $0xc0] sm:$0xff] %v377_v17  ;;  %484 = vst [vmem:[#allocation2 + $0xd0] sm:$0xff] %v450_v18  ;;  %v381_v29 = vadd.f32 %v380_v27, %v6635_v22  ;;  %v454_v30 = vadd.f32 %v453_v28, %v6637_v23  ;;  %v382_v31 = vpop.f32.mrb[15].mxu0  ;;  %v455_v32 = vpop.f32.mrb[15].mxu1 }
 0x15b   :  { %483 = vst [vmem:[#allocation2 + $0xc8] sm:$0xff] %v379_v21  ;;  %485 = vst [vmem:[#allocation2 + $0xd8] sm:$0xff] %v452_v26  ;;  %v383_v33 = vadd.f32 %v382_v31, %v6639_v24  ;;  %v456_v34 = vadd.f32 %v455_v32, %v6641_v25  ;;  %v532_v59 = vld [vmem:[#allocation2 + $0x80] ss:$8 sm:$0xf] }
 0x15c   :  { %486 = vst [vmem:[#allocation2 + $0xe0] sm:$0xff] %v381_v29  ;;  %488 = vst [vmem:[#allocation2 + $0xf0] sm:$0xff] %v454_v30  ;;  %v534_v2 = vld [vmem:[#allocation2 + $0xa0] ss:$8 sm:$0xf] }
 0x15d   :  { %487 = vst [vmem:[#allocation2 + $0xe8] sm:$0xff] %v383_v33  ;;  %489 = vst [vmem:[#allocation2 + $0xf8] sm:$0xff] %v456_v34 }
 0x15f   :  { %v734_v36 = vpop.f32.mrb[16].mxu0  ;;  %v775_v37 = vpop.f32.mrb[16].mxu1 }
 0x160   :  { %v736_v22 = vpop.f32.mrb[17].mxu0  ;;  %v777_v23 = vpop.f32.mrb[17].mxu1 }
 0x161   :  { %v786_v39 = vcombine.low %v734_v36, %v736_v22  ;;  %v787_v40 = vcombine.high %v734_v36, %v736_v22  ;;  %v788_v41 = vcombine.low %v775_v37, %v777_v23  ;;  %v789_v42 = vcombine.high %v775_v37, %v777_v23  ;;  %v738_v43 = vpop.f32.mrb[18].mxu0  ;;  %v779_v24 = vpop.f32.mrb[18].mxu1 }
 0x162   :  { %v739_v44 = vpop.f32.mrb[19].mxu0  ;;  %v780_v25 = vpop.f32.mrb[19].mxu1  ;;  %v536_v6 = vld [vmem:[#allocation2 + $0xc0] ss:$8 sm:$0xf] }
 0x163   :  { %v796_v45 = vrot.slane %v786_v39, %v6676_v38  ;;  %v803_v46 = vrot.slane %v787_v40, %v6676_v38  ;;  %v810_v47 = vrot.slane %v788_v41, %v6676_v38  ;;  %v817_v48 = vrot.slane %v789_v42, %v6676_v38 }
 0x164   :  { %v538_v7 = vld [vmem:[#allocation2 + $0xe0] ss:$8 sm:$0xf] }
 0x165   :  { %v818_v16 = vcombine.low %v796_v45, %v810_v47  ;;  %v819_v49 = vcombine.high %v796_v45, %v810_v47  ;;  %v820_v50 = vcombine.low %v803_v46, %v817_v48  ;;  %v821_v51 = vcombine.high %v803_v46, %v817_v48 }
 0x167   :  { %v828_v52 = vrot.slane %v818_v16, %v6676_v38  ;;  %v835_v53 = vrot.slane %v820_v50, %v6676_v38  ;;  %v842_v54 = vrot.slane %v819_v49, %v6676_v38  ;;  %v849_v55 = vrot.slane %v821_v51, %v6676_v38 }
 0x169   :  { %v850_v60 = vcombine.high %v828_v52, %v828_v52  ;;  %v851_v61 = vcombine.high %v835_v53, %v835_v53  ;;  %v852_v62 = vcombine.high %v842_v54, %v842_v54  ;;  %v853_v63 = vcombine.high %v849_v55, %v849_v55 }
 0x16a   :  { %v6686_v3 = vadd.f32 %v828_v52, %v524_v56  ;;  %v6688_v4 = vadd.f32 %v842_v54, %v526_v57  ;;  %v6690_v5 = vadd.f32 %v835_v53, %v532_v59  ;;  %v6696_v10 = vadd.f32 %v849_v55, %v534_v2 }
 0x16b   :  { %v6692_v8 = vadd.f32 %v850_v60, %v528_v58  ;;  %v6694_v9 = vadd.f32 %v852_v62, %v530_v1  ;;  %v6698_v11 = vadd.f32 %v851_v61, %v536_v6  ;;  %v6702_v15 = vadd.f32 %v853_v63, %v538_v7 }
 0x16c   :  { %v4797_v12 = vmul.f32 -1.442695, %v6686_v3  ;;  %v4798_v13 = vmul.f32 -1.442695, %v6688_v4  ;;  %v4801_v19 = vmul.f32 -1.442695, %v6690_v5 }
 0x16d   :  { %v4799_v17 = vmul.f32 -1.442695, %v6692_v8  ;;  %v4800_v18 = vmul.f32 -1.442695, %v6694_v9  ;;  %v926_v20 = vrot.slane %v6686_v3, 1  ;;  %v927_v26 = vrot.slane %v6688_v4, 1 }
 0x16e   :  { %5176 = vpow2.f32 %v4797_v12  ;;  %v4802_v21 = vmul.f32 -1.442695, %v6696_v10  ;;  %v4803_v27 = vmul.f32 -1.442695, %v6698_v11  ;;  %v928_v28 = vrot.slane %v6692_v8, 1 }
 0x16f   :  { %5178 = vpow2.f32 %v4798_v13  ;;  %v4804_v29 = vmul.f32 -1.442695, %v6702_v15  ;;  %v929_v30 = vrot.slane %v6694_v9, 1  ;;  %v930_v31 = vrot.slane %v6690_v5, 1 }
 0x170   :  { %5180 = vpow2.f32 %v4799_v17  ;;  %v4805_v32 = vmul.f32 -1.442695, %v926_v20  ;;  %v4806_v33 = vmul.f32 -1.442695, %v927_v26  ;;  %v4807_v34 = vmul.f32 -1.442695, %v928_v28 }
 0x171   :  { %5182 = vpow2.f32 %v4800_v18  ;;  %v4808_v35 = vmul.f32 -1.442695, %v929_v30  ;;  %v4809_v36 = vmul.f32 -1.442695, %v930_v31  ;;  %v931_v43 = vrot.slane %v6696_v10, 1 }
 0x172   :  { %5184 = vpow2.f32 %v4801_v19  ;;  %v932_v25 = vrot.slane %v6698_v11, 1  ;;  %v933_v47 = vrot.slane %v6702_v15, 1  ;;  %v990_v12 = vrot.slane %v6686_v3, 2 }
 0x173   :  { %5186 = vpow2.f32 %v4802_v21  ;;  %v4810_v51 = vmul.f32 -1.442695, %v931_v43  ;;  %v991_v17 = vrot.slane %v6688_v4, 2  ;;  %v992_v19 = vrot.slane %v6692_v8, 2 }
 0x174   :  { %5188 = vpow2.f32 %v4803_v27  ;;  %v4811_v54 = vmul.f32 -1.442695, %v932_v25  ;;  %v4812_v56 = vmul.f32 -1.442695, %v933_v47  ;;  %v8025_v20 = vmov 0.0  }
 0x175   :  { %5190 = vpow2.f32 %v4804_v29  ;;  %v1086_v21 = vrot.slane %v8025_v20, %v6676_v38  ;;  %v993_v27 = vrot.slane %v6694_v9, 2  ;;  %v994_v29 = vrot.slane %v6690_v5, 2 }
 0x176   :  { %5192 = vpow2.f32 %v4805_v32  ;;  %v1079_v32 = vcombine.high %v8025_v20, %v8025_v20  ;;  %v996_v43 = vrot.slane %v6698_v11, 2  ;;  %v1017_v25 = vrot.slane %v6694_v9, 3  ;;  %v1183_v20 = vld [vmem:[#allocation2 + $0x61] ss:$8 sm:$0xf] }
 0x177   :  { %5194 = vpow2.f32 %v4806_v33  ;;  %v1094_v33 = vcombine.high %v1086_v21, %v1086_v21  ;;  %v1018_v47 = vrot.slane %v6690_v5, 3 }
 0x178   :  { %v5177_v37 = vpop.eup %5176  ;;  %5196 = vpow2.f32 %v4807_v34 }
 0x179   :  { %v5179_v22 = vpop.eup %5178  ;;  %v894_v23 = vadd.f32 1.0, %v5177_v37  ;;  %5198 = vpow2.f32 %v4808_v35  ;;  %v1102_v37 = vrot.slane %v1086_v21, %v6676_v38 }
 0x17a   :  { %v5181_v39 = vpop.eup %5180  ;;  %v895_v40 = vadd.f32 1.0, %v5179_v22  ;;  %5200 = vpow2.f32 %v4809_v36  ;;  %v1014_v36 = vrot.slane %v6686_v3, 3  ;;  %v997_v3 = vrot.slane %v6702_v15, 2 }
 0x17b   :  { %v5183_v41 = vpop.eup %5182  ;;  %v896_v42 = vadd.f32 1.0, %v5181_v39  ;;  %5202 = vrcp.f32 %v894_v23  ;;  %v995_v39 = vrot.slane %v6696_v10, 2  ;;  %v1124_v9 = vcombine.high %v1102_v37, %v1102_v37 }
 0x17c   :  { %v5185_v24 = vpop.eup %5184  ;;  %v897_v44 = vadd.f32 1.0, %v5183_v41  ;;  %5204 = vrcp.f32 %v895_v40  ;;  %v1015_v40 = vrot.slane %v6688_v4, 3  ;;  %v4813_v4 = vmul.f32 -1.442695, %v1014_v36 }
 0x17d   :  { %v5187_v45 = vpop.eup %5186  ;;  %v898_v46 = vadd.f32 1.0, %v5185_v24  ;;  %5206 = vrcp.f32 %v896_v42  ;;  %v1016_v24 = vrot.slane %v6692_v8, 3  ;;  %v1093_v8 = vrot.slane %v1079_v32, %v6676_v38 }
 0x17e   :  { %v5189_v48 = vpop.eup %5188  ;;  %v899_v16 = vadd.f32 1.0, %v5187_v45  ;;  %5208 = vrcp.f32 %v897_v44  ;;  %v1116_v45 = vrot.slane %v1094_v33, %v6676_v38 }
 0x17f   :  { %v5191_v49 = vpop.eup %5190  ;;  %v900_v50 = vadd.f32 1.0, %v5189_v48  ;;  %5210 = vrcp.f32 %v898_v46 }
 0x180   :  { %v5193_v52 = vpop.eup %5192  ;;  %v901_v53 = vadd.f32 1.0, %v5191_v49  ;;  %5212 = vrcp.f32 %v899_v16  ;;  %v1019_v16 = vrot.slane %v6696_v10, 3  ;;  %v4814_v49 = vmul.f32 -1.442695, %v1015_v40 }
 0x181   :  { %v5195_v55 = vpop.eup %5194  ;;  %5214 = vrcp.f32 %v900_v50  ;;  %v966_v58 = vadd.f32 1.0, %v5193_v52  ;;  %v4815_v52 = vmul.f32 -1.442695, %v1016_v24  ;;  %v1126_v5 = vcombine.high %v1116_v45, %v1116_v45 }
 0x182   :  { %v5197_v57 = vpop.eup %5196  ;;  %5216 = vrcp.f32 %v901_v53  ;;  %v967_v60 = vadd.f32 1.0, %v5195_v55  ;;  %v4816_v55 = vmul.f32 -1.442695, %v1017_v25  ;;  %v1109_v10 = vrot.slane %v1093_v8, %v6676_v38 }
 0x183   :  { %v5199_v59 = vpop.eup %5198  ;;  %5218 = vpow2.f32 %v4810_v51  ;;  %v968_v62 = vadd.f32 1.0, %v5197_v57  ;;  %v1020_v51 = vrot.slane %v6698_v11, 3  ;;  %v4817_v57 = vmul.f32 -1.442695, %v1018_v47 }
 0x184   :  { %v5201_v61 = vpop.eup %5200  ;;  %5220 = vpow2.f32 %v4811_v54  ;;  %v969_v1 = vadd.f32 1.0, %v5199_v59  ;;  %v1021_v54 = vrot.slane %v6702_v15, 3 }
 0x185   :  { %v6718_v63 = vpop.eup %5202  ;;  %5222 = vpow2.f32 %v4812_v56  ;;  %v970_v6 = vadd.f32 1.0, %v5201_v61 }
 0x186   :  { %v6720_v2 = vpop.eup %5204  ;;  %5224 = vrcp.f32 %v966_v58 }
 0x187   :  { %v6722_v7 = vpop.eup %5206  ;;  %5226 = vrcp.f32 %v967_v60  ;;  %v4818_v60 = vmul.f32 -1.442695, %v1019_v16 }
 0x188   :  { %v6725_v13 = vpop.eup %5208  ;;  %5228 = vrcp.f32 %v968_v62  ;;  %v1095_v62 = vcombine.high %v1093_v8, %v1093_v8 }
 0x189   :  { %v6728_v18 = vpop.eup %5210  ;;  %5230 = vrcp.f32 %v969_v1  ;;  %v4819_v1 = vmul.f32 -1.442695, %v1020_v51 }
 0x18a   :  { %v6733_v26 = vpop.eup %5212  ;;  %5232 = vrcp.f32 %v970_v6 }
 0x18b   :  { %v6736_v28 = vpop.eup %5214  ;;  %5234 = vtanh.f32 %v990_v12 }
 0x18c   :  { %v6739_v30 = vpop.eup %5216  ;;  %5236 = vtanh.f32 %v991_v17  ;;  %v4820_v17 = vmul.f32 -1.442695, %v1021_v54 }
 0x18d   :  { %v5219_v31 = vpop.eup %5218  ;;  %5238 = vtanh.f32 %v992_v19 }
 0x18e   :  { %v5221_v34 = vpop.eup %5220  ;;  %v971_v35 = vadd.f32 1.0, %v5219_v31  ;;  %5240 = vtanh.f32 %v993_v27 }
 0x18f   :  { %v5223_v22 = vpop.eup %5222  ;;  %v972_v23 = vadd.f32 1.0, %v5221_v34  ;;  %5242 = vtanh.f32 %v994_v29 }
 0x190   :  { %v5225_v41 = vpop.eup %5224  ;;  %v973_v42 = vadd.f32 1.0, %v5223_v22  ;;  %5244 = vrcp.f32 %v971_v35 }
 0x191   :  { %v5227_v44 = vpop.eup %5226  ;;  %5246 = vrcp.f32 %v972_v23  ;;  %v1136_v58 = vmul.f32 %v5225_v41, %v1102_v37 }
 0x192   :  { %v5229_v46 = vpop.eup %5228  ;;  %5248 = vrcp.f32 %v973_v42  ;;  %v1137_v61 = vmul.f32 %v5227_v44, %v1116_v45 }
 0x193   :  { %v5231_v48 = vpop.eup %5230  ;;  %5250 = vtanh.f32 %v995_v39  ;;  %v1138_v6 = vmul.f32 %v5229_v46, %v1124_v9 }
 0x194   :  { %v5233_v50 = vpop.eup %5232  ;;  %5252 = vtanh.f32 %v996_v43  ;;  %v1139_v19 = vmul.f32 %v5231_v48, %v1126_v5 }
 0x195   :  { %v5235_v53 = vpop.eup %5234  ;;  %5254 = vtanh.f32 %v997_v3  ;;  %v1140_v29 = vmul.f32 %v5233_v50, %v1109_v10 }
 0x196   :  { %v5237_v56 = vpop.eup %5236  ;;  %5256 = vpow2.f32 %v4813_v4  ;;  %v1144_v12 = vmul.f32 %v5235_v53, %v6718_v63 }
 0x197   :  { %v5239_v59 = vpop.eup %5238  ;;  %5258 = vpow2.f32 %v4814_v49  ;;  %v1145_v21 = vmul.f32 %v5237_v56, %v6720_v2 }
 0x198   :  { %v5241_v11 = vpop.eup %5240  ;;  %5260 = vpow2.f32 %v4815_v52  ;;  %v1146_v31 = vmul.f32 %v5239_v59, %v6722_v7  ;;  %v6761_v32 = vadd.f32 %v1144_v12, %v1136_v58  ;;  %v1123_v7 = vrot.slane %v1095_v62, %v6676_v38 }
 0x199   :  { %v5243_v15 = vpop.eup %5242  ;;  %5262 = vpow2.f32 %v4816_v55  ;;  %v1147_v34 = vmul.f32 %v5241_v11, %v6725_v13  ;;  %v6764_v35 = vadd.f32 %v1145_v21, %v1137_v61 }
 0x19a   :  { %v5245_v27 = vpop.eup %5244  ;;  %5264 = vpow2.f32 %v4817_v57  ;;  %v1148_v36 = vmul.f32 %v5243_v15, %v6728_v18  ;;  %v6767_v37 = vadd.f32 %v1146_v31, %v1138_v6  ;;  %v1125_v18 = vcombine.high %v1109_v10, %v1109_v10 }
 0x19b   :  { %v5247_v33 = vpop.eup %5246  ;;  %5266 = vpow2.f32 %v4818_v60  ;;  %v6769_v22 = vadd.f32 %v1147_v34, %v1139_v19  ;;  %v1127_v43 = vcombine.high %v1123_v7, %v1123_v7  ;;  %v1141_v45 = vmul.f32 %v5245_v27, %v1123_v7 }
 0x19c   :  { %v5249_v63 = vpop.eup %5248  ;;  %5268 = vpow2.f32 %v4819_v1  ;;  %v6772_v39 = vadd.f32 %v1148_v36, %v1140_v29  ;;  %v1142_v4 = vmul.f32 %v5247_v33, %v1125_v18 }
 0x19d   :  { %v5251_v2 = vpop.eup %5250  ;;  %5270 = vpow2.f32 %v4820_v17  ;;  %v1143_v8 = vmul.f32 %v5249_v63, %v1127_v43 }
 0x19e   :  { %v5253_v23 = vpop.eup %5252  ;;  %5272 = vtanh.f32 %v6761_v32  ;;  %v1149_v49 = vmul.f32 %v5251_v2, %v6733_v26 }
 0x19f   :  { %v5255_v13 = vpop.eup %5254  ;;  %5274 = vtanh.f32 %v6764_v35  ;;  %v1150_v52 = vmul.f32 %v5253_v23, %v6736_v28 }
 0x1a0   :  { %v5257_v40 = vpop.eup %5256  ;;  %5276 = vtanh.f32 %v6767_v37  ;;  %v1151_v54 = vmul.f32 %v5255_v13, %v6739_v30  ;;  %v6782_v55 = vadd.f32 %v1149_v49, %v1141_v45 }
 0x1a1   :  { %v5259_v41 = vpop.eup %5258  ;;  %v1054_v42 = vadd.f32 1.0, %v5257_v40  ;;  %5278 = vtanh.f32 %v6769_v22  ;;  %v6784_v57 = vadd.f32 %v1150_v52, %v1142_v4 }
 0x1a2   :  { %v5261_v24 = vpop.eup %5260  ;;  %v1055_v44 = vadd.f32 1.0, %v5259_v41  ;;  %5280 = vtanh.f32 %v6772_v39  ;;  %v6786_v26 = vadd.f32 %v1151_v54, %v1143_v8 }
 0x1a3   :  { %v5263_v3 = vpop.eup %5262  ;;  %v1056_v25 = vadd.f32 1.0, %v5261_v24  ;;  %5282 = vrcp.f32 %v1054_v42 }
 0x1a4   :  { %v5265_v46 = vpop.eup %5264  ;;  %v1057_v47 = vadd.f32 1.0, %v5263_v3  ;;  %5284 = vrcp.f32 %v1055_v44 }
 0x1a5   :  { %v5267_v48 = vpop.eup %5266  ;;  %v1058_v16 = vadd.f32 1.0, %v5265_v46  ;;  %5286 = vrcp.f32 %v1056_v25 }
 0x1a6   :  { %v5269_v50 = vpop.eup %5268  ;;  %v1059_v51 = vadd.f32 1.0, %v5267_v48  ;;  %5288 = vrcp.f32 %v1057_v47 }
 0x1a7   :  { %v5271_v9 = vpop.eup %5270  ;;  %v1060_v53 = vadd.f32 1.0, %v5269_v50  ;;  %5290 = vrcp.f32 %v1058_v16 }
 0x1a8   :  { %v5273_v5 = vpop.eup %5272  ;;  %v1061_v56 = vadd.f32 1.0, %v5271_v9  ;;  %5292 = vrcp.f32 %v1059_v51 }
 0x1a9   :  { %v5275_v10 = vpop.eup %5274  ;;  %5294 = vrcp.f32 %v1060_v53 }
 0x1aa   :  { %v5277_v58 = vpop.eup %5276  ;;  %5296 = vrcp.f32 %v1061_v56 }
 0x1ab   :  { %v5279_v59 = vpop.eup %5278  ;;  %5298 = vtanh.f32 %v6782_v55 }
 0x1ac   :  { %v5281_v28 = vpop.eup %5280  ;;  %5300 = vtanh.f32 %v6784_v57 }
 0x1ad   :  { %v5283_v30 = vpop.eup %5282  ;;  %5302 = vtanh.f32 %v6786_v26 }
 0x1ae   :  { %v5285_v60 = vpop.eup %5284  ;;  %v1168_v61 = vmul.f32 %v5283_v30, %v5273_v5  ;;  %v6804_v30 = vld [vmem:[#allocation10 + $0x24] ss:$16 sps:$4 sm:$0xff]  }
 0x1af   :  { %v5287_v62 = vpop.eup %5286  ;;  %v1169_v11 = vmul.f32 %v5285_v60, %v5275_v10  ;;  %v6807_v60 = vld [vmem:[#allocation10 + $0x2c] ss:$16 sps:$4 sm:$0xff]  }
 0x1b0   :  { %v5289_v1 = vpop.eup %5288  ;;  %v1170_v6 = vmul.f32 %v5287_v62, %v5277_v58  ;;  %v1192_v17 = vpack.c.bf16 %v1168_v61, %v1168_v61  ;;  %v6812_v61 = vld [vmem:[#allocation10 + $0x20] ss:$16 sps:$4 sm:$0xff]   ;;  %v6815_v62 = vld [vmem:[#allocation10 + $0x28] ss:$16 sps:$4 sm:$0xff]  }
 0x1b1   :  { %v5291_v12 = vpop.eup %5290  ;;  %v1171_v15 = vmul.f32 %v5289_v1, %v5279_v59  ;;  %v1193_v19 = vpack.c.bf16 %v1169_v11, %v1169_v11  ;;  %v6798_v59 = vld [vmem:[#allocation10] ss:$16 sps:$4 sm:$0xff]   ;;  %v6818_v11 = vld [vmem:[#allocation10 + $0x44] ss:$16 sps:$4 sm:$0xff]   ;;  %v6821_v1 = vld [vmem:[#allocation10 + $0x4c] ss:$16 sps:$4 sm:$0xff]  }
 0x1b2   :  { %v5293_v21 = vpop.eup %5292  ;;  %v1172_v27 = vmul.f32 %v5291_v12, %v5281_v28  ;;  %v1194_v29 = vpack.c.bf16 %v1170_v6, %v1170_v6  ;;  %v1208_v23 = vunpack.c.l.b16 %v1192_v17  ;;  %v6801_v28 = vld [vmem:[#allocation10 + $0x8] ss:$16 sps:$4 sm:$0xff]   ;;  %v6824_v6 = vld [vmem:[#allocation10 + $0x40] ss:$16 sps:$4 sm:$0xff]   ;;  %v6833_v17 = vld [vmem:[#allocation10 + $0x6c] ss:$16 sps:$4 sm:$0xff]  }
 0x1b3   :  { %v5295_v31 = vpop.eup %5294  ;;  %v1195_v33 = vpack.c.bf16 %v1171_v15, %v1171_v15  ;;  %v1209_v34 = vunpack.c.l.b16 %v1193_v19  ;;  %v6827_v12 = vld [vmem:[#allocation10 + $0x48] ss:$16 sps:$4 sm:$0xff]   ;;  %v6830_v15 = vld [vmem:[#allocation10 + $0x64] ss:$16 sps:$4 sm:$0xff]   ;;  %v6836_v19 = vld [vmem:[#allocation10 + $0x60] ss:$16 sps:$4 sm:$0xff]  }
 0x1b4   :  { %v5297_v63 = vpop.eup %5296  ;;  %v1196_v36 = vpack.c.bf16 %v1172_v27, %v1172_v27  ;;  %v1210_v2 = vunpack.c.l.b16 %v1194_v29  ;;  %v6842_v27 = vld [vmem:[#allocation10 + $0x84] ss:$16 sps:$4 sm:$0xff]   ;;  %v6845_v29 = vld [vmem:[#allocation10 + $0x8c] ss:$16 sps:$4 sm:$0xff]  }
 0x1b5   :  { %v5299_v7 = vpop.eup %5298  ;;  %v1211_v13 = vunpack.c.l.b16 %v1195_v33  ;;  %v1216_v40 = vrot.slane %v1209_v34, 7  ;;  %v6851_v33 = vld [vmem:[#allocation10 + $0x88] ss:$16 sps:$4 sm:$0xff]   ;;  %v6854_v34 = vld [vmem:[#allocation10 + $0xa4] ss:$16 sps:$4 sm:$0xff]  }
 0x1b6   :  { %v5301_v18 = vpop.eup %5300  ;;  %v1173_v41 = vmul.f32 %v5299_v7, %v5293_v21  ;;  %v1212_v42 = vunpack.c.l.b16 %v1196_v36  ;;  %v1219_v43 = vrot.slane %v1210_v2, 6  ;;  %v6839_v21 = vld [vmem:[#allocation10 + $0x68] ss:$16 sps:$4 sm:$0xff]   ;;  %v6860_v36 = vld [vmem:[#allocation10 + $0xa0] ss:$16 sps:$4 sm:$0xff]  }
 0x1b7   :  { %v5303_v24 = vpop.eup %5302  ;;  %v1174_v44 = vmul.f32 %v5301_v18, %v5295_v31  ;;  %v1218_v3 = vsel %vm1217_vm0, %v1216_v40, %v1208_v23  ;;  %v1222_v25 = vrot.slane %v1211_v13, 5  ;;  %v6848_v31 = vld [vmem:[#allocation10 + $0x80] ss:$16 sps:$4 sm:$0xff]   ;;  %v6863_v2 = vld [vmem:[#allocation10 + $0xa8] ss:$16 sps:$4 sm:$0xff]  }
 0x1b8   :  { %v1175_v45 = vmul.f32 %v5303_v24, %v5297_v63  ;;  %v1197_v46 = vpack.c.bf16 %v1173_v41, %v1173_v41  ;;  %v1221_v47 = vsel %vm1220_vm1, %v1219_v43, %v1218_v3  ;;  %v1225_v4 = vrot.slane %v1212_v42, 4  ;;  %v6857_v63 = vld [vmem:[#allocation10 + $0xac] ss:$16 sps:$4 sm:$0xff]   ;;  %8068 = vst [vmem:[#allocation19_spill] sm:$0xff] %v6863_v2  ;;  %v6866_v7 = vld [vmem:[#allocation10 + $0xc4] ss:$16 sps:$4 sm:$0xff]  }
 0x1b9   :  { %v1198_v48 = vpack.c.bf16 %v1174_v44, %v1174_v44  ;;  %v1224_v16 = vsel %vm1223_vm2, %v1222_v25, %v1221_v47  ;;  %8069 = vst [vmem:[#allocation20_spill] sm:$0xff] %v6866_v7  ;;  %v6869_v23 = vld [vmem:[#allocation10 + $0xcc] ss:$16 sps:$4 sm:$0xff]   ;;  %v6872_v13 = vld [vmem:[#allocation10 + $0xc0] ss:$16 sps:$4 sm:$0xff]  }
 0x1ba   :  { %v1199_v49 = vpack.c.bf16 %v1175_v45, %v1175_v45  ;;  %v1213_v8 = vunpack.c.l.b16 %v1197_v46  ;;  %v1227_v50 = vsel %vm1226_vm3, %v1225_v4, %v1224_v16  ;;  %8070 = vst [vmem:[#allocation21_spill] sm:$0xff] %v6869_v23  ;;  %8071 = vst [vmem:[#allocation22_spill] sm:$0xff] %v6872_v13  ;;  %v6875_v40 = vld [vmem:[#allocation10 + $0xc8] ss:$16 sps:$4 sm:$0xff]   ;;  %v6878_v18 = vld [vmem:[#allocation10 + $0xe4] ss:$16 sps:$4 sm:$0xff]  }
 0x1bb   :  { %v1214_v51 = vunpack.c.l.b16 %v1198_v48  ;;  %8072 = vst [vmem:[#allocation23_spill] sm:$0xff] %v6875_v40  ;;  %8073 = vst [vmem:[#allocation24_spill] sm:$0xff] %v6878_v18  ;;  %v6881_v41 = vld [vmem:[#allocation10 + $0xec] ss:$16 sps:$4 sm:$0xff]   ;;  %v6884_v42 = vld [vmem:[#allocation10 + $0xe0] ss:$16 sps:$4 sm:$0xff]  }
 0x1bc   :  { %v1215_v52 = vunpack.c.l.b16 %v1199_v49  ;;  %v1228_v9 = vrot.slane %v1213_v8, 3  ;;  %8074 = vst [vmem:[#allocation25_spill] sm:$0xff] %v6881_v41  ;;  %8075 = vst [vmem:[#allocation26_spill] sm:$0xff] %v6884_v42  ;;  %v6887_v43 = vld [vmem:[#allocation10 + $0xe8] ss:$16 sps:$4 sm:$0xff]  }
 0x1bd   :  { %v1231_v53 = vrot.slane %v1214_v51, 2  ;;  %8076 = vst [vmem:[#allocation27_spill] sm:$0xff] %v6887_v43  ;;  %v6890_v24 = vld [vmem:[#allocation10 + $0x4] ss:$16 sps:$4 sm:$0xff]   ;;  %v6893_v44 = vld [vmem:[#allocation10 + $0xc] ss:$16 sps:$4 sm:$0xff]  }
 0x1be   :  { %v1230_v54 = vsel %vm1229_vm4, %v1228_v9, %v1227_v50  ;;  %v1234_v5 = vrot.slane %v1215_v52, 1  ;;  %8077 = vst [vmem:[#allocation28_spill] sm:$0xff] %v6890_v24  ;;  %8078 = vst [vmem:[#allocation29_spill] sm:$0xff] %v6893_v44 }
 0x1bf   :  { %v1233_v56 = vsel %vm1232_vm5, %v1231_v53, %v1230_v54 }
 0x1c0   :  { %v1236_v10 = vsel %vm1235_vm6, %v1234_v5, %v1233_v56 }
 0x1c1   :  { %v1237_v58 = vpack.c.b16 %v1236_v10, %v1236_v10 }
 0x1c3   :  { %1272 = vmatmul.mubr.bf16.vlgmr.msra.gmra.mrb[20].mxu0 %v1237_v58  ;;  %1313 = vmatmul.mubr.bf16.vlgmr.msra.gmra.mrb[20].mxu1 %v1237_v58 }
 0x1c4   :  { %1714 = vmatpush1.bf16.msra.mxu0 %v6798_v59  ;;  %1755 = vmatpush1.bf16.msra.mxu1 %v6801_v28 }
 0x1c5   :  { %1715 = vmatprep.subr.bf16.mxu0 %v6804_v30  ;;  %1756 = vmatprep.subr.bf16.mxu1 %v6807_v60 }
 0x1c6   :  { %1745 = vmatprep.mubr.bf16.mxu0 %v8028_v0  ;;  %1786 = vmatprep.mubr.bf16.mxu1 %v8028_v0 }
 0x1c8   :  { %1716 = vmatpush1.bf16.msra.mxu0 %v6812_v61  ;;  %1757 = vmatpush1.bf16.msra.mxu1 %v6815_v62 }
 0x1c9   :  { %1717 = vmatprep.subr.bf16.mxu0 %v6818_v11  ;;  %1758 = vmatprep.subr.bf16.mxu1 %v6821_v1 }
 0x1cc   :  { %1718 = vmatpush1.bf16.msra.mxu0 %v6824_v6  ;;  %1759 = vmatpush1.bf16.msra.mxu1 %v6827_v12 }
 0x1cd   :  { %1719 = vmatprep.subr.bf16.mxu0 %v6830_v15  ;;  %1760 = vmatprep.subr.bf16.mxu1 %v6833_v17 }
 0x1d0   :  { %1720 = vmatpush1.bf16.msra.mxu0 %v6836_v19  ;;  %1761 = vmatpush1.bf16.msra.mxu1 %v6839_v21 }
 0x1d1   :  { %1721 = vmatprep.subr.bf16.mxu0 %v6842_v27  ;;  %1762 = vmatprep.subr.bf16.mxu1 %v6845_v29 }
 0x1d4   :  { %1722 = vmatpush1.bf16.msra.mxu0 %v6848_v31  ;;  %1763 = vmatpush1.bf16.msra.mxu1 %v6851_v33 }
 0x1d5   :  { %1723 = vmatprep.subr.bf16.mxu0 %v6854_v34  ;;  %1764 = vmatprep.subr.bf16.mxu1 %v6857_v63 }
 0x1d8   :  { %1724 = vmatpush1.bf16.msra.mxu0 %v6860_v36  ;;  %1765 = vmatpush1.bf16.msra.mxu1 %v6863_v2 }
 0x1d9   :  { %1725 = vmatprep.subr.bf16.mxu0 %v6866_v7  ;;  %1766 = vmatprep.subr.bf16.mxu1 %v6869_v23 }
 0x1dc   :  { %1726 = vmatpush1.bf16.msra.mxu0 %v6872_v13  ;;  %1767 = vmatpush1.bf16.msra.mxu1 %v6875_v40 }
 0x1dd   :  { %1727 = vmatprep.subr.bf16.mxu0 %v6878_v18  ;;  %1768 = vmatprep.subr.bf16.mxu1 %v6881_v41 }
 0x1e0   :  { %1728 = vmatpush1.bf16.msra.mxu0 %v6884_v42  ;;  %1769 = vmatpush1.bf16.msra.mxu1 %v6887_v43 }
 0x1e1   :  { %2187 = vmatprep.subr.bf16.mxu0 %v6890_v24  ;;  %2228 = vmatprep.subr.bf16.mxu1 %v6893_v44 }
 0x296   :  { %v1273_v3 = vpop.f32.mrb[20].mxu0  ;;  %v1314_v25 = vpop.f32.mrb[20].mxu1 }
 0x297   :  { %v1275_v45 = vpop.f32.mrb[21].mxu0  ;;  %v1316_v46 = vpop.f32.mrb[21].mxu1 }
 0x298   :  { %v1325_v47 = vcombine.low %v1273_v3, %v1275_v45  ;;  %v1326_v4 = vcombine.high %v1273_v3, %v1275_v45  ;;  %v1327_v48 = vcombine.low %v1314_v25, %v1316_v46  ;;  %v1328_v16 = vcombine.high %v1314_v25, %v1316_v46  ;;  %v1277_v49 = vpop.f32.mrb[22].mxu0  ;;  %v1318_v8 = vpop.f32.mrb[22].mxu1 }
 0x299   :  { %v1278_v50 = vpop.f32.mrb[23].mxu0  ;;  %v1319_v51 = vpop.f32.mrb[23].mxu1  ;;  %v1177_v49 = vld [vmem:[#allocation2 + $0x1] ss:$8 sm:$0xf] }
 0x29a   :  { %v1335_v52 = vrot.slane %v1325_v47, %v6676_v38  ;;  %v1342_v9 = vrot.slane %v1326_v4, %v6676_v38  ;;  %v1349_v53 = vrot.slane %v1327_v48, %v6676_v38  ;;  %v1356_v54 = vrot.slane %v1328_v16, %v6676_v38  ;;  %v1179_v47 = vld [vmem:[#allocation2 + $0x21] ss:$8 sm:$0xf] }
 0x29b   :  { %v1181_v8 = vld [vmem:[#allocation2 + $0x41] ss:$8 sm:$0xf] }
 0x29c   :  { %v1357_v5 = vcombine.low %v1335_v52, %v1349_v53  ;;  %v1358_v56 = vcombine.high %v1335_v52, %v1349_v53  ;;  %v1359_v10 = vcombine.low %v1342_v9, %v1356_v54  ;;  %v1360_v58 = vcombine.high %v1342_v9, %v1356_v54  ;;  %v1185_v4 = vld [vmem:[#allocation2 + $0x81] ss:$8 sm:$0xf] }
 0x29d   :  { %v1187_v52 = vld [vmem:[#allocation2 + $0xa1] ss:$8 sm:$0xf] }
 0x29e   :  { %v1367_v3 = vrot.slane %v1357_v5, %v6676_v38  ;;  %v1374_v25 = vrot.slane %v1359_v10, %v6676_v38  ;;  %v1381_v45 = vrot.slane %v1358_v56, %v6676_v38  ;;  %v1388_v46 = vrot.slane %v1360_v58, %v6676_v38  ;;  %v1189_v5 = vld [vmem:[#allocation2 + $0xc1] ss:$8 sm:$0xf] }
 0x29f   :  { %v1191_v56 = vld [vmem:[#allocation2 + $0xe1] ss:$8 sm:$0xf] }
 0x2a0   :  { %v1389_v50 = vcombine.high %v1367_v3, %v1367_v3  ;;  %v1390_v48 = vcombine.high %v1374_v25, %v1374_v25  ;;  %v1391_v51 = vcombine.high %v1381_v45, %v1381_v45  ;;  %v1392_v16 = vcombine.high %v1388_v46, %v1388_v46 }
 0x2a1   :  { %v6904_v53 = vadd.f32 %v1367_v3, %v1177_v49  ;;  %v6906_v9 = vadd.f32 %v1381_v45, %v1179_v47  ;;  %v6908_v54 = vadd.f32 %v1374_v25, %v1185_v4  ;;  %v6914_v14 = vadd.f32 %v1388_v46, %v1187_v52 }
 0x2a2   :  { %v6910_v10 = vadd.f32 %v1389_v50, %v1181_v8  ;;  %v6912_v58 = vadd.f32 %v1391_v51, %v1183_v20  ;;  %v6916_v0 = vadd.f32 %v1390_v48, %v1189_v5  ;;  %v6920_v3 = vadd.f32 %v1392_v16, %v1191_v56 }
 0x2a3   :  { %v4821_v38 = vmul.f32 -1.442695, %v6904_v53  ;;  %v4822_v44 = vmul.f32 -1.442695, %v6906_v9  ;;  %v4825_v49 = vmul.f32 -1.442695, %v6908_v54 }
 0x2a4   :  { %v4823_v45 = vmul.f32 -1.442695, %v6910_v10  ;;  %v4824_v25 = vmul.f32 -1.442695, %v6912_v58  ;;  %v1465_v20 = vrot.slane %v6904_v53, 1  ;;  %v1466_v47 = vrot.slane %v6906_v9, 1 }
 0x2a5   :  { %5304 = vpow2.f32 %v4821_v38  ;;  %v4826_v46 = vmul.f32 -1.442695, %v6914_v14  ;;  %v4827_v8 = vmul.f32 -1.442695, %v6916_v0  ;;  %v1467_v4 = vrot.slane %v6910_v10, 1 }
 0x2a6   :  { %5306 = vpow2.f32 %v4822_v44  ;;  %v4828_v50 = vmul.f32 -1.442695, %v6920_v3  ;;  %v1468_v48 = vrot.slane %v6912_v58, 1  ;;  %v1469_v38 = vrot.slane %v6908_v54, 1 }
 0x2a7   :  { %5308 = vpow2.f32 %v4823_v45  ;;  %v4829_v51 = vmul.f32 -1.442695, %v1465_v20  ;;  %v4830_v44 = vmul.f32 -1.442695, %v1466_v47  ;;  %v4831_v16 = vmul.f32 -1.442695, %v1467_v4 }
 0x2a8   :  { %5310 = vpow2.f32 %v4824_v25  ;;  %v4832_v52 = vmul.f32 -1.442695, %v1468_v48  ;;  %v4833_v5 = vmul.f32 -1.442695, %v1469_v38  ;;  %v1470_v20 = vrot.slane %v6914_v14, 1 }
 0x2a9   :  { %5312 = vpow2.f32 %v4825_v49  ;;  %v1472_v48 = vrot.slane %v6920_v3, 1  ;;  %v1560_v7 = vrot.slane %v6920_v3, 3 }
 0x2aa   :  { %5314 = vpow2.f32 %v4826_v46 }
 0x2ab   :  { %5316 = vpow2.f32 %v4827_v8  ;;  %v1471_v8 = vrot.slane %v6916_v0, 1 }
 0x2ac   :  { %5318 = vpow2.f32 %v4828_v50 }
 0x2ad   :  { %5320 = vpow2.f32 %v4829_v51 }
 0x2ae   :  { %5322 = vpow2.f32 %v4830_v44 }
 0x2af   :  { %v5305_v56 = vpop.eup %5304  ;;  %5324 = vpow2.f32 %v4831_v16 }
 0x2b0   :  { %v5307_v45 = vpop.eup %5306  ;;  %v1433_v25 = vadd.f32 1.0, %v5305_v56  ;;  %5326 = vpow2.f32 %v4832_v52  ;;  %v4835_v56 = vmul.f32 -1.442695, %v1471_v8 }
 0x2b1   :  { %v5309_v24 = vpop.eup %5308  ;;  %v1434_v43 = vadd.f32 1.0, %v5307_v45  ;;  %5328 = vpow2.f32 %v4833_v5 }
 0x2b2   :  { %v5311_v49 = vpop.eup %5310  ;;  %v1435_v42 = vadd.f32 1.0, %v5309_v24  ;;  %5330 = vrcp.f32 %v1433_v25  ;;  %v4834_v24 = vmul.f32 -1.442695, %v1470_v20 }
 0x2b3   :  { %v5313_v46 = vpop.eup %5312  ;;  %v1436_v47 = vadd.f32 1.0, %v5311_v49  ;;  %5332 = vrcp.f32 %v1434_v43  ;;  %v4836_v43 = vmul.f32 -1.442695, %v1472_v48  ;;  %v1529_v48 = vrot.slane %v6904_v53, 2 }
 0x2b4   :  { %v5315_v4 = vpop.eup %5314  ;;  %v1437_v50 = vadd.f32 1.0, %v5313_v46  ;;  %5334 = vrcp.f32 %v1435_v42 }
 0x2b5   :  { %v5317_v38 = vpop.eup %5316  ;;  %v1438_v51 = vadd.f32 1.0, %v5315_v4  ;;  %5336 = vrcp.f32 %v1436_v47 }
 0x2b6   :  { %v5319_v44 = vpop.eup %5318  ;;  %v1439_v16 = vadd.f32 1.0, %v5317_v38  ;;  %5338 = vrcp.f32 %v1437_v50 }
 0x2b7   :  { %v5321_v52 = vpop.eup %5320  ;;  %v1440_v5 = vadd.f32 1.0, %v5319_v44  ;;  %5340 = vrcp.f32 %v1438_v51  ;;  %v1530_v44 = vrot.slane %v6906_v9, 2 }
 0x2b8   :  { %v5323_v45 = vpop.eup %5322  ;;  %5342 = vrcp.f32 %v1439_v16  ;;  %v1505_v49 = vadd.f32 1.0, %v5321_v52 }
 0x2b9   :  { %v5325_v25 = vpop.eup %5324  ;;  %5344 = vrcp.f32 %v1440_v5  ;;  %v1506_v46 = vadd.f32 1.0, %v5323_v45 }
 0x2ba   :  { %v5327_v42 = vpop.eup %5326  ;;  %5346 = vpow2.f32 %v4834_v24  ;;  %v1507_v47 = vadd.f32 1.0, %v5325_v25  ;;  %v1531_v24 = vrot.slane %v6910_v10, 2 }
 0x2bb   :  { %v5329_v41 = vpop.eup %5328  ;;  %5348 = vpow2.f32 %v4835_v56  ;;  %v1508_v20 = vadd.f32 1.0, %v5327_v42  ;;  %v1533_v56 = vrot.slane %v6908_v54, 2  ;;  %v1553_v42 = vrot.slane %v6904_v53, 3 }
 0x2bc   :  { %v6936_v4 = vpop.eup %5330  ;;  %5350 = vpow2.f32 %v4836_v43  ;;  %v1509_v38 = vadd.f32 1.0, %v5329_v41  ;;  %v1532_v41 = vrot.slane %v6912_v58, 2  ;;  %v1556_v53 = vrot.slane %v6912_v58, 3 }
 0x2bd   :  { %v6938_v50 = vpop.eup %5332  ;;  %5352 = vrcp.f32 %v1505_v49 }
 0x2be   :  { %v6940_v8 = vpop.eup %5334  ;;  %5354 = vrcp.f32 %v1506_v46  ;;  %v4840_v58 = vmul.f32 -1.442695, %v1556_v53 }
 0x2bf   :  { %v6943_v51 = vpop.eup %5336  ;;  %5356 = vrcp.f32 %v1507_v47 }
 0x2c0   :  { %v6946_v16 = vpop.eup %5338  ;;  %5358 = vrcp.f32 %v1508_v20  ;;  %v1534_v20 = vrot.slane %v6914_v14, 2 }
 0x2c1   :  { %v6949_v52 = vpop.eup %5340  ;;  %5360 = vrcp.f32 %v1509_v38  ;;  %v1554_v38 = vrot.slane %v6906_v9, 3  ;;  %v1558_v9 = vrot.slane %v6914_v14, 3 }
 0x2c2   :  { %v6952_v5 = vpop.eup %5342  ;;  %5362 = vtanh.f32 %v1529_v48  ;;  %v1535_v48 = vrot.slane %v6916_v0, 2 }
 0x2c3   :  { %v6955_v45 = vpop.eup %5344  ;;  %5364 = vtanh.f32 %v1530_v44  ;;  %v1555_v44 = vrot.slane %v6910_v10, 3  ;;  %v1559_v10 = vrot.slane %v6916_v0, 3 }
 0x2c4   :  { %v5347_v43 = vpop.eup %5346  ;;  %5366 = vtanh.f32 %v1531_v24 }
 0x2c5   :  { %v5349_v25 = vpop.eup %5348  ;;  %v1510_v49 = vadd.f32 1.0, %v5347_v43  ;;  %5368 = vtanh.f32 %v1532_v41  ;;  %v1536_v41 = vrot.slane %v6920_v3, 2  ;;  %v4839_v23 = vmul.f32 -1.442695, %v1555_v44 }
 0x2c6   :  { %v5351_v46 = vpop.eup %5350  ;;  %v1511_v47 = vadd.f32 1.0, %v5349_v25  ;;  %5370 = vtanh.f32 %v1533_v56  ;;  %v1557_v25 = vrot.slane %v6908_v54, 3  ;;  %v4837_v56 = vmul.f32 -1.442695, %v1553_v42 }
 0x2c7   :  { %v5353_v18 = vpop.eup %5352  ;;  %v1512_v40 = vadd.f32 1.0, %v5351_v46  ;;  %5372 = vrcp.f32 %v1510_v49  ;;  %v4838_v49 = vmul.f32 -1.442695, %v1554_v38  ;;  %v4844_v3 = vmul.f32 -1.442695, %v1560_v7 }
 0x2c8   :  { %v5355_v24 = vpop.eup %5354  ;;  %5374 = vrcp.f32 %v1511_v47  ;;  %v1617_v54 = vmul.f32 %v5353_v18, %v6761_v32 }
 0x2c9   :  { %v5357_v43 = vpop.eup %5356  ;;  %5376 = vrcp.f32 %v1512_v40  ;;  %v4841_v40 = vmul.f32 -1.442695, %v1557_v25  ;;  %v1618_v14 = vmul.f32 %v5355_v24, %v6764_v35 }
 0x2ca   :  { %v5359_v13 = vpop.eup %5358  ;;  %5378 = vtanh.f32 %v1534_v20  ;;  %v4842_v20 = vmul.f32 -1.442695, %v1558_v9  ;;  %v1619_v0 = vmul.f32 %v5357_v43, %v6767_v37 }
 0x2cb   :  { %v5361_v46 = vpop.eup %5360  ;;  %5380 = vtanh.f32 %v1535_v48  ;;  %v4843_v48 = vmul.f32 -1.442695, %v1559_v10  ;;  %v1620_v53 = vmul.f32 %v5359_v13, %v6769_v22 }
 0x2cc   :  { %v5363_v47 = vpop.eup %5362  ;;  %5382 = vtanh.f32 %v1536_v41  ;;  %v1621_v18 = vmul.f32 %v5361_v46, %v6772_v39 }
 0x2cd   :  { %v5365_v2 = vpop.eup %5364  ;;  %5384 = vpow2.f32 %v4837_v56  ;;  %v1625_v44 = vmul.f32 %v5363_v47, %v6936_v4 }
 0x2ce   :  { %v5367_v42 = vpop.eup %5366  ;;  %5386 = vpow2.f32 %v4838_v49  ;;  %v1626_v25 = vmul.f32 %v5365_v2, %v6938_v50 }
 0x2cf   :  { %v5369_v38 = vpop.eup %5368  ;;  %5388 = vpow2.f32 %v4839_v23  ;;  %v1627_v35 = vmul.f32 %v5367_v42, %v6940_v8  ;;  %v6976_v24 = vadd.f32 %v1625_v44, %v1617_v54 }
 0x2d0   :  { %v5371_v41 = vpop.eup %5370  ;;  %5390 = vpow2.f32 %v4840_v58  ;;  %v1628_v37 = vmul.f32 %v5369_v38, %v6943_v51  ;;  %v6979_v4 = vadd.f32 %v1626_v25, %v1618_v14 }
 0x2d1   :  { %v5373_v32 = vpop.eup %5372  ;;  %5392 = vpow2.f32 %v4841_v40  ;;  %v1629_v22 = vmul.f32 %v5371_v41, %v6946_v16  ;;  %v6982_v7 = vadd.f32 %v1627_v35, %v1619_v0 }
 0x2d2   :  { %v5375_v23 = vpop.eup %5374  ;;  %5394 = vpow2.f32 %v4842_v20  ;;  %v6984_v13 = vadd.f32 %v1628_v37, %v1620_v53  ;;  %v1622_v47 = vmul.f32 %v5373_v32, %v6782_v55 }
 0x2d3   :  { %v5377_v43 = vpop.eup %5376  ;;  %5396 = vpow2.f32 %v4843_v48  ;;  %v6986_v50 = vadd.f32 %v1629_v22, %v1621_v18  ;;  %v1623_v54 = vmul.f32 %v5375_v23, %v6784_v57 }
 0x2d4   :  { %v5379_v2 = vpop.eup %5378  ;;  %5398 = vpow2.f32 %v4844_v3  ;;  %v1624_v38 = vmul.f32 %v5377_v43, %v6786_v26 }
 0x2d5   :  { %v5381_v39 = vpop.eup %5380  ;;  %5400 = vtanh.f32 %v6976_v24  ;;  %v1630_v14 = vmul.f32 %v5379_v2, %v6949_v52 }
 0x2d6   :  { %v5383_v8 = vpop.eup %5382  ;;  %5402 = vtanh.f32 %v6979_v4  ;;  %v1631_v44 = vmul.f32 %v5381_v39, %v6952_v5 }
 0x2d7   :  { %v5385_v51 = vpop.eup %5384  ;;  %5404 = vtanh.f32 %v6982_v7  ;;  %v1632_v55 = vmul.f32 %v5383_v8, %v6955_v45  ;;  %v6999_v53 = vadd.f32 %v1630_v14, %v1622_v47 }
 0x2d8   :  { %v5387_v56 = vpop.eup %5386  ;;  %v1593_v9 = vadd.f32 1.0, %v5385_v51  ;;  %5406 = vtanh.f32 %v6984_v13  ;;  %v7001_v32 = vadd.f32 %v1631_v44, %v1623_v54 }
 0x2d9   :  { %v5389_v16 = vpop.eup %5388  ;;  %v1594_v49 = vadd.f32 1.0, %v5387_v56  ;;  %5408 = vtanh.f32 %v6986_v50  ;;  %v7003_v26 = vadd.f32 %v1632_v55, %v1624_v38 }
 0x2da   :  { %v5391_v46 = vpop.eup %5390  ;;  %v1595_v10 = vadd.f32 1.0, %v5389_v16  ;;  %5410 = vrcp.f32 %v1593_v9 }
 0x2db   :  { %v5393_v58 = vpop.eup %5392  ;;  %v1596_v40 = vadd.f32 1.0, %v5391_v46  ;;  %5412 = vrcp.f32 %v1594_v49 }
 0x2dc   :  { %v5395_v42 = vpop.eup %5394  ;;  %v1597_v20 = vadd.f32 1.0, %v5393_v58  ;;  %5414 = vrcp.f32 %v1595_v10 }
 0x2dd   :  { %v5397_v48 = vpop.eup %5396  ;;  %v1598_v0 = vadd.f32 1.0, %v5395_v42  ;;  %5416 = vrcp.f32 %v1596_v40 }
 0x2de   :  { %v5399_v41 = vpop.eup %5398  ;;  %v1599_v3 = vadd.f32 1.0, %v5397_v48  ;;  %5418 = vrcp.f32 %v1597_v20 }
 0x2df   :  { %v5401_v57 = vpop.eup %5400  ;;  %v1600_v25 = vadd.f32 1.0, %v5399_v41  ;;  %5420 = vrcp.f32 %v1598_v0 }
 0x2e0   :  { %v5403_v52 = vpop.eup %5402  ;;  %5422 = vrcp.f32 %v1599_v3 }
 0x2e1   :  { %v5405_v18 = vpop.eup %5404  ;;  %5424 = vrcp.f32 %v1600_v25 }
 0x2e2   :  { %v5407_v35 = vpop.eup %5406  ;;  %5426 = vtanh.f32 %v6999_v53 }
 0x2e3   :  { %v5409_v5 = vpop.eup %5408  ;;  %5428 = vtanh.f32 %v7001_v32 }
 0x2e4   :  { %v5411_v45 = vpop.eup %5410  ;;  %5430 = vtanh.f32 %v7003_v26 }
 0x2e5   :  { %v5413_v23 = vpop.eup %5412  ;;  %v1649_v37 = vmul.f32 %v5411_v45, %v5401_v57 }
 0x2e6   :  { %v5415_v43 = vpop.eup %5414  ;;  %v1650_v22 = vmul.f32 %v5413_v23, %v5403_v52 }
 0x2e7   :  { %v5417_v2 = vpop.eup %5416  ;;  %v1651_v39 = vmul.f32 %v5415_v43, %v5405_v18  ;;  %v1673_v56 = vpack.c.bf16 %v1649_v37, %v1649_v37 }
 0x2e8   :  { %v5419_v8 = vpop.eup %5418  ;;  %v1652_v51 = vmul.f32 %v5417_v2, %v5407_v35  ;;  %v1674_v9 = vpack.c.bf16 %v1650_v22, %v1650_v22 }
 0x2e9   :  { %v5421_v16 = vpop.eup %5420  ;;  %v1653_v49 = vmul.f32 %v5419_v8, %v5409_v5  ;;  %v1675_v46 = vpack.c.bf16 %v1651_v39, %v1651_v39  ;;  %v1689_v14 = vunpack.c.l.b16 %v1673_v56 }
 0x2ea   :  { %v5423_v10 = vpop.eup %5422  ;;  %v1676_v47 = vpack.c.bf16 %v1652_v51, %v1652_v51  ;;  %v1690_v58 = vunpack.c.l.b16 %v1674_v9 }
 0x2eb   :  { %v5425_v40 = vpop.eup %5424  ;;  %v1677_v54 = vpack.c.bf16 %v1653_v49, %v1653_v49  ;;  %v1691_v42 = vunpack.c.l.b16 %v1675_v46 }
 0x2ec   :  { %v5427_v20 = vpop.eup %5426  ;;  %v1692_v38 = vunpack.c.l.b16 %v1676_v47  ;;  %v1697_v48 = vrot.slane %v1690_v58, 7  ;;  %v8079_v47 = vmov 0  }
 0x2ed   :  { %v5429_v0 = vpop.eup %5428  ;;  %v1654_v44 = vmul.f32 %v5427_v20, %v5421_v16  ;;  %v1693_v41 = vunpack.c.l.b16 %v1677_v54  ;;  %v1699_v3 = vrot.slane %v1691_v42, 6  ;;  %v8091_v54 = vld [vmem:[#allocation18_spill] sm:$0xff] }
 0x2ee   :  { %v5431_v55 = vpop.eup %5430  ;;  %v1655_v57 = vmul.f32 %v5429_v0, %v5423_v10  ;;  %v1698_v25 = vsel %vm1217_vm0, %v1697_v48, %v1689_v14  ;;  %v1701_v52 = vrot.slane %v1692_v38, 5 }
 0x2ef   :  { %v1656_v18 = vmul.f32 %v5431_v55, %v5425_v40  ;;  %v1678_v35 = vpack.c.bf16 %v1654_v44, %v1654_v44  ;;  %v1700_v5 = vsel %vm1220_vm1, %v1699_v3, %v1698_v25  ;;  %v1703_v45 = vrot.slane %v1693_v41, 4 }
 0x2f0   :  { %v1679_v23 = vpack.c.bf16 %v1655_v57, %v1655_v57  ;;  %v1702_v37 = vsel %vm1223_vm2, %v1701_v52, %v1700_v5  ;;  %v1658_v52 = vld [vmem:[#allocation2 + $0x2] ss:$8 sm:$0xf] }
 0x2f1   :  { %v1680_v43 = vpack.c.bf16 %v1656_v18, %v1656_v18  ;;  %v1694_v22 = vunpack.c.l.b16 %v1678_v35  ;;  %v1704_v2 = vsel %vm1226_vm3, %v1703_v45, %v1702_v37  ;;  %v1660_v18 = vld [vmem:[#allocation2 + $0x22] ss:$8 sm:$0xf] }
 0x2f2   :  { %v1695_v39 = vunpack.c.l.b16 %v1679_v23  ;;  %v1662_v35 = vld [vmem:[#allocation2 + $0x42] ss:$8 sm:$0xf] }
 0x2f3   :  { %v1696_v8 = vunpack.c.l.b16 %v1680_v43  ;;  %v1705_v51 = vrot.slane %v1694_v22, 3  ;;  %v1666_v5 = vld [vmem:[#allocation2 + $0x82] ss:$8 sm:$0xf] }
 0x2f4   :  { %v1707_v56 = vrot.slane %v1695_v39, 2  ;;  %v1664_v22 = vld [vmem:[#allocation2 + $0x62] ss:$8 sm:$0xf] }
 0x2f5   :  { %v1706_v9 = vsel %vm1229_vm4, %v1705_v51, %v1704_v2  ;;  %v1709_v16 = vrot.slane %v1696_v8, 1  ;;  %v1668_v2 = vld [vmem:[#allocation2 + $0xa2] ss:$8 sm:$0xf] }
 0x2f6   :  { %v1708_v49 = vsel %vm1232_vm5, %v1707_v56, %v1706_v9  ;;  %v1670_v56 = vld [vmem:[#allocation2 + $0xc2] ss:$8 sm:$0xf] }
 0x2f7   :  { %v1710_v46 = vsel %vm1235_vm6, %v1709_v16, %v1708_v49  ;;  %v1672_v9 = vld [vmem:[#allocation2 + $0xe2] ss:$8 sm:$0xf] }
 0x2f8   :  { %v1711_v10 = vpack.c.b16 %v1710_v46, %v1710_v46 }
 0x2fa   :  { %1746 = vmatmul.mubr.bf16.vlgmr.msra.gmra.mrb[24].mxu0 %v1711_v10  ;;  %1787 = vmatmul.mubr.bf16.vlgmr.msra.gmra.mrb[24].mxu1 %v1711_v10 }
 0x2fb   :  { %2188 = vmatpush1.bf16.msra.mxu0 %v6798_v59  ;;  %2229 = vmatpush1.bf16.msra.mxu1 %v6801_v28  ;;  %v8080_v59 = vld [vmem:[#allocation19_spill] sm:$0xff]  ;;  %v8081_v28 = vld [vmem:[#allocation20_spill] sm:$0xff] }
 0x2fc   :  { %2189 = vmatprep.subr.bf16.mxu0 %v6804_v30  ;;  %2230 = vmatprep.subr.bf16.mxu1 %v6807_v60  ;;  %v8082_v30 = vld [vmem:[#allocation21_spill] sm:$0xff]  ;;  %v8083_v60 = vld [vmem:[#allocation22_spill] sm:$0xff] }
 0x2fd   :  { %2219 = vmatprep.mubr.bf16.mxu0 %v8079_v47  ;;  %2260 = vmatprep.mubr.bf16.mxu1 %v8079_v47 }
 0x2ff   :  { %2190 = vmatpush1.bf16.msra.mxu0 %v6812_v61  ;;  %2231 = vmatpush1.bf16.msra.mxu1 %v6815_v62  ;;  %v8084_v61 = vld [vmem:[#allocation23_spill] sm:$0xff]  ;;  %v8085_v62 = vld [vmem:[#allocation24_spill] sm:$0xff] }
 0x300   :  { %2191 = vmatprep.subr.bf16.mxu0 %v6818_v11  ;;  %2232 = vmatprep.subr.bf16.mxu1 %v6821_v1  ;;  %v8086_v11 = vld [vmem:[#allocation25_spill] sm:$0xff]  ;;  %v8087_v1 = vld [vmem:[#allocation26_spill] sm:$0xff] }
 0x303   :  { %2192 = vmatpush1.bf16.msra.mxu0 %v6824_v6  ;;  %2233 = vmatpush1.bf16.msra.mxu1 %v6827_v12  ;;  %v8088_v6 = vld [vmem:[#allocation27_spill] sm:$0xff]  ;;  %v8089_v12 = vld [vmem:[#allocation28_spill] sm:$0xff] }
 0x304   :  { %2193 = vmatprep.subr.bf16.mxu0 %v6830_v15  ;;  %2234 = vmatprep.subr.bf16.mxu1 %v6833_v17  ;;  %v8090_v15 = vld [vmem:[#allocation29_spill] sm:$0xff] }
 0x307   :  { %2194 = vmatpush1.bf16.msra.mxu0 %v6836_v19  ;;  %2235 = vmatpush1.bf16.msra.mxu1 %v6839_v21 }
 0x308   :  { %2195 = vmatprep.subr.bf16.mxu0 %v6842_v27  ;;  %2236 = vmatprep.subr.bf16.mxu1 %v6845_v29 }
 0x30b   :  { %2196 = vmatpush1.bf16.msra.mxu0 %v6848_v31  ;;  %2237 = vmatpush1.bf16.msra.mxu1 %v6851_v33 }
 0x30c   :  { %2197 = vmatprep.subr.bf16.mxu0 %v6854_v34  ;;  %2238 = vmatprep.subr.bf16.mxu1 %v6857_v63 }
 0x30f   :  { %2198 = vmatpush1.bf16.msra.mxu0 %v6860_v36  ;;  %2239 = vmatpush1.bf16.msra.mxu1 %v8080_v59 }
 0x310   :  { %2199 = vmatprep.subr.bf16.mxu0 %v8081_v28  ;;  %2240 = vmatprep.subr.bf16.mxu1 %v8082_v30 }
 0x313   :  { %2200 = vmatpush1.bf16.msra.mxu0 %v8083_v60  ;;  %2241 = vmatpush1.bf16.msra.mxu1 %v8084_v61 }
 0x314   :  { %2201 = vmatprep.subr.bf16.mxu0 %v8085_v62  ;;  %2242 = vmatprep.subr.bf16.mxu1 %v8086_v11 }
 0x317   :  { %2202 = vmatpush1.bf16.msra.mxu0 %v8087_v1  ;;  %2243 = vmatpush1.bf16.msra.mxu1 %v8088_v6 }
 0x318   :  { %2661 = vmatprep.subr.bf16.mxu0 %v8089_v12  ;;  %2702 = vmatprep.subr.bf16.mxu1 %v8090_v15 }
 0x3cd   :  { %v1747_v17 = vpop.f32.mrb[24].mxu0  ;;  %v1788_v19 = vpop.f32.mrb[24].mxu1 }
 0x3ce   :  { %v1749_v21 = vpop.f32.mrb[25].mxu0  ;;  %v1790_v27 = vpop.f32.mrb[25].mxu1 }
 0x3cf   :  { %v1799_v29 = vcombine.low %v1747_v17, %v1749_v21  ;;  %v1800_v31 = vcombine.high %v1747_v17, %v1749_v21  ;;  %v1801_v33 = vcombine.low %v1788_v19, %v1790_v27  ;;  %v1802_v34 = vcombine.high %v1788_v19, %v1790_v27  ;;  %v1751_v63 = vpop.f32.mrb[26].mxu0  ;;  %v1792_v36 = vpop.f32.mrb[26].mxu1 }
 0x3d0   :  { %v1752_v58 = vpop.f32.mrb[27].mxu0  ;;  %v1793_v40 = vpop.f32.mrb[27].mxu1 }
 0x3d1   :  { %v1809_v42 = vrot.slane %v1799_v29, %v8091_v54  ;;  %v1816_v20 = vrot.slane %v1800_v31, %v8091_v54  ;;  %v1823_v14 = vrot.slane %v1801_v33, %v8091_v54  ;;  %v1830_v38 = vrot.slane %v1802_v34, %v8091_v54 }
 0x3d3   :  { %v1831_v48 = vcombine.low %v1809_v42, %v1823_v14  ;;  %v1832_v0 = vcombine.high %v1809_v42, %v1823_v14  ;;  %v1833_v44 = vcombine.low %v1816_v20, %v1830_v38  ;;  %v1834_v41 = vcombine.high %v1816_v20, %v1830_v38 }
 0x3d5   :  { %v1841_v3 = vrot.slane %v1831_v48, %v8091_v54  ;;  %v1848_v55 = vrot.slane %v1833_v44, %v8091_v54  ;;  %v1855_v57 = vrot.slane %v1832_v0, %v8091_v54  ;;  %v1862_v25 = vrot.slane %v1834_v41, %v8091_v54 }
 0x3d7   :  { %v1863_v45 = vcombine.high %v1841_v3, %v1841_v3  ;;  %v1864_v23 = vcombine.high %v1848_v55, %v1848_v55  ;;  %v1865_v37 = vcombine.high %v1855_v57, %v1855_v57  ;;  %v1866_v43 = vcombine.high %v1862_v25, %v1862_v25 }
 0x3d8   :  { %v7057_v39 = vadd.f32 %v1841_v3, %v1658_v52  ;;  %v7059_v8 = vadd.f32 %v1855_v57, %v1660_v18  ;;  %v7061_v51 = vadd.f32 %v1848_v55, %v1666_v5  ;;  %v7067_v46 = vadd.f32 %v1862_v25, %v1668_v2 }
 0x3d9   :  { %v7063_v16 = vadd.f32 %v1863_v45, %v1662_v35  ;;  %v7065_v49 = vadd.f32 %v1865_v37, %v1664_v22  ;;  %v7069_v10 = vadd.f32 %v1864_v23, %v1670_v56  ;;  %v7073_v30 = vadd.f32 %v1866_v43, %v1672_v9 }
 0x3da   :  { %v4845_v59 = vmul.f32 -1.442695, %v7057_v39  ;;  %v4846_v28 = vmul.f32 -1.442695, %v7059_v8  ;;  %v4849_v62 = vmul.f32 -1.442695, %v7061_v51 }
 0x3db   :  { %v4847_v60 = vmul.f32 -1.442695, %v7063_v16  ;;  %v4848_v61 = vmul.f32 -1.442695, %v7065_v49  ;;  %v1939_v11 = vrot.slane %v7057_v39, 1  ;;  %v1940_v6 = vrot.slane %v7059_v8, 1 }
 0x3dc   :  { %5432 = vpow2.f32 %v4845_v59  ;;  %v4850_v1 = vmul.f32 -1.442695, %v7067_v46  ;;  %v4851_v12 = vmul.f32 -1.442695, %v7069_v10  ;;  %v1941_v15 = vrot.slane %v7063_v16, 1 }
 0x3dd   :  { %5434 = vpow2.f32 %v4846_v28  ;;  %v4852_v17 = vmul.f32 -1.442695, %v7073_v30  ;;  %v1942_v19 = vrot.slane %v7065_v49, 1  ;;  %v1943_v21 = vrot.slane %v7061_v51, 1 }
 0x3de   :  { %5436 = vpow2.f32 %v4847_v60  ;;  %v4853_v27 = vmul.f32 -1.442695, %v1939_v11  ;;  %v4854_v29 = vmul.f32 -1.442695, %v1940_v6  ;;  %v4855_v31 = vmul.f32 -1.442695, %v1941_v15 }
 0x3df   :  { %5438 = vpow2.f32 %v4848_v61  ;;  %v4856_v33 = vmul.f32 -1.442695, %v1942_v19  ;;  %v4857_v34 = vmul.f32 -1.442695, %v1943_v21  ;;  %v1944_v38 = vrot.slane %v7067_v46, 1 }
 0x3e0   :  { %5440 = vpow2.f32 %v4849_v62  ;;  %v1945_v44 = vrot.slane %v7069_v10, 1  ;;  %v1946_v55 = vrot.slane %v7073_v30, 1  ;;  %v2003_v6 = vrot.slane %v7057_v39, 2 }
 0x3e1   :  { %5442 = vpow2.f32 %v4850_v1  ;;  %v4858_v35 = vmul.f32 -1.442695, %v1944_v38  ;;  %v2004_v15 = vrot.slane %v7059_v8, 2  ;;  %v2005_v19 = vrot.slane %v7063_v16, 2 }
 0x3e2   :  { %5444 = vpow2.f32 %v4851_v12  ;;  %v4859_v23 = vmul.f32 -1.442695, %v1945_v44  ;;  %v4860_v43 = vmul.f32 -1.442695, %v1946_v55  ;;  %v2029_v44 = vrot.slane %v7063_v16, 3 }
 0x3e3   :  { %5446 = vpow2.f32 %v4852_v17  ;;  %v2033_v16 = vrot.slane %v7069_v10, 3 }
 0x3e4   :  { %5448 = vpow2.f32 %v4853_v27  ;;  %v2006_v27 = vrot.slane %v7065_v49, 2 }
 0x3e5   :  { %5450 = vpow2.f32 %v4854_v29 }
 0x3e6   :  { %v5433_v63 = vpop.eup %5432  ;;  %5452 = vpow2.f32 %v4855_v31  ;;  %v2007_v31 = vrot.slane %v7061_v51, 2 }
 0x3e7   :  { %v5435_v36 = vpop.eup %5434  ;;  %v1907_v58 = vadd.f32 1.0, %v5433_v63  ;;  %5454 = vpow2.f32 %v4856_v33 }
 0x3e8   :  { %v5437_v40 = vpop.eup %5436  ;;  %v1908_v42 = vadd.f32 1.0, %v5435_v36  ;;  %5456 = vpow2.f32 %v4857_v34 }
 0x3e9   :  { %v5439_v20 = vpop.eup %5438  ;;  %v1909_v14 = vadd.f32 1.0, %v5437_v40  ;;  %5458 = vrcp.f32 %v1907_v58  ;;  %v2027_v58 = vrot.slane %v7057_v39, 3  ;;  %v2030_v39 = vrot.slane %v7065_v49, 3 }
 0x3ea   :  { %v5441_v48 = vpop.eup %5440  ;;  %v1910_v0 = vadd.f32 1.0, %v5439_v20  ;;  %5460 = vrcp.f32 %v1908_v42  ;;  %v2008_v20 = vrot.slane %v7067_v46, 2 }
 0x3eb   :  { %v5443_v41 = vpop.eup %5442  ;;  %v1911_v3 = vadd.f32 1.0, %v5441_v48  ;;  %5462 = vrcp.f32 %v1909_v14  ;;  %v2028_v14 = vrot.slane %v7059_v8, 3  ;;  %v2032_v8 = vrot.slane %v7067_v46, 3 }
 0x3ec   :  { %v5445_v57 = vpop.eup %5444  ;;  %v1912_v25 = vadd.f32 1.0, %v5443_v41  ;;  %5464 = vrcp.f32 %v1910_v0  ;;  %v2009_v0 = vrot.slane %v7069_v10, 2  ;;  %v4864_v49 = vmul.f32 -1.442695, %v2030_v39 }
 0x3ed   :  { %v5447_v52 = vpop.eup %5446  ;;  %v1913_v18 = vadd.f32 1.0, %v5445_v57  ;;  %5466 = vrcp.f32 %v1911_v3  ;;  %v2010_v3 = vrot.slane %v7073_v30, 2  ;;  %v2031_v57 = vrot.slane %v7061_v51, 3 }
 0x3ee   :  { %v5449_v5 = vpop.eup %5448  ;;  %v1914_v45 = vadd.f32 1.0, %v5447_v52  ;;  %5468 = vrcp.f32 %v1912_v25  ;;  %v4861_v25 = vmul.f32 -1.442695, %v2027_v58 }
 0x3ef   :  { %v5451_v37 = vpop.eup %5450  ;;  %5470 = vrcp.f32 %v1913_v18  ;;  %v1979_v2 = vadd.f32 1.0, %v5449_v5  ;;  %v4862_v18 = vmul.f32 -1.442695, %v2028_v14  ;;  %v4863_v5 = vmul.f32 -1.442695, %v2029_v44 }
 0x3f0   :  { %v5453_v22 = vpop.eup %5452  ;;  %5472 = vrcp.f32 %v1914_v45  ;;  %v1980_v9 = vadd.f32 1.0, %v5451_v37 }
 0x3f1   :  { %v5455_v56 = vpop.eup %5454  ;;  %5474 = vpow2.f32 %v4858_v35  ;;  %v1981_v28 = vadd.f32 1.0, %v5453_v22 }
 0x3f2   :  { %v5457_v59 = vpop.eup %5456  ;;  %5476 = vpow2.f32 %v4859_v23  ;;  %v1982_v61 = vadd.f32 1.0, %v5455_v56  ;;  %v2034_v23 = vrot.slane %v7073_v30, 3 }
 0x3f3   :  { %v7089_v60 = vpop.eup %5458  ;;  %5478 = vpow2.f32 %v4860_v43  ;;  %v1983_v11 = vadd.f32 1.0, %v5457_v59  ;;  %v4865_v43 = vmul.f32 -1.442695, %v2031_v57 }
 0x3f4   :  { %v7091_v62 = vpop.eup %5460  ;;  %5480 = vrcp.f32 %v1979_v2  ;;  %v4866_v2 = vmul.f32 -1.442695, %v2032_v8  ;;  %v4868_v30 = vmul.f32 -1.442695, %v2034_v23 }
 0x3f5   :  { %v7093_v1 = vpop.eup %5462  ;;  %5482 = vrcp.f32 %v1980_v9  ;;  %v4867_v9 = vmul.f32 -1.442695, %v2033_v16 }
 0x3f6   :  { %v7096_v12 = vpop.eup %5464  ;;  %5484 = vrcp.f32 %v1981_v28 }
 0x3f7   :  { %v7099_v17 = vpop.eup %5466  ;;  %5486 = vrcp.f32 %v1982_v61 }
 0x3f8   :  { %v7102_v21 = vpop.eup %5468  ;;  %5488 = vrcp.f32 %v1983_v11 }
 0x3f9   :  { %v7105_v29 = vpop.eup %5470  ;;  %5490 = vtanh.f32 %v2003_v6 }
 0x3fa   :  { %v7108_v33 = vpop.eup %5472  ;;  %5492 = vtanh.f32 %v2004_v15 }
 0x3fb   :  { %v5475_v34 = vpop.eup %5474  ;;  %5494 = vtanh.f32 %v2005_v19 }
 0x3fc   :  { %v5477_v63 = vpop.eup %5476  ;;  %v1984_v36 = vadd.f32 1.0, %v5475_v34  ;;  %5496 = vtanh.f32 %v2006_v27 }
 0x3fd   :  { %v5479_v40 = vpop.eup %5478  ;;  %v1985_v42 = vadd.f32 1.0, %v5477_v63  ;;  %5498 = vtanh.f32 %v2007_v31 }
 0x3fe   :  { %v5481_v38 = vpop.eup %5480  ;;  %v1986_v48 = vadd.f32 1.0, %v5479_v40  ;;  %5500 = vrcp.f32 %v1984_v36 }
 0x3ff   :  { %v5483_v41 = vpop.eup %5482  ;;  %5502 = vrcp.f32 %v1985_v42  ;;  %v2091_v51 = vmul.f32 %v5481_v38, %v6976_v24 }
 0x400   :  { %v5485_v55 = vpop.eup %5484  ;;  %5504 = vrcp.f32 %v1986_v48  ;;  %v2092_v46 = vmul.f32 %v5483_v41, %v6979_v4 }
 0x401   :  { %v5487_v52 = vpop.eup %5486  ;;  %5506 = vtanh.f32 %v2008_v20  ;;  %v2093_v10 = vmul.f32 %v5485_v55, %v6982_v7 }
 0x402   :  { %v5489_v35 = vpop.eup %5488  ;;  %5508 = vtanh.f32 %v2009_v0  ;;  %v2094_v61 = vmul.f32 %v5487_v52, %v6984_v13 }
 0x403   :  { %v5491_v45 = vpop.eup %5490  ;;  %5510 = vtanh.f32 %v2010_v3  ;;  %v2095_v6 = vmul.f32 %v5489_v35, %v6986_v50 }
 0x404   :  { %v5493_v37 = vpop.eup %5492  ;;  %5512 = vpow2.f32 %v4861_v25  ;;  %v2099_v59 = vmul.f32 %v5491_v45, %v7089_v60 }
 0x405   :  { %v5495_v22 = vpop.eup %5494  ;;  %5514 = vpow2.f32 %v4862_v18  ;;  %v2100_v11 = vmul.f32 %v5493_v37, %v7091_v62 }
 0x406   :  { %v5497_v56 = vpop.eup %5496  ;;  %5516 = vpow2.f32 %v4863_v5  ;;  %v2101_v4 = vmul.f32 %v5495_v22, %v7093_v1  ;;  %v7129_v15 = vadd.f32 %v2099_v59, %v2091_v51 }
 0x407   :  { %v5499_v28 = vpop.eup %5498  ;;  %5518 = vpow2.f32 %v4864_v49  ;;  %v2102_v7 = vmul.f32 %v5497_v56, %v7096_v12  ;;  %v7132_v60 = vadd.f32 %v2100_v11, %v2092_v46 }
 0x408   :  { %v5501_v24 = vpop.eup %5500  ;;  %5520 = vpow2.f32 %v4865_v43  ;;  %v2103_v13 = vmul.f32 %v5499_v28, %v7099_v17  ;;  %v7135_v31 = vadd.f32 %v2101_v4, %v2093_v10 }
 0x409   :  { %v5503_v19 = vpop.eup %5502  ;;  %5522 = vpow2.f32 %v4866_v2  ;;  %v7137_v34 = vadd.f32 %v2102_v7, %v2094_v61  ;;  %v2096_v14 = vmul.f32 %v5501_v24, %v6999_v53 }
 0x40a   :  { %v5505_v27 = vpop.eup %5504  ;;  %5524 = vpow2.f32 %v4867_v9  ;;  %v7139_v1 = vadd.f32 %v2103_v13, %v2095_v6  ;;  %v2097_v0 = vmul.f32 %v5503_v19, %v7001_v32 }
 0x40b   :  { %v5507_v62 = vpop.eup %5506  ;;  %5526 = vpow2.f32 %v4868_v30  ;;  %v2098_v39 = vmul.f32 %v5505_v27, %v7003_v26 }
 0x40c   :  { %v5509_v50 = vpop.eup %5508  ;;  %5528 = vtanh.f32 %v7129_v15  ;;  %v2104_v3 = vmul.f32 %v5507_v62, %v7102_v21 }
 0x40d   :  { %v5511_v63 = vpop.eup %5510  ;;  %5530 = vtanh.f32 %v7132_v60  ;;  %v2105_v25 = vmul.f32 %v5509_v50, %v7105_v29 }
 0x40e   :  { %v5513_v12 = vpop.eup %5512  ;;  %5532 = vtanh.f32 %v7135_v31  ;;  %v2106_v53 = vmul.f32 %v5511_v63, %v7108_v33  ;;  %v7152_v18 = vadd.f32 %v2104_v3, %v2096_v14 }
 0x40f   :  { %v5515_v36 = vpop.eup %5514  ;;  %v2067_v58 = vadd.f32 1.0, %v5513_v12  ;;  %5534 = vtanh.f32 %v7137_v34  ;;  %v7154_v16 = vadd.f32 %v2105_v25, %v2097_v0 }
 0x410   :  { %v5517_v17 = vpop.eup %5516  ;;  %v2068_v40 = vadd.f32 1.0, %v5515_v36  ;;  %5536 = vtanh.f32 %v7139_v1  ;;  %v7156_v26 = vadd.f32 %v2106_v53, %v2098_v39 }
 0x411   :  { %v5519_v42 = vpop.eup %5518  ;;  %v2069_v20 = vadd.f32 1.0, %v5517_v17  ;;  %5538 = vrcp.f32 %v2067_v58 }
 0x412   :  { %v5521_v38 = vpop.eup %5520  ;;  %v2070_v48 = vadd.f32 1.0, %v5519_v42  ;;  %5540 = vrcp.f32 %v2068_v40 }
 0x413   :  { %v5523_v44 = vpop.eup %5522  ;;  %v2071_v41 = vadd.f32 1.0, %v5521_v38  ;;  %5542 = vrcp.f32 %v2069_v20 }
 0x414   :  { %v5525_v55 = vpop.eup %5524  ;;  %v2072_v57 = vadd.f32 1.0, %v5523_v44  ;;  %5544 = vrcp.f32 %v2070_v48 }
 0x415   :  { %v5527_v52 = vpop.eup %5526  ;;  %v2073_v8 = vadd.f32 1.0, %v5525_v55  ;;  %5546 = vrcp.f32 %v2071_v41 }
 0x416   :  { %v5529_v32 = vpop.eup %5528  ;;  %v2074_v35 = vadd.f32 1.0, %v5527_v52  ;;  %5548 = vrcp.f32 %v2072_v57 }
 0x417   :  { %v5531_v21 = vpop.eup %5530  ;;  %5550 = vrcp.f32 %v2073_v8 }
 0x418   :  { %v5533_v5 = vpop.eup %5532  ;;  %5552 = vrcp.f32 %v2074_v35 }
 0x419   :  { %v5535_v45 = vpop.eup %5534  ;;  %5554 = vtanh.f32 %v7152_v18 }
 0x41a   :  { %v5537_v29 = vpop.eup %5536  ;;  %5556 = vtanh.f32 %v7154_v16 }
 0x41b   :  { %v5539_v33 = vpop.eup %5538  ;;  %5558 = vtanh.f32 %v7156_v26 }
 0x41c   :  { %v5541_v23 = vpop.eup %5540  ;;  %v2123_v49 = vmul.f32 %v5539_v33, %v5529_v32  ;;  %v7182_v33 = vld [vmem:[#allocation10 + $0x20] ss:$16 sps:$4 sm:$0xff]  }
 0x41d   :  { %v5543_v37 = vpop.eup %5542  ;;  %v2124_v43 = vmul.f32 %v5541_v23, %v5531_v21  ;;  %v7168_v21 = vld [vmem:[#allocation10] ss:$16 sps:$4 sm:$0xff]   ;;  %v7185_v23 = vld [vmem:[#allocation10 + $0x28] ss:$16 sps:$4 sm:$0xff]  }
 0x41e   :  { %v5545_v51 = vpop.eup %5544  ;;  %v2125_v22 = vmul.f32 %v5543_v37, %v5533_v5  ;;  %v2147_v56 = vpack.c.bf16 %v2123_v49, %v2123_v49  ;;  %v7171_v5 = vld [vmem:[#allocation10 + $0x8] ss:$16 sps:$4 sm:$0xff]   ;;  %v7188_v49 = vld [vmem:[#allocation10 + $0x44] ss:$16 sps:$4 sm:$0xff]   ;;  %v7191_v37 = vld [vmem:[#allocation10 + $0x4c] ss:$16 sps:$4 sm:$0xff]  }
 0x41f   :  { %v5547_v2 = vpop.eup %5546  ;;  %v2126_v46 = vmul.f32 %v5545_v51, %v5535_v45  ;;  %v2148_v9 = vpack.c.bf16 %v2124_v43, %v2124_v43  ;;  %v7174_v45 = vld [vmem:[#allocation10 + $0x24] ss:$16 sps:$4 sm:$0xff]   ;;  %v7194_v43 = vld [vmem:[#allocation10 + $0x40] ss:$16 sps:$4 sm:$0xff]   ;;  %v7197_v51 = vld [vmem:[#allocation10 + $0x48] ss:$16 sps:$4 sm:$0xff]  }
 0x420   :  { %v5549_v10 = vpop.eup %5548  ;;  %v2127_v59 = vmul.f32 %v5547_v2, %v5537_v29  ;;  %v2149_v28 = vpack.c.bf16 %v2125_v22, %v2125_v22  ;;  %v2163_v7 = vunpack.c.l.b16 %v2147_v56  ;;  %v7177_v29 = vld [vmem:[#allocation10 + $0x2c] ss:$16 sps:$4 sm:$0xff]   ;;  %v7200_v22 = vld [vmem:[#allocation10 + $0x64] ss:$16 sps:$4 sm:$0xff]   ;;  %v7209_v56 = vld [vmem:[#allocation10 + $0x68] ss:$16 sps:$4 sm:$0xff]  }
 0x421   :  { %v5551_v30 = vpop.eup %5550  ;;  %v2150_v61 = vpack.c.bf16 %v2126_v46, %v2126_v46  ;;  %v2164_v11 = vunpack.c.l.b16 %v2148_v9  ;;  %v7203_v2 = vld [vmem:[#allocation10 + $0x6c] ss:$16 sps:$4 sm:$0xff]   ;;  %v7206_v46 = vld [vmem:[#allocation10 + $0x60] ss:$16 sps:$4 sm:$0xff]   ;;  %v7212_v9 = vld [vmem:[#allocation10 + $0x84] ss:$16 sps:$4 sm:$0xff]  }
 0x422   :  { %v5553_v24 = vpop.eup %5552  ;;  %v2151_v6 = vpack.c.bf16 %v2127_v59, %v2127_v59  ;;  %v2165_v4 = vunpack.c.l.b16 %v2149_v28  ;;  %v7218_v59 = vld [vmem:[#allocation10 + $0x80] ss:$16 sps:$4 sm:$0xff]   ;;  %v7221_v28 = vld [vmem:[#allocation10 + $0x88] ss:$16 sps:$4 sm:$0xff]  }
 0x423   :  { %v5555_v19 = vpop.eup %5554  ;;  %v2166_v27 = vunpack.c.l.b16 %v2150_v61  ;;  %v2171_v13 = vrot.slane %v2164_v11, 7  ;;  %v7227_v61 = vld [vmem:[#allocation10 + $0xac] ss:$16 sps:$4 sm:$0xff]   ;;  %v7230_v11 = vld [vmem:[#allocation10 + $0xa0] ss:$16 sps:$4 sm:$0xff]  }
 0x424   :  { %v5557_v62 = vpop.eup %5556  ;;  %v2128_v50 = vmul.f32 %v5555_v19, %v5549_v10  ;;  %v2167_v63 = vunpack.c.l.b16 %v2151_v6  ;;  %v2173_v12 = vrot.slane %v2165_v4, 6  ;;  %v7215_v10 = vld [vmem:[#allocation10 + $0x8c] ss:$16 sps:$4 sm:$0xff]   ;;  %8092 = vst [vmem:[#allocation19_spill] sm:$0xff] %v7230_v11  ;;  %v7236_v6 = vld [vmem:[#allocation10 + $0xc4] ss:$16 sps:$4 sm:$0xff]  }
 0x425   :  { %v5559_v36 = vpop.eup %5558  ;;  %v2129_v58 = vmul.f32 %v5557_v62, %v5551_v30  ;;  %v2172_v17 = vsel %vm1217_vm0, %v2171_v13, %v2163_v7  ;;  %v2175_v40 = vrot.slane %v2166_v27, 5  ;;  %v7224_v30 = vld [vmem:[#allocation10 + $0xa4] ss:$16 sps:$4 sm:$0xff]   ;;  %8094 = vst [vmem:[#allocation21_spill] sm:$0xff] %v7236_v6  ;;  %v7239_v4 = vld [vmem:[#allocation10 + $0xcc] ss:$16 sps:$4 sm:$0xff]  }
 0x426   :  { %v2130_v42 = vmul.f32 %v5559_v36, %v5553_v24  ;;  %v2152_v20 = vpack.c.bf16 %v2128_v50, %v2128_v50  ;;  %v2174_v14 = vsel %vm1220_vm1, %v2173_v12, %v2172_v17  ;;  %v2177_v38 = vrot.slane %v2167_v63, 4  ;;  %v7233_v24 = vld [vmem:[#allocation10 + $0xa8] ss:$16 sps:$4 sm:$0xff]   ;;  %8095 = vst [vmem:[#allocation22_spill] sm:$0xff] %v7239_v4  ;;  %v7242_v19 = vld [vmem:[#allocation10 + $0xc0] ss:$16 sps:$4 sm:$0xff]  }
 0x427   :  { %v2153_v48 = vpack.c.bf16 %v2129_v58, %v2129_v58  ;;  %v2176_v0 = vsel %vm1223_vm2, %v2175_v40, %v2174_v14  ;;  %8093 = vst [vmem:[#allocation20_spill] sm:$0xff] %v7233_v24  ;;  %8096 = vst [vmem:[#allocation23_spill] sm:$0xff] %v7242_v19  ;;  %v7245_v7 = vld [vmem:[#allocation10 + $0xc8] ss:$16 sps:$4 sm:$0xff]   ;;  %v7248_v27 = vld [vmem:[#allocation10 + $0xe4] ss:$16 sps:$4 sm:$0xff]  }
 0x428   :  { %v2154_v44 = vpack.c.bf16 %v2130_v42, %v2130_v42  ;;  %v2168_v41 = vunpack.c.l.b16 %v2152_v20  ;;  %v2178_v3 = vsel %vm1226_vm3, %v2177_v38, %v2176_v0  ;;  %8097 = vst [vmem:[#allocation24_spill] sm:$0xff] %v7245_v7  ;;  %8098 = vst [vmem:[#allocation25_spill] sm:$0xff] %v7248_v27  ;;  %v7251_v13 = vld [vmem:[#allocation10 + $0xec] ss:$16 sps:$4 sm:$0xff]   ;;  %v7254_v62 = vld [vmem:[#allocation10 + $0xe0] ss:$16 sps:$4 sm:$0xff]  }
 0x429   :  { %v2169_v39 = vunpack.c.l.b16 %v2153_v48  ;;  %8099 = vst [vmem:[#allocation26_spill] sm:$0xff] %v7251_v13  ;;  %8100 = vst [vmem:[#allocation27_spill] sm:$0xff] %v7254_v62  ;;  %v7257_v50 = vld [vmem:[#allocation10 + $0xe8] ss:$16 sps:$4 sm:$0xff]   ;;  %v7260_v63 = vld [vmem:[#allocation10 + $0x4] ss:$16 sps:$4 sm:$0xff]  }
 0x42a   :  { %v2170_v55 = vunpack.c.l.b16 %v2154_v44  ;;  %v2179_v57 = vrot.slane %v2168_v41, 3  ;;  %8101 = vst [vmem:[#allocation28_spill] sm:$0xff] %v7257_v50  ;;  %8102 = vst [vmem:[#allocation29_spill] sm:$0xff] %v7260_v63  ;;  %v7263_v12 = vld [vmem:[#allocation10 + $0xc] ss:$16 sps:$4 sm:$0xff]  }
 0x42b   :  { %v2181_v25 = vrot.slane %v2169_v39, 2  ;;  %8103 = vst [vmem:[#allocation30_spill] sm:$0xff] %v7263_v12 }
 0x42c   :  { %v2180_v52 = vsel %vm1229_vm4, %v2179_v57, %v2178_v3  ;;  %v2183_v8 = vrot.slane %v2170_v55, 1 }
 0x42d   :  { %v2182_v53 = vsel %vm1232_vm5, %v2181_v25, %v2180_v52 }
 0x42e   :  { %v2184_v32 = vsel %vm1235_vm6, %v2183_v8, %v2182_v53 }
 0x42f   :  { %v2185_v35 = vpack.c.b16 %v2184_v32, %v2184_v32 }
 0x431   :  { %2220 = vmatmul.mubr.bf16.vlgmr.msra.gmra.mrb[28].mxu0 %v2185_v35  ;;  %2261 = vmatmul.mubr.bf16.vlgmr.msra.gmra.mrb[28].mxu1 %v2185_v35 }
 0x432   :  { %2662 = vmatpush1.bf16.msra.mxu0 %v7168_v21  ;;  %2703 = vmatpush1.bf16.msra.mxu1 %v7171_v5 }
 0x433   :  { %2663 = vmatprep.subr.bf16.mxu0 %v7174_v45  ;;  %2704 = vmatprep.subr.bf16.mxu1 %v7177_v29 }
 0x434   :  { %2693 = vmatprep.mubr.bf16.mxu0 %v8079_v47  ;;  %2734 = vmatprep.mubr.bf16.mxu1 %v8079_v47 }
 0x436   :  { %2664 = vmatpush1.bf16.msra.mxu0 %v7182_v33  ;;  %2705 = vmatpush1.bf16.msra.mxu1 %v7185_v23 }
 0x437   :  { %2665 = vmatprep.subr.bf16.mxu0 %v7188_v49  ;;  %2706 = vmatprep.subr.bf16.mxu1 %v7191_v37 }
 0x43a   :  { %2666 = vmatpush1.bf16.msra.mxu0 %v7194_v43  ;;  %2707 = vmatpush1.bf16.msra.mxu1 %v7197_v51 }
 0x43b   :  { %2667 = vmatprep.subr.bf16.mxu0 %v7200_v22  ;;  %2708 = vmatprep.subr.bf16.mxu1 %v7203_v2 }
 0x43e   :  { %2668 = vmatpush1.bf16.msra.mxu0 %v7206_v46  ;;  %2709 = vmatpush1.bf16.msra.mxu1 %v7209_v56 }
 0x43f   :  { %2669 = vmatprep.subr.bf16.mxu0 %v7212_v9  ;;  %2710 = vmatprep.subr.bf16.mxu1 %v7215_v10 }
 0x442   :  { %2670 = vmatpush1.bf16.msra.mxu0 %v7218_v59  ;;  %2711 = vmatpush1.bf16.msra.mxu1 %v7221_v28 }
 0x443   :  { %2671 = vmatprep.subr.bf16.mxu0 %v7224_v30  ;;  %2712 = vmatprep.subr.bf16.mxu1 %v7227_v61 }
 0x446   :  { %2672 = vmatpush1.bf16.msra.mxu0 %v7230_v11  ;;  %2713 = vmatpush1.bf16.msra.mxu1 %v7233_v24 }
 0x447   :  { %2673 = vmatprep.subr.bf16.mxu0 %v7236_v6  ;;  %2714 = vmatprep.subr.bf16.mxu1 %v7239_v4 }
 0x44a   :  { %2674 = vmatpush1.bf16.msra.mxu0 %v7242_v19  ;;  %2715 = vmatpush1.bf16.msra.mxu1 %v7245_v7 }
 0x44b   :  { %2675 = vmatprep.subr.bf16.mxu0 %v7248_v27  ;;  %2716 = vmatprep.subr.bf16.mxu1 %v7251_v13 }
 0x44e   :  { %2676 = vmatpush1.bf16.msra.mxu0 %v7254_v62  ;;  %2717 = vmatpush1.bf16.msra.mxu1 %v7257_v50 }
 0x44f   :  { %3135 = vmatprep.subr.bf16.mxu0 %v7260_v63  ;;  %3176 = vmatprep.subr.bf16.mxu1 %v7263_v12 }
 0x504   :  { %v2221_v36 = vpop.f32.mrb[28].mxu0  ;;  %v2262_v58 = vpop.f32.mrb[28].mxu1 }
 0x505   :  { %v2223_v17 = vpop.f32.mrb[29].mxu0  ;;  %v2264_v40 = vpop.f32.mrb[29].mxu1 }
 0x506   :  { %v2273_v42 = vcombine.low %v2221_v36, %v2223_v17  ;;  %v2274_v20 = vcombine.high %v2221_v36, %v2223_v17  ;;  %v2275_v14 = vcombine.low %v2262_v58, %v2264_v40  ;;  %v2276_v38 = vcombine.high %v2262_v58, %v2264_v40  ;;  %v2225_v48 = vpop.f32.mrb[30].mxu0  ;;  %v2266_v0 = vpop.f32.mrb[30].mxu1  ;;  %v2132_v17 = vld [vmem:[#allocation2 + $0x3] ss:$8 sm:$0xf] }
 0x507   :  { %v2226_v44 = vpop.f32.mrb[31].mxu0  ;;  %v2267_v41 = vpop.f32.mrb[31].mxu1  ;;  %v2134_v40 = vld [vmem:[#allocation2 + $0x23] ss:$8 sm:$0xf] }
 0x508   :  { %v2283_v3 = vrot.slane %v2273_v42, %v8091_v54  ;;  %v2290_v39 = vrot.slane %v2274_v20, %v8091_v54  ;;  %v2297_v55 = vrot.slane %v2275_v14, %v8091_v54  ;;  %v2304_v57 = vrot.slane %v2276_v38, %v8091_v54  ;;  %v2136_v42 = vld [vmem:[#allocation2 + $0x43] ss:$8 sm:$0xf] }
 0x509   :  { %v2140_v20 = vld [vmem:[#allocation2 + $0x83] ss:$8 sm:$0xf] }
 0x50a   :  { %v2305_v25 = vcombine.low %v2283_v3, %v2297_v55  ;;  %v2306_v52 = vcombine.high %v2283_v3, %v2297_v55  ;;  %v2307_v8 = vcombine.low %v2290_v39, %v2304_v57  ;;  %v2308_v53 = vcombine.high %v2290_v39, %v2304_v57  ;;  %v2138_v44 = vld [vmem:[#allocation2 + $0x63] ss:$8 sm:$0xf] }
 0x50b   :  { %v2142_v41 = vld [vmem:[#allocation2 + $0xa3] ss:$8 sm:$0xf] }
 0x50c   :  { %v2315_v32 = vrot.slane %v2305_v25, %v8091_v54  ;;  %v2322_v35 = vrot.slane %v2307_v8, %v8091_v54  ;;  %v2329_v36 = vrot.slane %v2306_v52, %v8091_v54  ;;  %v2336_v58 = vrot.slane %v2308_v53, %v8091_v54  ;;  %v2144_v57 = vld [vmem:[#allocation2 + $0xc3] ss:$8 sm:$0xf] }
 0x50d   :  { %v2146_v25 = vld [vmem:[#allocation2 + $0xe3] ss:$8 sm:$0xf] }
 0x50e   :  { %v2337_v48 = vcombine.high %v2315_v32, %v2315_v32  ;;  %v2338_v14 = vcombine.high %v2322_v35, %v2322_v35  ;;  %v2339_v0 = vcombine.high %v2329_v36, %v2329_v36  ;;  %v2340_v38 = vcombine.high %v2336_v58, %v2336_v58 }
 0x50f   :  { %v7274_v3 = vadd.f32 %v2315_v32, %v2132_v17  ;;  %v7276_v39 = vadd.f32 %v2329_v36, %v2134_v40  ;;  %v7278_v55 = vadd.f32 %v2322_v35, %v2140_v20  ;;  %v7284_v53 = vadd.f32 %v2336_v58, %v2142_v41 }
 0x510   :  { %v7280_v52 = vadd.f32 %v2337_v48, %v2136_v42  ;;  %v7282_v8 = vadd.f32 %v2339_v0, %v2138_v44  ;;  %v7286_v54 = vadd.f32 %v2338_v14, %v2144_v57  ;;  %v7290_v32 = vadd.f32 %v2340_v38, %v2146_v25 }
 0x511   :  { %v4869_v12 = vmul.f32 -1.442695, %v7274_v3  ;;  %v4870_v63 = vmul.f32 -1.442695, %v7276_v39  ;;  %v4873_v17 = vmul.f32 -1.442695, %v7278_v55 }
 0x512   :  { %v4871_v36 = vmul.f32 -1.442695, %v7280_v52  ;;  %v4872_v35 = vmul.f32 -1.442695, %v7282_v8  ;;  %v2413_v40 = vrot.slane %v7274_v3, 1  ;;  %v2414_v42 = vrot.slane %v7276_v39, 1 }
 0x513   :  { %5560 = vpow2.f32 %v4869_v12  ;;  %v4874_v58 = vmul.f32 -1.442695, %v7284_v53  ;;  %v4875_v20 = vmul.f32 -1.442695, %v7286_v54  ;;  %v2415_v48 = vrot.slane %v7280_v52, 1 }
 0x514   :  { %5562 = vpow2.f32 %v4870_v63  ;;  %v4876_v14 = vmul.f32 -1.442695, %v7290_v32  ;;  %v2416_v0 = vrot.slane %v7282_v8, 1  ;;  %v2417_v12 = vrot.slane %v7278_v55, 1 }
 0x515   :  { %5564 = vpow2.f32 %v4871_v36  ;;  %v4877_v38 = vmul.f32 -1.442695, %v2413_v40  ;;  %v4878_v63 = vmul.f32 -1.442695, %v2414_v42  ;;  %v4879_v44 = vmul.f32 -1.442695, %v2415_v48 }
 0x516   :  { %5566 = vpow2.f32 %v4872_v35  ;;  %v4880_v41 = vmul.f32 -1.442695, %v2416_v0  ;;  %v4881_v57 = vmul.f32 -1.442695, %v2417_v12  ;;  %v2418_v40 = vrot.slane %v7284_v53, 1 }
 0x517   :  { %5568 = vpow2.f32 %v4873_v17  ;;  %v2420_v0 = vrot.slane %v7290_v32, 1  ;;  %v2508_v24 = vrot.slane %v7290_v32, 3 }
 0x518   :  { %5570 = vpow2.f32 %v4874_v58 }
 0x519   :  { %5572 = vpow2.f32 %v4875_v20  ;;  %v2419_v20 = vrot.slane %v7286_v54, 1 }
 0x51a   :  { %5574 = vpow2.f32 %v4876_v14 }
 0x51b   :  { %5576 = vpow2.f32 %v4877_v38 }
 0x51c   :  { %5578 = vpow2.f32 %v4878_v63 }
 0x51d   :  { %v5561_v25 = vpop.eup %5560  ;;  %5580 = vpow2.f32 %v4879_v44 }
 0x51e   :  { %v5563_v36 = vpop.eup %5562  ;;  %v2381_v35 = vadd.f32 1.0, %v5561_v25  ;;  %5582 = vpow2.f32 %v4880_v41  ;;  %v4883_v25 = vmul.f32 -1.442695, %v2419_v20 }
 0x51f   :  { %v5565_v50 = vpop.eup %5564  ;;  %v2382_v62 = vadd.f32 1.0, %v5563_v36  ;;  %5584 = vpow2.f32 %v4881_v57 }
 0x520   :  { %v5567_v17 = vpop.eup %5566  ;;  %v2383_v13 = vadd.f32 1.0, %v5565_v50  ;;  %5586 = vrcp.f32 %v2381_v35  ;;  %v4882_v50 = vmul.f32 -1.442695, %v2418_v40 }
 0x521   :  { %v5569_v58 = vpop.eup %5568  ;;  %v2384_v42 = vadd.f32 1.0, %v5567_v17  ;;  %5588 = vrcp.f32 %v2382_v62  ;;  %v4884_v62 = vmul.f32 -1.442695, %v2420_v0  ;;  %v2477_v0 = vrot.slane %v7274_v3, 2 }
 0x522   :  { %v5571_v48 = vpop.eup %5570  ;;  %v2385_v14 = vadd.f32 1.0, %v5569_v58  ;;  %5590 = vrcp.f32 %v2383_v13 }
 0x523   :  { %v5573_v12 = vpop.eup %5572  ;;  %v2386_v38 = vadd.f32 1.0, %v5571_v48  ;;  %5592 = vrcp.f32 %v2384_v42 }
 0x524   :  { %v5575_v63 = vpop.eup %5574  ;;  %v2387_v44 = vadd.f32 1.0, %v5573_v12  ;;  %5594 = vrcp.f32 %v2385_v14 }
 0x525   :  { %v5577_v41 = vpop.eup %5576  ;;  %v2388_v57 = vadd.f32 1.0, %v5575_v63  ;;  %5596 = vrcp.f32 %v2386_v38  ;;  %v2478_v63 = vrot.slane %v7276_v39, 2 }
 0x526   :  { %v5579_v36 = vpop.eup %5578  ;;  %5598 = vrcp.f32 %v2387_v44  ;;  %v2453_v17 = vadd.f32 1.0, %v5577_v41 }
 0x527   :  { %v5581_v35 = vpop.eup %5580  ;;  %5600 = vrcp.f32 %v2388_v57  ;;  %v2454_v58 = vadd.f32 1.0, %v5579_v36 }
 0x528   :  { %v5583_v13 = vpop.eup %5582  ;;  %5602 = vpow2.f32 %v4882_v50  ;;  %v2455_v42 = vadd.f32 1.0, %v5581_v35  ;;  %v2479_v50 = vrot.slane %v7280_v52, 2 }
 0x529   :  { %v5585_v27 = vpop.eup %5584  ;;  %5604 = vpow2.f32 %v4883_v25  ;;  %v2456_v40 = vadd.f32 1.0, %v5583_v13  ;;  %v2481_v25 = vrot.slane %v7278_v55, 2  ;;  %v2501_v13 = vrot.slane %v7274_v3, 3 }
 0x52a   :  { %v7306_v48 = vpop.eup %5586  ;;  %5606 = vpow2.f32 %v4884_v62  ;;  %v2457_v12 = vadd.f32 1.0, %v5585_v27  ;;  %v2480_v27 = vrot.slane %v7282_v8, 2  ;;  %v2504_v3 = vrot.slane %v7282_v8, 3 }
 0x52b   :  { %v7308_v14 = vpop.eup %5588  ;;  %5608 = vrcp.f32 %v2453_v17 }
 0x52c   :  { %v7310_v20 = vpop.eup %5590  ;;  %5610 = vrcp.f32 %v2454_v58  ;;  %v4888_v8 = vmul.f32 -1.442695, %v2504_v3 }
 0x52d   :  { %v7313_v38 = vpop.eup %5592  ;;  %5612 = vrcp.f32 %v2455_v42 }
 0x52e   :  { %v7316_v44 = vpop.eup %5594  ;;  %5614 = vrcp.f32 %v2456_v40  ;;  %v2482_v40 = vrot.slane %v7284_v53, 2 }
 0x52f   :  { %v7319_v41 = vpop.eup %5596  ;;  %5616 = vrcp.f32 %v2457_v12  ;;  %v2502_v12 = vrot.slane %v7276_v39, 3  ;;  %v2506_v39 = vrot.slane %v7284_v53, 3 }
 0x530   :  { %v7322_v57 = vpop.eup %5598  ;;  %5618 = vtanh.f32 %v2477_v0  ;;  %v2483_v0 = vrot.slane %v7286_v54, 2 }
 0x531   :  { %v7325_v36 = vpop.eup %5600  ;;  %5620 = vtanh.f32 %v2478_v63  ;;  %v2503_v63 = vrot.slane %v7280_v52, 3  ;;  %v2507_v52 = vrot.slane %v7286_v54, 3 }
 0x532   :  { %v5603_v62 = vpop.eup %5602  ;;  %5622 = vtanh.f32 %v2479_v50 }
 0x533   :  { %v5605_v35 = vpop.eup %5604  ;;  %v2458_v17 = vadd.f32 1.0, %v5603_v62  ;;  %5624 = vtanh.f32 %v2480_v27  ;;  %v2484_v27 = vrot.slane %v7290_v32, 2  ;;  %v4887_v6 = vmul.f32 -1.442695, %v2503_v63 }
 0x534   :  { %v5607_v58 = vpop.eup %5606  ;;  %v2459_v42 = vadd.f32 1.0, %v5605_v35  ;;  %5626 = vtanh.f32 %v2481_v25  ;;  %v2505_v35 = vrot.slane %v7278_v55, 3  ;;  %v4885_v25 = vmul.f32 -1.442695, %v2501_v13 }
 0x535   :  { %v5609_v7 = vpop.eup %5608  ;;  %v2460_v19 = vadd.f32 1.0, %v5607_v58  ;;  %5628 = vrcp.f32 %v2458_v17  ;;  %v4886_v17 = vmul.f32 -1.442695, %v2502_v12  ;;  %v4892_v32 = vmul.f32 -1.442695, %v2508_v24 }
 0x536   :  { %v5611_v50 = vpop.eup %5610  ;;  %5630 = vrcp.f32 %v2459_v42  ;;  %v2565_v55 = vmul.f32 %v5609_v7, %v7129_v15 }
 0x537   :  { %v5613_v62 = vpop.eup %5612  ;;  %5632 = vrcp.f32 %v2460_v19  ;;  %v4889_v19 = vmul.f32 -1.442695, %v2505_v35  ;;  %v2566_v53 = vmul.f32 %v5611_v50, %v7132_v60 }
 0x538   :  { %v5615_v4 = vpop.eup %5614  ;;  %5634 = vtanh.f32 %v2482_v40  ;;  %v4890_v40 = vmul.f32 -1.442695, %v2506_v39  ;;  %v2567_v54 = vmul.f32 %v5613_v62, %v7135_v31 }
 0x539   :  { %v5617_v58 = vpop.eup %5616  ;;  %5636 = vtanh.f32 %v2483_v0  ;;  %v4891_v0 = vmul.f32 -1.442695, %v2507_v52  ;;  %v2568_v3 = vmul.f32 %v5615_v4, %v7137_v34 }
 0x53a   :  { %v5619_v42 = vpop.eup %5618  ;;  %5638 = vtanh.f32 %v2484_v27  ;;  %v2569_v7 = vmul.f32 %v5617_v58, %v7139_v1 }
 0x53b   :  { %v5621_v11 = vpop.eup %5620  ;;  %5640 = vpow2.f32 %v4885_v25  ;;  %v2573_v63 = vmul.f32 %v5619_v42, %v7306_v48 }
 0x53c   :  { %v5623_v13 = vpop.eup %5622  ;;  %5642 = vpow2.f32 %v4886_v17  ;;  %v2574_v35 = vmul.f32 %v5621_v11, %v7308_v14 }
 0x53d   :  { %v5625_v12 = vpop.eup %5624  ;;  %5644 = vpow2.f32 %v4887_v6  ;;  %v2575_v60 = vmul.f32 %v5623_v13, %v7310_v20  ;;  %v7346_v50 = vadd.f32 %v2573_v63, %v2565_v55 }
 0x53e   :  { %v5627_v27 = vpop.eup %5626  ;;  %5646 = vpow2.f32 %v4888_v8  ;;  %v2576_v31 = vmul.f32 %v5625_v12, %v7313_v38  ;;  %v7349_v48 = vadd.f32 %v2574_v35, %v2566_v53 }
 0x53f   :  { %v5629_v15 = vpop.eup %5628  ;;  %5648 = vpow2.f32 %v4889_v19  ;;  %v2577_v34 = vmul.f32 %v5627_v27, %v7316_v44  ;;  %v7352_v24 = vadd.f32 %v2575_v60, %v2567_v54 }
 0x540   :  { %v5631_v6 = vpop.eup %5630  ;;  %5650 = vpow2.f32 %v4890_v40  ;;  %v7354_v4 = vadd.f32 %v2576_v31, %v2568_v3  ;;  %v2570_v42 = vmul.f32 %v5629_v15, %v7152_v18 }
 0x541   :  { %v5633_v62 = vpop.eup %5632  ;;  %5652 = vpow2.f32 %v4891_v0  ;;  %v7356_v14 = vadd.f32 %v2577_v34, %v2569_v7  ;;  %v2571_v55 = vmul.f32 %v5631_v6, %v7154_v16 }
 0x542   :  { %v5635_v11 = vpop.eup %5634  ;;  %5654 = vpow2.f32 %v4892_v32  ;;  %v2572_v12 = vmul.f32 %v5633_v62, %v7156_v26 }
 0x543   :  { %v5637_v1 = vpop.eup %5636  ;;  %5656 = vtanh.f32 %v7346_v50  ;;  %v2578_v53 = vmul.f32 %v5635_v11, %v7319_v41 }
 0x544   :  { %v5639_v20 = vpop.eup %5638  ;;  %5658 = vtanh.f32 %v7349_v48  ;;  %v2579_v63 = vmul.f32 %v5637_v1, %v7322_v57 }
 0x545   :  { %v5641_v38 = vpop.eup %5640  ;;  %5660 = vtanh.f32 %v7352_v24  ;;  %v2580_v18 = vmul.f32 %v5639_v20, %v7325_v36  ;;  %v7369_v3 = vadd.f32 %v2578_v53, %v2570_v42 }
 0x546   :  { %v5643_v25 = vpop.eup %5642  ;;  %v2541_v39 = vadd.f32 1.0, %v5641_v38  ;;  %5662 = vtanh.f32 %v7354_v4  ;;  %v7371_v15 = vadd.f32 %v2579_v63, %v2571_v55 }
 0x547   :  { %v5645_v44 = vpop.eup %5644  ;;  %v2542_v17 = vadd.f32 1.0, %v5643_v25  ;;  %5664 = vtanh.f32 %v7356_v14  ;;  %v7373_v26 = vadd.f32 %v2580_v18, %v2572_v12 }
 0x548   :  { %v5647_v58 = vpop.eup %5646  ;;  %v2543_v52 = vadd.f32 1.0, %v5645_v44  ;;  %5666 = vrcp.f32 %v2541_v39 }
 0x549   :  { %v5649_v8 = vpop.eup %5648  ;;  %v2544_v19 = vadd.f32 1.0, %v5647_v58  ;;  %5668 = vrcp.f32 %v2542_v17 }
 0x54a   :  { %v5651_v13 = vpop.eup %5650  ;;  %v2545_v40 = vadd.f32 1.0, %v5649_v8  ;;  %5670 = vrcp.f32 %v2543_v52 }
 0x54b   :  { %v5653_v0 = vpop.eup %5652  ;;  %v2546_v54 = vadd.f32 1.0, %v5651_v13  ;;  %5672 = vrcp.f32 %v2544_v19 }
 0x54c   :  { %v5655_v27 = vpop.eup %5654  ;;  %v2547_v32 = vadd.f32 1.0, %v5653_v0  ;;  %5674 = vrcp.f32 %v2545_v40 }
 0x54d   :  { %v5657_v16 = vpop.eup %5656  ;;  %v2548_v35 = vadd.f32 1.0, %v5655_v27  ;;  %5676 = vrcp.f32 %v2546_v54 }
 0x54e   :  { %v5659_v41 = vpop.eup %5658  ;;  %5678 = vrcp.f32 %v2547_v32 }
 0x54f   :  { %v5661_v7 = vpop.eup %5660  ;;  %5680 = vrcp.f32 %v2548_v35 }
 0x550   :  { %v5663_v60 = vpop.eup %5662  ;;  %5682 = vtanh.f32 %v7369_v3 }
 0x551   :  { %v5665_v57 = vpop.eup %5664  ;;  %5684 = vtanh.f32 %v7371_v15 }
 0x552   :  { %v5667_v36 = vpop.eup %5666  ;;  %5686 = vtanh.f32 %v7373_v26 }
 0x553   :  { %v5669_v6 = vpop.eup %5668  ;;  %v2597_v31 = vmul.f32 %v5667_v36, %v5657_v16 }
 0x554   :  { %v5671_v62 = vpop.eup %5670  ;;  %v2598_v34 = vmul.f32 %v5669_v6, %v5659_v41 }
 0x555   :  { %v5673_v11 = vpop.eup %5672  ;;  %v2599_v1 = vmul.f32 %v5671_v62, %v5661_v7  ;;  %v2621_v25 = vpack.c.bf16 %v2597_v31, %v2597_v31 }
 0x556   :  { %v5675_v20 = vpop.eup %5674  ;;  %v2600_v38 = vmul.f32 %v5673_v11, %v5663_v60  ;;  %v2622_v39 = vpack.c.bf16 %v2598_v34, %v2598_v34 }
 0x557   :  { %v5677_v44 = vpop.eup %5676  ;;  %v2601_v17 = vmul.f32 %v5675_v20, %v5665_v57  ;;  %v2623_v58 = vpack.c.bf16 %v2599_v1, %v2599_v1  ;;  %v2637_v53 = vunpack.c.l.b16 %v2621_v25 }
 0x558   :  { %v5679_v52 = vpop.eup %5678  ;;  %v2624_v42 = vpack.c.bf16 %v2600_v38, %v2600_v38  ;;  %v2638_v8 = vunpack.c.l.b16 %v2622_v39 }
 0x559   :  { %v5681_v19 = vpop.eup %5680  ;;  %v2625_v55 = vpack.c.bf16 %v2601_v17, %v2601_v17  ;;  %v2639_v13 = vunpack.c.l.b16 %v2623_v58 }
 0x55a   :  { %v5683_v40 = vpop.eup %5682  ;;  %v2640_v12 = vunpack.c.l.b16 %v2624_v42  ;;  %v2645_v0 = vrot.slane %v2638_v8, 7 }
 0x55b   :  { %v5685_v54 = vpop.eup %5684  ;;  %v2602_v63 = vmul.f32 %v5683_v40, %v5677_v44  ;;  %v2641_v27 = vunpack.c.l.b16 %v2625_v55  ;;  %v2647_v32 = vrot.slane %v2639_v13, 6  ;;  %v8116_v13 = vld [vmem:[#allocation18_spill] sm:$0xff] }
 0x55c   :  { %v5687_v18 = vpop.eup %5686  ;;  %v2603_v16 = vmul.f32 %v5685_v54, %v5679_v52  ;;  %v2646_v35 = vsel %vm1217_vm0, %v2645_v0, %v2637_v53  ;;  %v2649_v41 = vrot.slane %v2640_v12, 5 }
 0x55d   :  { %v2604_v7 = vmul.f32 %v5687_v18, %v5681_v19  ;;  %v2626_v60 = vpack.c.bf16 %v2602_v63, %v2602_v63  ;;  %v2648_v57 = vsel %vm1220_vm1, %v2647_v32, %v2646_v35  ;;  %v2651_v36 = vrot.slane %v2641_v27, 4 }
 0x55e   :  { %v2627_v6 = vpack.c.bf16 %v2603_v16, %v2603_v16  ;;  %v2650_v31 = vsel %vm1223_vm2, %v2649_v41, %v2648_v57  ;;  %v2610_v57 = vld [vmem:[#allocation2 + $0x44] ss:$8 sm:$0xf] }
 0x55f   :  { %v2628_v62 = vpack.c.bf16 %v2604_v7, %v2604_v7  ;;  %v2642_v34 = vunpack.c.l.b16 %v2626_v60  ;;  %v2652_v11 = vsel %vm1226_vm3, %v2651_v36, %v2650_v31  ;;  %v2606_v7 = vld [vmem:[#allocation2 + $0x4] ss:$8 sm:$0xf] }
 0x560   :  { %v2643_v1 = vunpack.c.l.b16 %v2627_v6  ;;  %v2608_v60 = vld [vmem:[#allocation2 + $0x24] ss:$8 sm:$0xf] }
 0x561   :  { %v2644_v20 = vunpack.c.l.b16 %v2628_v62  ;;  %v2653_v38 = vrot.slane %v2642_v34, 3  ;;  %v2614_v36 = vld [vmem:[#allocation2 + $0x84] ss:$8 sm:$0xf] }
 0x562   :  { %v2655_v25 = vrot.slane %v2643_v1, 2  ;;  %v2616_v1 = vld [vmem:[#allocation2 + $0xa4] ss:$8 sm:$0xf] }
 0x563   :  { %v2654_v39 = vsel %vm1229_vm4, %v2653_v38, %v2652_v11  ;;  %v2657_v44 = vrot.slane %v2644_v20, 1  ;;  %v2612_v11 = vld [vmem:[#allocation2 + $0x64] ss:$8 sm:$0xf] }
 0x564   :  { %v2656_v17 = vsel %vm1232_vm5, %v2655_v25, %v2654_v39  ;;  %v2618_v39 = vld [vmem:[#allocation2 + $0xc4] ss:$8 sm:$0xf] }
 0x565   :  { %v2658_v58 = vsel %vm1235_vm6, %v2657_v44, %v2656_v17  ;;  %v2620_v44 = vld [vmem:[#allocation2 + $0xe4] ss:$8 sm:$0xf] }
 0x566   :  { %v2659_v52 = vpack.c.b16 %v2658_v58, %v2658_v58 }
 0x568   :  { %2694 = vmatmul.mubr.bf16.vlgmr.msra.gmra.mrb[32].mxu0 %v2659_v52  ;;  %2735 = vmatmul.mubr.bf16.vlgmr.msra.gmra.mrb[32].mxu1 %v2659_v52 }
 0x569   :  { %3136 = vmatpush1.bf16.msra.mxu0 %v7168_v21  ;;  %3177 = vmatpush1.bf16.msra.mxu1 %v7171_v5  ;;  %v8104_v21 = vld [vmem:[#allocation19_spill] sm:$0xff]  ;;  %v8105_v5 = vld [vmem:[#allocation20_spill] sm:$0xff] }
 0x56a   :  { %3137 = vmatprep.subr.bf16.mxu0 %v7174_v45  ;;  %3178 = vmatprep.subr.bf16.mxu1 %v7177_v29  ;;  %v8106_v45 = vld [vmem:[#allocation21_spill] sm:$0xff]  ;;  %v8107_v29 = vld [vmem:[#allocation22_spill] sm:$0xff] }
 0x56b   :  { %3167 = vmatprep.mubr.bf16.mxu0 %v8079_v47  ;;  %3208 = vmatprep.mubr.bf16.mxu1 %v8079_v47 }
 0x56d   :  { %3138 = vmatpush1.bf16.msra.mxu0 %v7182_v33  ;;  %3179 = vmatpush1.bf16.msra.mxu1 %v7185_v23  ;;  %v8108_v33 = vld [vmem:[#allocation23_spill] sm:$0xff]  ;;  %v8109_v23 = vld [vmem:[#allocation24_spill] sm:$0xff] }
 0x56e   :  { %3139 = vmatprep.subr.bf16.mxu0 %v7188_v49  ;;  %3180 = vmatprep.subr.bf16.mxu1 %v7191_v37  ;;  %v8110_v49 = vld [vmem:[#allocation25_spill] sm:$0xff]  ;;  %v8111_v37 = vld [vmem:[#allocation26_spill] sm:$0xff] }
 0x571   :  { %3140 = vmatpush1.bf16.msra.mxu0 %v7194_v43  ;;  %3181 = vmatpush1.bf16.msra.mxu1 %v7197_v51  ;;  %v8112_v43 = vld [vmem:[#allocation27_spill] sm:$0xff]  ;;  %v8113_v51 = vld [vmem:[#allocation28_spill] sm:$0xff] }
 0x572   :  { %3141 = vmatprep.subr.bf16.mxu0 %v7200_v22  ;;  %3182 = vmatprep.subr.bf16.mxu1 %v7203_v2  ;;  %v8114_v22 = vld [vmem:[#allocation29_spill] sm:$0xff]  ;;  %v8115_v2 = vld [vmem:[#allocation30_spill] sm:$0xff] }
 0x575   :  { %3142 = vmatpush1.bf16.msra.mxu0 %v7206_v46  ;;  %3183 = vmatpush1.bf16.msra.mxu1 %v7209_v56 }
 0x576   :  { %3143 = vmatprep.subr.bf16.mxu0 %v7212_v9  ;;  %3184 = vmatprep.subr.bf16.mxu1 %v7215_v10 }
 0x579   :  { %3144 = vmatpush1.bf16.msra.mxu0 %v7218_v59  ;;  %3185 = vmatpush1.bf16.msra.mxu1 %v7221_v28 }
 0x57a   :  { %3145 = vmatprep.subr.bf16.mxu0 %v7224_v30  ;;  %3186 = vmatprep.subr.bf16.mxu1 %v7227_v61 }
 0x57d   :  { %3146 = vmatpush1.bf16.msra.mxu0 %v8104_v21  ;;  %3187 = vmatpush1.bf16.msra.mxu1 %v8105_v5 }
 0x57e   :  { %3147 = vmatprep.subr.bf16.mxu0 %v8106_v45  ;;  %3188 = vmatprep.subr.bf16.mxu1 %v8107_v29 }
 0x581   :  { %3148 = vmatpush1.bf16.msra.mxu0 %v8108_v33  ;;  %3189 = vmatpush1.bf16.msra.mxu1 %v8109_v23 }
 0x582   :  { %3149 = vmatprep.subr.bf16.mxu0 %v8110_v49  ;;  %3190 = vmatprep.subr.bf16.mxu1 %v8111_v37 }
 0x585   :  { %3150 = vmatpush1.bf16.msra.mxu0 %v8112_v43  ;;  %3191 = vmatpush1.bf16.msra.mxu1 %v8113_v51 }
 0x586   :  { %3609 = vmatprep.subr.bf16.mxu0 %v8114_v22  ;;  %3650 = vmatprep.subr.bf16.mxu1 %v8115_v2 }
 0x63b   :  { %v2695_v46 = vpop.f32.mrb[32].mxu0  ;;  %v2736_v56 = vpop.f32.mrb[32].mxu1 }
 0x63c   :  { %v2697_v9 = vpop.f32.mrb[33].mxu0  ;;  %v2738_v10 = vpop.f32.mrb[33].mxu1 }
 0x63d   :  { %v2747_v59 = vcombine.low %v2695_v46, %v2697_v9  ;;  %v2748_v28 = vcombine.high %v2695_v46, %v2697_v9  ;;  %v2749_v30 = vcombine.low %v2736_v56, %v2738_v10  ;;  %v2750_v61 = vcombine.high %v2736_v56, %v2738_v10  ;;  %v2699_v42 = vpop.f32.mrb[34].mxu0  ;;  %v2740_v8 = vpop.f32.mrb[34].mxu1 }
 0x63e   :  { %v2700_v19 = vpop.f32.mrb[35].mxu0  ;;  %v2741_v55 = vpop.f32.mrb[35].mxu1 }
 0x63f   :  { %v2757_v40 = vrot.slane %v2747_v59, %v8116_v13  ;;  %v2764_v53 = vrot.slane %v2748_v28, %v8116_v13  ;;  %v2771_v12 = vrot.slane %v2749_v30, %v8116_v13  ;;  %v2778_v0 = vrot.slane %v2750_v61, %v8116_v13 }
 0x641   :  { %v2779_v54 = vcombine.low %v2757_v40, %v2771_v12  ;;  %v2780_v63 = vcombine.high %v2757_v40, %v2771_v12  ;;  %v2781_v27 = vcombine.low %v2764_v53, %v2778_v0  ;;  %v2782_v32 = vcombine.high %v2764_v53, %v2778_v0 }
 0x643   :  { %v2789_v18 = vrot.slane %v2779_v54, %v8116_v13  ;;  %v2796_v16 = vrot.slane %v2781_v27, %v8116_v13  ;;  %v2803_v35 = vrot.slane %v2780_v63, %v8116_v13  ;;  %v2810_v41 = vrot.slane %v2782_v32, %v8116_v13 }
 0x645   :  { %v2811_v6 = vcombine.high %v2789_v18, %v2789_v18  ;;  %v2812_v31 = vcombine.high %v2796_v16, %v2796_v16  ;;  %v2813_v62 = vcombine.high %v2803_v35, %v2803_v35  ;;  %v2814_v34 = vcombine.high %v2810_v41, %v2810_v41 }
 0x646   :  { %v7427_v20 = vadd.f32 %v2789_v18, %v2606_v7  ;;  %v7429_v38 = vadd.f32 %v2803_v35, %v2608_v60  ;;  %v7431_v25 = vadd.f32 %v2796_v16, %v2614_v36  ;;  %v7437_v52 = vadd.f32 %v2810_v41, %v2616_v1 }
 0x647   :  { %v7433_v17 = vadd.f32 %v2811_v6, %v2610_v57  ;;  %v7435_v58 = vadd.f32 %v2813_v62, %v2612_v11  ;;  %v7439_v21 = vadd.f32 %v2812_v31, %v2618_v39  ;;  %v7443_v29 = vadd.f32 %v2814_v34, %v2620_v44 }
 0x648   :  { %v4893_v5 = vmul.f32 -1.442695, %v7427_v20  ;;  %v4894_v45 = vmul.f32 -1.442695, %v7429_v38  ;;  %v4897_v49 = vmul.f32 -1.442695, %v7431_v25 }
 0x649   :  { %v4895_v33 = vmul.f32 -1.442695, %v7433_v17  ;;  %v4896_v23 = vmul.f32 -1.442695, %v7435_v58  ;;  %v2887_v37 = vrot.slane %v7427_v20, 1  ;;  %v2888_v51 = vrot.slane %v7429_v38, 1 }
 0x64a   :  { %5688 = vpow2.f32 %v4893_v5  ;;  %v4898_v43 = vmul.f32 -1.442695, %v7437_v52  ;;  %v4899_v22 = vmul.f32 -1.442695, %v7439_v21  ;;  %v2889_v2 = vrot.slane %v7433_v17, 1 }
 0x64b   :  { %5690 = vpow2.f32 %v4894_v45  ;;  %v4900_v46 = vmul.f32 -1.442695, %v7443_v29  ;;  %v2890_v56 = vrot.slane %v7435_v58, 1  ;;  %v2891_v9 = vrot.slane %v7431_v25, 1 }
 0x64c   :  { %5692 = vpow2.f32 %v4895_v33  ;;  %v4901_v10 = vmul.f32 -1.442695, %v2887_v37  ;;  %v4902_v59 = vmul.f32 -1.442695, %v2888_v51  ;;  %v4903_v28 = vmul.f32 -1.442695, %v2889_v2 }
 0x64d   :  { %5694 = vpow2.f32 %v4896_v23  ;;  %v4904_v30 = vmul.f32 -1.442695, %v2890_v56  ;;  %v4905_v61 = vmul.f32 -1.442695, %v2891_v9  ;;  %v2892_v0 = vrot.slane %v7437_v52, 1 }
 0x64e   :  { %5696 = vpow2.f32 %v4897_v49  ;;  %v2893_v27 = vrot.slane %v7439_v21, 1  ;;  %v2894_v16 = vrot.slane %v7443_v29, 1  ;;  %v2951_v51 = vrot.slane %v7427_v20, 2 }
 0x64f   :  { %5698 = vpow2.f32 %v4898_v43  ;;  %v4906_v57 = vmul.f32 -1.442695, %v2892_v0  ;;  %v2952_v2 = vrot.slane %v7429_v38, 2  ;;  %v2953_v56 = vrot.slane %v7433_v17, 2 }
 0x650   :  { %5700 = vpow2.f32 %v4899_v22  ;;  %v4907_v31 = vmul.f32 -1.442695, %v2893_v27  ;;  %v4908_v34 = vmul.f32 -1.442695, %v2894_v16  ;;  %v2977_v27 = vrot.slane %v7433_v17, 3 }
 0x651   :  { %5702 = vpow2.f32 %v4900_v46  ;;  %v2981_v17 = vrot.slane %v7439_v21, 3 }
 0x652   :  { %5704 = vpow2.f32 %v4901_v10  ;;  %v2954_v10 = vrot.slane %v7435_v58, 2 }
 0x653   :  { %5706 = vpow2.f32 %v4902_v59 }
 0x654   :  { %v5689_v42 = vpop.eup %5688  ;;  %5708 = vpow2.f32 %v4903_v28  ;;  %v2955_v28 = vrot.slane %v7431_v25, 2 }
 0x655   :  { %v5691_v8 = vpop.eup %5690  ;;  %v2855_v19 = vadd.f32 1.0, %v5689_v42  ;;  %5710 = vpow2.f32 %v4904_v30 }
 0x656   :  { %v5693_v55 = vpop.eup %5692  ;;  %v2856_v40 = vadd.f32 1.0, %v5691_v8  ;;  %5712 = vpow2.f32 %v4905_v61 }
 0x657   :  { %v5695_v53 = vpop.eup %5694  ;;  %v2857_v12 = vadd.f32 1.0, %v5693_v55  ;;  %5714 = vrcp.f32 %v2855_v19  ;;  %v2975_v19 = vrot.slane %v7427_v20, 3  ;;  %v2978_v20 = vrot.slane %v7435_v58, 3 }
 0x658   :  { %v5697_v54 = vpop.eup %5696  ;;  %v2858_v63 = vadd.f32 1.0, %v5695_v53  ;;  %5716 = vrcp.f32 %v2856_v40  ;;  %v2956_v53 = vrot.slane %v7437_v52, 2 }
 0x659   :  { %v5699_v32 = vpop.eup %5698  ;;  %v2859_v18 = vadd.f32 1.0, %v5697_v54  ;;  %5718 = vrcp.f32 %v2857_v12  ;;  %v2976_v12 = vrot.slane %v7429_v38, 3  ;;  %v2980_v38 = vrot.slane %v7437_v52, 3 }
 0x65a   :  { %v5701_v35 = vpop.eup %5700  ;;  %v2860_v41 = vadd.f32 1.0, %v5699_v32  ;;  %5720 = vrcp.f32 %v2858_v63  ;;  %v2957_v63 = vrot.slane %v7439_v21, 2  ;;  %v4912_v58 = vmul.f32 -1.442695, %v2978_v20 }
 0x65b   :  { %v5703_v7 = vpop.eup %5702  ;;  %v2861_v60 = vadd.f32 1.0, %v5701_v35  ;;  %5722 = vrcp.f32 %v2859_v18  ;;  %v2958_v18 = vrot.slane %v7443_v29, 2  ;;  %v2979_v35 = vrot.slane %v7431_v25, 3 }
 0x65c   :  { %v5705_v36 = vpop.eup %5704  ;;  %v2862_v6 = vadd.f32 1.0, %v5703_v7  ;;  %5724 = vrcp.f32 %v2860_v41  ;;  %v4909_v41 = vmul.f32 -1.442695, %v2975_v19 }
 0x65d   :  { %v5707_v62 = vpop.eup %5706  ;;  %5726 = vrcp.f32 %v2861_v60  ;;  %v2927_v1 = vadd.f32 1.0, %v5705_v36  ;;  %v4910_v60 = vmul.f32 -1.442695, %v2976_v12  ;;  %v4911_v36 = vmul.f32 -1.442695, %v2977_v27 }
 0x65e   :  { %v5709_v11 = vpop.eup %5708  ;;  %5728 = vrcp.f32 %v2862_v6  ;;  %v2928_v44 = vadd.f32 1.0, %v5707_v62 }
 0x65f   :  { %v5711_v39 = vpop.eup %5710  ;;  %5730 = vpow2.f32 %v4906_v57  ;;  %v2929_v45 = vadd.f32 1.0, %v5709_v11 }
 0x660   :  { %v5713_v5 = vpop.eup %5712  ;;  %5732 = vpow2.f32 %v4907_v31  ;;  %v2930_v23 = vadd.f32 1.0, %v5711_v39  ;;  %v2982_v31 = vrot.slane %v7443_v29, 3 }
 0x661   :  { %v7459_v33 = vpop.eup %5714  ;;  %5734 = vpow2.f32 %v4908_v34  ;;  %v2931_v37 = vadd.f32 1.0, %v5713_v5  ;;  %v4913_v34 = vmul.f32 -1.442695, %v2979_v35 }
 0x662   :  { %v7461_v49 = vpop.eup %5716  ;;  %5736 = vrcp.f32 %v2927_v1  ;;  %v4914_v1 = vmul.f32 -1.442695, %v2980_v38  ;;  %v4916_v29 = vmul.f32 -1.442695, %v2982_v31 }
 0x663   :  { %v7463_v43 = vpop.eup %5718  ;;  %5738 = vrcp.f32 %v2928_v44  ;;  %v4915_v44 = vmul.f32 -1.442695, %v2981_v17 }
 0x664   :  { %v7466_v22 = vpop.eup %5720  ;;  %5740 = vrcp.f32 %v2929_v45 }
 0x665   :  { %v7469_v46 = vpop.eup %5722  ;;  %5742 = vrcp.f32 %v2930_v23 }
 0x666   :  { %v7472_v9 = vpop.eup %5724  ;;  %5744 = vrcp.f32 %v2931_v37 }
 0x667   :  { %v7475_v59 = vpop.eup %5726  ;;  %5746 = vtanh.f32 %v2951_v51 }
 0x668   :  { %v7478_v30 = vpop.eup %5728  ;;  %5748 = vtanh.f32 %v2952_v2 }
 0x669   :  { %v5731_v61 = vpop.eup %5730  ;;  %5750 = vtanh.f32 %v2953_v56 }
 0x66a   :  { %v5733_v42 = vpop.eup %5732  ;;  %v2932_v8 = vadd.f32 1.0, %v5731_v61  ;;  %5752 = vtanh.f32 %v2954_v10 }
 0x66b   :  { %v5735_v55 = vpop.eup %5734  ;;  %v2933_v40 = vadd.f32 1.0, %v5733_v42  ;;  %5754 = vtanh.f32 %v2955_v28 }
 0x66c   :  { %v5737_v0 = vpop.eup %5736  ;;  %v2934_v54 = vadd.f32 1.0, %v5735_v55  ;;  %5756 = vrcp.f32 %v2932_v8 }
 0x66d   :  { %v5739_v32 = vpop.eup %5738  ;;  %5758 = vrcp.f32 %v2933_v40  ;;  %v3039_v25 = vmul.f32 %v5737_v0, %v7346_v50 }
 0x66e   :  { %v5741_v16 = vpop.eup %5740  ;;  %5760 = vrcp.f32 %v2934_v54  ;;  %v3040_v52 = vmul.f32 %v5739_v32, %v7349_v48 }
 0x66f   :  { %v5743_v7 = vpop.eup %5742  ;;  %5762 = vtanh.f32 %v2956_v53  ;;  %v3041_v21 = vmul.f32 %v5741_v16, %v7352_v24 }
 0x670   :  { %v5745_v57 = vpop.eup %5744  ;;  %5764 = vtanh.f32 %v2957_v63  ;;  %v3042_v23 = vmul.f32 %v5743_v7, %v7354_v4 }
 0x671   :  { %v5747_v6 = vpop.eup %5746  ;;  %5766 = vtanh.f32 %v2958_v18  ;;  %v3043_v51 = vmul.f32 %v5745_v57, %v7356_v14 }
 0x672   :  { %v5749_v62 = vpop.eup %5748  ;;  %5768 = vpow2.f32 %v4909_v41  ;;  %v3047_v5 = vmul.f32 %v5747_v6, %v7459_v33 }
 0x673   :  { %v5751_v11 = vpop.eup %5750  ;;  %5770 = vpow2.f32 %v4910_v60  ;;  %v3048_v37 = vmul.f32 %v5749_v62, %v7461_v49 }
 0x674   :  { %v5753_v39 = vpop.eup %5752  ;;  %5772 = vpow2.f32 %v4911_v36  ;;  %v3049_v48 = vmul.f32 %v5751_v11, %v7463_v43  ;;  %v7499_v2 = vadd.f32 %v3047_v5, %v3039_v25 }
 0x675   :  { %v5755_v45 = vpop.eup %5754  ;;  %5774 = vpow2.f32 %v4912_v58  ;;  %v3050_v24 = vmul.f32 %v5753_v39, %v7466_v22  ;;  %v7502_v33 = vadd.f32 %v3048_v37, %v3040_v52 }
 0x676   :  { %v5757_v50 = vpop.eup %5756  ;;  %5776 = vpow2.f32 %v4913_v34  ;;  %v3051_v4 = vmul.f32 %v5755_v45, %v7469_v46  ;;  %v7505_v28 = vadd.f32 %v3049_v48, %v3041_v21 }
 0x677   :  { %v5759_v56 = vpop.eup %5758  ;;  %5778 = vpow2.f32 %v4914_v1  ;;  %v7507_v61 = vadd.f32 %v3050_v24, %v3042_v23  ;;  %v3044_v12 = vmul.f32 %v5757_v50, %v7369_v3 }
 0x678   :  { %v5761_v10 = vpop.eup %5760  ;;  %5780 = vpow2.f32 %v4915_v44  ;;  %v7509_v43 = vadd.f32 %v3051_v4, %v3043_v51  ;;  %v3045_v63 = vmul.f32 %v5759_v56, %v7371_v15 }
 0x679   :  { %v5763_v49 = vpop.eup %5762  ;;  %5782 = vpow2.f32 %v4916_v29  ;;  %v3046_v20 = vmul.f32 %v5761_v10, %v7373_v26 }
 0x67a   :  { %v5765_v14 = vpop.eup %5764  ;;  %5784 = vtanh.f32 %v7499_v2  ;;  %v3052_v18 = vmul.f32 %v5763_v49, %v7472_v9 }
 0x67b   :  { %v5767_v42 = vpop.eup %5766  ;;  %5786 = vtanh.f32 %v7502_v33  ;;  %v3053_v41 = vmul.f32 %v5765_v14, %v7475_v59 }
 0x67c   :  { %v5769_v22 = vpop.eup %5768  ;;  %5788 = vtanh.f32 %v7505_v28  ;;  %v3054_v3 = vmul.f32 %v5767_v42, %v7478_v30  ;;  %v7522_v60 = vadd.f32 %v3052_v18, %v3044_v12 }
 0x67d   :  { %v5771_v8 = vpop.eup %5770  ;;  %v3015_v19 = vadd.f32 1.0, %v5769_v22  ;;  %5790 = vtanh.f32 %v7507_v61  ;;  %v7524_v17 = vadd.f32 %v3053_v41, %v3045_v63 }
 0x67e   :  { %v5773_v46 = vpop.eup %5772  ;;  %v3016_v55 = vadd.f32 1.0, %v5771_v8  ;;  %5792 = vtanh.f32 %v7509_v43  ;;  %v7526_v26 = vadd.f32 %v3054_v3, %v3046_v20 }
 0x67f   :  { %v5775_v40 = vpop.eup %5774  ;;  %v3017_v53 = vadd.f32 1.0, %v5773_v46  ;;  %5794 = vrcp.f32 %v3015_v19 }
 0x680   :  { %v5777_v0 = vpop.eup %5776  ;;  %v3018_v54 = vadd.f32 1.0, %v5775_v40  ;;  %5796 = vrcp.f32 %v3016_v55 }
 0x681   :  { %v5779_v27 = vpop.eup %5778  ;;  %v3019_v32 = vadd.f32 1.0, %v5777_v0  ;;  %5798 = vrcp.f32 %v3017_v53 }
 0x682   :  { %v5781_v16 = vpop.eup %5780  ;;  %v3020_v35 = vadd.f32 1.0, %v5779_v27  ;;  %5800 = vrcp.f32 %v3018_v54 }
 0x683   :  { %v5783_v7 = vpop.eup %5782  ;;  %v3021_v38 = vadd.f32 1.0, %v5781_v16  ;;  %5802 = vrcp.f32 %v3019_v32 }
 0x684   :  { %v5785_v15 = vpop.eup %5784  ;;  %v3022_v57 = vadd.f32 1.0, %v5783_v7  ;;  %5804 = vrcp.f32 %v3020_v35 }
 0x685   :  { %v5787_v9 = vpop.eup %5786  ;;  %5806 = vrcp.f32 %v3021_v38 }
 0x686   :  { %v5789_v36 = vpop.eup %5788  ;;  %5808 = vrcp.f32 %v3022_v57 }
 0x687   :  { %v5791_v6 = vpop.eup %5790  ;;  %5810 = vtanh.f32 %v7522_v60 }
 0x688   :  { %v5793_v59 = vpop.eup %5792  ;;  %5812 = vtanh.f32 %v7524_v17 }
 0x689   :  { %v5795_v30 = vpop.eup %5794  ;;  %5814 = vtanh.f32 %v7526_v26 }
 0x68a   :  { %v5797_v31 = vpop.eup %5796  ;;  %v3071_v58 = vmul.f32 %v5795_v30, %v5785_v15  ;;  %v7552_v30 = vld [vmem:[#allocation10 + $0x20] ss:$16 sps:$4 sm:$0xff]  }
 0x68b   :  { %v5799_v62 = vpop.eup %5798  ;;  %v3072_v34 = vmul.f32 %v5797_v31, %v5787_v9  ;;  %v7538_v9 = vld [vmem:[#allocation10] ss:$16 sps:$4 sm:$0xff]   ;;  %v7555_v31 = vld [vmem:[#allocation10 + $0x28] ss:$16 sps:$4 sm:$0xff]  }
 0x68c   :  { %v5801_v25 = vpop.eup %5800  ;;  %v3073_v11 = vmul.f32 %v5799_v62, %v5789_v36  ;;  %v3095_v39 = vpack.c.bf16 %v3071_v58, %v3071_v58  ;;  %v7541_v36 = vld [vmem:[#allocation10 + $0x8] ss:$16 sps:$4 sm:$0xff]   ;;  %v7558_v58 = vld [vmem:[#allocation10 + $0x44] ss:$16 sps:$4 sm:$0xff]   ;;  %v7561_v62 = vld [vmem:[#allocation10 + $0x4c] ss:$16 sps:$4 sm:$0xff]  }
 0x68d   :  { %v5803_v1 = vpop.eup %5802  ;;  %v3074_v52 = vmul.f32 %v5801_v25, %v5791_v6  ;;  %v3096_v44 = vpack.c.bf16 %v3072_v34, %v3072_v34  ;;  %v7544_v6 = vld [vmem:[#allocation10 + $0x24] ss:$16 sps:$4 sm:$0xff]   ;;  %v7564_v34 = vld [vmem:[#allocation10 + $0x40] ss:$16 sps:$4 sm:$0xff]   ;;  %v7567_v25 = vld [vmem:[#allocation10 + $0x48] ss:$16 sps:$4 sm:$0xff]  }
 0x68e   :  { %v5805_v21 = vpop.eup %5804  ;;  %v3075_v5 = vmul.f32 %v5803_v1, %v5793_v59  ;;  %v3097_v45 = vpack.c.bf16 %v3073_v11, %v3073_v11  ;;  %v3111_v24 = vunpack.c.l.b16 %v3095_v39  ;;  %v7547_v59 = vld [vmem:[#allocation10 + $0x2c] ss:$16 sps:$4 sm:$0xff]   ;;  %v7570_v11 = vld [vmem:[#allocation10 + $0x64] ss:$16 sps:$4 sm:$0xff]   ;;  %v7579_v39 = vld [vmem:[#allocation10 + $0x68] ss:$16 sps:$4 sm:$0xff]  }
 0x68f   :  { %v5807_v29 = vpop.eup %5806  ;;  %v3098_v23 = vpack.c.bf16 %v3074_v52, %v3074_v52  ;;  %v3112_v37 = vunpack.c.l.b16 %v3096_v44  ;;  %v7573_v1 = vld [vmem:[#allocation10 + $0x6c] ss:$16 sps:$4 sm:$0xff]   ;;  %v7576_v52 = vld [vmem:[#allocation10 + $0x60] ss:$16 sps:$4 sm:$0xff]   ;;  %v7582_v44 = vld [vmem:[#allocation10 + $0x84] ss:$16 sps:$4 sm:$0xff]  }
 0x690   :  { %v5809_v50 = vpop.eup %5808  ;;  %v3099_v51 = vpack.c.bf16 %v3075_v5, %v3075_v5  ;;  %v3113_v48 = vunpack.c.l.b16 %v3097_v45  ;;  %v7588_v5 = vld [vmem:[#allocation10 + $0x80] ss:$16 sps:$4 sm:$0xff]   ;;  %v7591_v45 = vld [vmem:[#allocation10 + $0x88] ss:$16 sps:$4 sm:$0xff]  }
 0x691   :  { %v5811_v56 = vpop.eup %5810  ;;  %v3114_v10 = vunpack.c.l.b16 %v3098_v23  ;;  %v3119_v4 = vrot.slane %v3112_v37, 7  ;;  %v7597_v23 = vld [vmem:[#allocation10 + $0xac] ss:$16 sps:$4 sm:$0xff]   ;;  %v7600_v37 = vld [vmem:[#allocation10 + $0xa0] ss:$16 sps:$4 sm:$0xff]  }
 0x692   :  { %v5813_v49 = vpop.eup %5812  ;;  %v3076_v14 = vmul.f32 %v5811_v56, %v5805_v21  ;;  %v3115_v42 = vunpack.c.l.b16 %v3099_v51  ;;  %v3121_v22 = vrot.slane %v3113_v48, 6  ;;  %v7585_v21 = vld [vmem:[#allocation10 + $0x8c] ss:$16 sps:$4 sm:$0xff]   ;;  %8117 = vst [vmem:[#allocation19_spill] sm:$0xff] %v7600_v37  ;;  %v7606_v51 = vld [vmem:[#allocation10 + $0xc4] ss:$16 sps:$4 sm:$0xff]  }
 0x693   :  { %v5815_v8 = vpop.eup %5814  ;;  %v3077_v19 = vmul.f32 %v5813_v49, %v5807_v29  ;;  %v3120_v46 = vsel %vm1217_vm0, %v3119_v4, %v3111_v24  ;;  %v3123_v55 = vrot.slane %v3114_v10, 5  ;;  %v7594_v29 = vld [vmem:[#allocation10 + $0xa4] ss:$16 sps:$4 sm:$0xff]   ;;  %8119 = vst [vmem:[#allocation21_spill] sm:$0xff] %v7606_v51  ;;  %v7609_v48 = vld [vmem:[#allocation10 + $0xcc] ss:$16 sps:$4 sm:$0xff]  }
 0x694   :  { %v3078_v40 = vmul.f32 %v5815_v8, %v5809_v50  ;;  %v3100_v53 = vpack.c.bf16 %v3076_v14, %v3076_v14  ;;  %v3122_v12 = vsel %vm1220_vm1, %v3121_v22, %v3120_v46  ;;  %v3125_v0 = vrot.slane %v3115_v42, 4  ;;  %v7603_v50 = vld [vmem:[#allocation10 + $0xa8] ss:$16 sps:$4 sm:$0xff]   ;;  %8120 = vst [vmem:[#allocation22_spill] sm:$0xff] %v7609_v48  ;;  %v7612_v56 = vld [vmem:[#allocation10 + $0xc0] ss:$16 sps:$4 sm:$0xff]  }
 0x695   :  { %v3101_v54 = vpack.c.bf16 %v3077_v19, %v3077_v19  ;;  %v3124_v63 = vsel %vm1223_vm2, %v3123_v55, %v3122_v12  ;;  %8118 = vst [vmem:[#allocation20_spill] sm:$0xff] %v7603_v50  ;;  %8121 = vst [vmem:[#allocation23_spill] sm:$0xff] %v7612_v56  ;;  %v7615_v24 = vld [vmem:[#allocation10 + $0xc8] ss:$16 sps:$4 sm:$0xff]   ;;  %v7618_v10 = vld [vmem:[#allocation10 + $0xe4] ss:$16 sps:$4 sm:$0xff]  }
 0x696   :  { %v3102_v27 = vpack.c.bf16 %v3078_v40, %v3078_v40  ;;  %v3116_v32 = vunpack.c.l.b16 %v3100_v53  ;;  %v3126_v18 = vsel %vm1226_vm3, %v3125_v0, %v3124_v63  ;;  %8122 = vst [vmem:[#allocation24_spill] sm:$0xff] %v7615_v24  ;;  %8123 = vst [vmem:[#allocation25_spill] sm:$0xff] %v7618_v10  ;;  %v7621_v4 = vld [vmem:[#allocation10 + $0xec] ss:$16 sps:$4 sm:$0xff]   ;;  %v7624_v49 = vld [vmem:[#allocation10 + $0xe0] ss:$16 sps:$4 sm:$0xff]  }
 0x697   :  { %v3117_v20 = vunpack.c.l.b16 %v3101_v54  ;;  %8124 = vst [vmem:[#allocation26_spill] sm:$0xff] %v7621_v4  ;;  %8125 = vst [vmem:[#allocation27_spill] sm:$0xff] %v7624_v49  ;;  %v7627_v14 = vld [vmem:[#allocation10 + $0xe8] ss:$16 sps:$4 sm:$0xff]   ;;  %v6294_v42 = vld [vmem:[#allocation10 + $0x4] ss:$16 sps:$4 sm:$0xff]  }
 0x698   :  { %v3118_v16 = vunpack.c.l.b16 %v3102_v27  ;;  %v3127_v35 = vrot.slane %v3116_v32, 3  ;;  %8126 = vst [vmem:[#allocation28_spill] sm:$0xff] %v7627_v14  ;;  %v6295_v22 = vld [vmem:[#allocation10 + $0xc] ss:$16 sps:$4 sm:$0xff]  }
 0x699   :  { %v3129_v41 = vrot.slane %v3117_v20, 2 }
 0x69a   :  { %v3128_v7 = vsel %vm1229_vm4, %v3127_v35, %v3126_v18  ;;  %v3131_v38 = vrot.slane %v3118_v16, 1 }
 0x69b   :  { %v3130_v3 = vsel %vm1232_vm5, %v3129_v41, %v3128_v7 }
 0x69c   :  { %v3132_v15 = vsel %vm1235_vm6, %v3131_v38, %v3130_v3 }
 0x69d   :  { %v3133_v57 = vpack.c.b16 %v3132_v15, %v3132_v15 }
 0x69f   :  { %3168 = vmatmul.mubr.bf16.vlgmr.msra.gmra.mrb[36].mxu0 %v3133_v57  ;;  %3209 = vmatmul.mubr.bf16.vlgmr.msra.gmra.mrb[36].mxu1 %v3133_v57 }
 0x6a0   :  { %3610 = vmatpush1.bf16.msra.mxu0 %v7538_v9  ;;  %3651 = vmatpush1.bf16.msra.mxu1 %v7541_v36 }
 0x6a1   :  { %3611 = vmatprep.subr.bf16.mxu0 %v7544_v6  ;;  %3652 = vmatprep.subr.bf16.mxu1 %v7547_v59 }
 0x6a2   :  { %3641 = vmatprep.mubr.bf16.mxu0 %v8079_v47  ;;  %3682 = vmatprep.mubr.bf16.mxu1 %v8079_v47 }
 0x6a4   :  { %3612 = vmatpush1.bf16.msra.mxu0 %v7552_v30  ;;  %3653 = vmatpush1.bf16.msra.mxu1 %v7555_v31 }
 0x6a5   :  { %3613 = vmatprep.subr.bf16.mxu0 %v7558_v58  ;;  %3654 = vmatprep.subr.bf16.mxu1 %v7561_v62 }
 0x6a8   :  { %3614 = vmatpush1.bf16.msra.mxu0 %v7564_v34  ;;  %3655 = vmatpush1.bf16.msra.mxu1 %v7567_v25 }
 0x6a9   :  { %3615 = vmatprep.subr.bf16.mxu0 %v7570_v11  ;;  %3656 = vmatprep.subr.bf16.mxu1 %v7573_v1 }
 0x6ac   :  { %3616 = vmatpush1.bf16.msra.mxu0 %v7576_v52  ;;  %3657 = vmatpush1.bf16.msra.mxu1 %v7579_v39 }
 0x6ad   :  { %3617 = vmatprep.subr.bf16.mxu0 %v7582_v44  ;;  %3658 = vmatprep.subr.bf16.mxu1 %v7585_v21 }
 0x6b0   :  { %3618 = vmatpush1.bf16.msra.mxu0 %v7588_v5  ;;  %3659 = vmatpush1.bf16.msra.mxu1 %v7591_v45 }
 0x6b1   :  { %3619 = vmatprep.subr.bf16.mxu0 %v7594_v29  ;;  %3660 = vmatprep.subr.bf16.mxu1 %v7597_v23 }
 0x6b4   :  { %3620 = vmatpush1.bf16.msra.mxu0 %v7600_v37  ;;  %3661 = vmatpush1.bf16.msra.mxu1 %v7603_v50 }
 0x6b5   :  { %3621 = vmatprep.subr.bf16.mxu0 %v7606_v51  ;;  %3662 = vmatprep.subr.bf16.mxu1 %v7609_v48 }
 0x6b8   :  { %3622 = vmatpush1.bf16.msra.mxu0 %v7612_v56  ;;  %3663 = vmatpush1.bf16.msra.mxu1 %v7615_v24 }
 0x6b9   :  { %3623 = vmatprep.subr.bf16.mxu0 %v7618_v10  ;;  %3664 = vmatprep.subr.bf16.mxu1 %v7621_v4 }
 0x6bc   :  { %3624 = vmatpush1.bf16.msra.mxu0 %v7624_v49  ;;  %3665 = vmatpush1.bf16.msra.mxu1 %v7627_v14 }
 0x6bd   :  { %4083 = vmatprep.subr.bf16.mxu0 %v6294_v42  ;;  %4124 = vmatprep.subr.bf16.mxu1 %v6295_v22 }
 0x772   :  { %v3169_v8 = vpop.f32.mrb[36].mxu0  ;;  %v3210_v19 = vpop.f32.mrb[36].mxu1 }
 0x773   :  { %v3171_v46 = vpop.f32.mrb[37].mxu0  ;;  %v3212_v55 = vpop.f32.mrb[37].mxu1 }
 0x774   :  { %v3221_v40 = vcombine.low %v3169_v8, %v3171_v46  ;;  %v3222_v53 = vcombine.high %v3169_v8, %v3171_v46  ;;  %v3223_v12 = vcombine.low %v3210_v19, %v3212_v55  ;;  %v3224_v0 = vcombine.high %v3210_v19, %v3212_v55  ;;  %v3173_v54 = vpop.f32.mrb[38].mxu0  ;;  %v3214_v63 = vpop.f32.mrb[38].mxu1  ;;  %v3080_v8 = vld [vmem:[#allocation2 + $0x5] ss:$8 sm:$0xf] }
 0x775   :  { %v3174_v27 = vpop.f32.mrb[39].mxu0  ;;  %v3215_v32 = vpop.f32.mrb[39].mxu1  ;;  %v3082_v19 = vld [vmem:[#allocation2 + $0x25] ss:$8 sm:$0xf] }
 0x776   :  { %v3231_v18 = vrot.slane %v3221_v40, %v8116_v13  ;;  %v3238_v20 = vrot.slane %v3222_v53, %v8116_v13  ;;  %v3245_v16 = vrot.slane %v3223_v12, %v8116_v13  ;;  %v3252_v35 = vrot.slane %v3224_v0, %v8116_v13  ;;  %v3084_v46 = vld [vmem:[#allocation2 + $0x45] ss:$8 sm:$0xf] }
 0x777   :  { %v3088_v55 = vld [vmem:[#allocation2 + $0x85] ss:$8 sm:$0xf] }
 0x778   :  { %v3253_v41 = vcombine.low %v3231_v18, %v3245_v16  ;;  %v3254_v7 = vcombine.high %v3231_v18, %v3245_v16  ;;  %v3255_v38 = vcombine.low %v3238_v20, %v3252_v35  ;;  %v3256_v3 = vcombine.high %v3238_v20, %v3252_v35  ;;  %v3086_v54 = vld [vmem:[#allocation2 + $0x65] ss:$8 sm:$0xf] }
 0x779   :  { %v3090_v63 = vld [vmem:[#allocation2 + $0xa5] ss:$8 sm:$0xf] }
 0x77a   :  { %v3263_v15 = vrot.slane %v3253_v41, %v8116_v13  ;;  %v3270_v57 = vrot.slane %v3255_v38, %v8116_v13  ;;  %v3277_v42 = vrot.slane %v3254_v7, %v8116_v13  ;;  %v3284_v22 = vrot.slane %v3256_v3, %v8116_v13  ;;  %v3092_v20 = vld [vmem:[#allocation2 + $0xc5] ss:$8 sm:$0xf] }
 0x77b   :  { %v3094_v16 = vld [vmem:[#allocation2 + $0xe5] ss:$8 sm:$0xf] }
 0x77c   :  { %v3285_v40 = vcombine.high %v3263_v15, %v3263_v15  ;;  %v3286_v53 = vcombine.high %v3270_v57, %v3270_v57  ;;  %v3287_v12 = vcombine.high %v3277_v42, %v3277_v42  ;;  %v3288_v0 = vcombine.high %v3284_v22, %v3284_v22 }
 0x77d   :  { %v7638_v27 = vadd.f32 %v3263_v15, %v3080_v8  ;;  %v7640_v32 = vadd.f32 %v3277_v42, %v3082_v19  ;;  %v7642_v18 = vadd.f32 %v3270_v57, %v3088_v55  ;;  %v7648_v7 = vadd.f32 %v3284_v22, %v3090_v63 }
 0x77e   :  { %v7644_v35 = vadd.f32 %v3285_v40, %v3084_v46  ;;  %v7646_v41 = vadd.f32 %v3287_v12, %v3086_v54  ;;  %v7650_v38 = vadd.f32 %v3286_v53, %v3092_v20  ;;  %v7654_v15 = vadd.f32 %v3288_v0, %v3094_v16 }
 0x77f   :  { %v4917_v3 = vmul.f32 -1.442695, %v7638_v27  ;;  %v4918_v13 = vmul.f32 -1.442695, %v7640_v32  ;;  %v4921_v8 = vmul.f32 -1.442695, %v7642_v18 }
 0x780   :  { %v4919_v42 = vmul.f32 -1.442695, %v7644_v35  ;;  %v4920_v57 = vmul.f32 -1.442695, %v7646_v41  ;;  %v3361_v19 = vrot.slane %v7638_v27, 1  ;;  %v3362_v46 = vrot.slane %v7640_v32, 1 }
 0x781   :  { %5816 = vpow2.f32 %v4917_v3  ;;  %v4922_v22 = vmul.f32 -1.442695, %v7648_v7  ;;  %v4923_v55 = vmul.f32 -1.442695, %v7650_v38  ;;  %v3363_v40 = vrot.slane %v7644_v35, 1 }
 0x782   :  { %5818 = vpow2.f32 %v4918_v13  ;;  %v4924_v53 = vmul.f32 -1.442695, %v7654_v15  ;;  %v3364_v12 = vrot.slane %v7646_v41, 1  ;;  %v3365_v0 = vrot.slane %v7642_v18, 1 }
 0x783   :  { %5820 = vpow2.f32 %v4919_v42  ;;  %v4925_v54 = vmul.f32 -1.442695, %v3361_v19  ;;  %v4926_v13 = vmul.f32 -1.442695, %v3362_v46  ;;  %v4927_v63 = vmul.f32 -1.442695, %v3363_v40 }
 0x784   :  { %5822 = vpow2.f32 %v4920_v57  ;;  %v4928_v20 = vmul.f32 -1.442695, %v3364_v12  ;;  %v4929_v16 = vmul.f32 -1.442695, %v3365_v0  ;;  %v3366_v19 = vrot.slane %v7648_v7, 1 }
 0x785   :  { %5824 = vpow2.f32 %v4921_v8  ;;  %v3368_v12 = vrot.slane %v7654_v15, 1  ;;  %v3456_v50 = vrot.slane %v7654_v15, 3 }
 0x786   :  { %5826 = vpow2.f32 %v4922_v22 }
 0x787   :  { %5828 = vpow2.f32 %v4923_v55  ;;  %v3367_v55 = vrot.slane %v7650_v38, 1 }
 0x788   :  { %5830 = vpow2.f32 %v4924_v53 }
 0x789   :  { %5832 = vpow2.f32 %v4925_v54 }
 0x78a   :  { %5834 = vpow2.f32 %v4926_v13 }
 0x78b   :  { %v5817_v3 = vpop.eup %5816  ;;  %5836 = vpow2.f32 %v4927_v63 }
 0x78c   :  { %v5819_v42 = vpop.eup %5818  ;;  %v3329_v57 = vadd.f32 1.0, %v5817_v3  ;;  %5838 = vpow2.f32 %v4928_v20  ;;  %v4931_v3 = vmul.f32 -1.442695, %v3367_v55 }
 0x78d   :  { %v5821_v14 = vpop.eup %5820  ;;  %v3330_v49 = vadd.f32 1.0, %v5819_v42  ;;  %5840 = vpow2.f32 %v4929_v16 }
 0x78e   :  { %v5823_v8 = vpop.eup %5822  ;;  %v3331_v4 = vadd.f32 1.0, %v5821_v14  ;;  %5842 = vrcp.f32 %v3329_v57  ;;  %v4930_v14 = vmul.f32 -1.442695, %v3366_v19 }
 0x78f   :  { %v5825_v22 = vpop.eup %5824  ;;  %v3332_v46 = vadd.f32 1.0, %v5823_v8  ;;  %5844 = vrcp.f32 %v3330_v49  ;;  %v4932_v49 = vmul.f32 -1.442695, %v3368_v12  ;;  %v3425_v12 = vrot.slane %v7638_v27, 2 }
 0x790   :  { %v5827_v40 = vpop.eup %5826  ;;  %v3333_v53 = vadd.f32 1.0, %v5825_v22  ;;  %5846 = vrcp.f32 %v3331_v4 }
 0x791   :  { %v5829_v0 = vpop.eup %5828  ;;  %v3334_v54 = vadd.f32 1.0, %v5827_v40  ;;  %5848 = vrcp.f32 %v3332_v46 }
 0x792   :  { %v5831_v13 = vpop.eup %5830  ;;  %v3335_v63 = vadd.f32 1.0, %v5829_v0  ;;  %5850 = vrcp.f32 %v3333_v53 }
 0x793   :  { %v5833_v20 = vpop.eup %5832  ;;  %v3336_v16 = vadd.f32 1.0, %v5831_v13  ;;  %5852 = vrcp.f32 %v3334_v54  ;;  %v3426_v13 = vrot.slane %v7640_v32, 2 }
 0x794   :  { %v5835_v42 = vpop.eup %5834  ;;  %5854 = vrcp.f32 %v3335_v63  ;;  %v3401_v8 = vadd.f32 1.0, %v5833_v20 }
 0x795   :  { %v5837_v57 = vpop.eup %5836  ;;  %5856 = vrcp.f32 %v3336_v16  ;;  %v3402_v22 = vadd.f32 1.0, %v5835_v42 }
 0x796   :  { %v5839_v4 = vpop.eup %5838  ;;  %5858 = vpow2.f32 %v4930_v14  ;;  %v3403_v46 = vadd.f32 1.0, %v5837_v57  ;;  %v3427_v14 = vrot.slane %v7644_v35, 2 }
 0x797   :  { %v5841_v10 = vpop.eup %5840  ;;  %5860 = vpow2.f32 %v4931_v3  ;;  %v3404_v19 = vadd.f32 1.0, %v5839_v4  ;;  %v3429_v3 = vrot.slane %v7642_v18, 2  ;;  %v3449_v4 = vrot.slane %v7638_v27, 3 }
 0x798   :  { %v7670_v40 = vpop.eup %5842  ;;  %5862 = vpow2.f32 %v4932_v49  ;;  %v3405_v0 = vadd.f32 1.0, %v5841_v10  ;;  %v3428_v10 = vrot.slane %v7646_v41, 2  ;;  %v3452_v27 = vrot.slane %v7646_v41, 3 }
 0x799   :  { %v7672_v53 = vpop.eup %5844  ;;  %5864 = vrcp.f32 %v3401_v8 }
 0x79a   :  { %v7674_v55 = vpop.eup %5846  ;;  %5866 = vrcp.f32 %v3402_v22  ;;  %v4936_v41 = vmul.f32 -1.442695, %v3452_v27 }
 0x79b   :  { %v7677_v54 = vpop.eup %5848  ;;  %5868 = vrcp.f32 %v3403_v46 }
 0x79c   :  { %v7680_v63 = vpop.eup %5850  ;;  %5870 = vrcp.f32 %v3404_v19  ;;  %v3430_v19 = vrot.slane %v7648_v7, 2 }
 0x79d   :  { %v7683_v20 = vpop.eup %5852  ;;  %5872 = vrcp.f32 %v3405_v0  ;;  %v3450_v0 = vrot.slane %v7640_v32, 3  ;;  %v3454_v32 = vrot.slane %v7648_v7, 3 }
 0x79e   :  { %v7686_v16 = vpop.eup %5854  ;;  %5874 = vtanh.f32 %v3425_v12  ;;  %v3431_v12 = vrot.slane %v7650_v38, 2 }
 0x79f   :  { %v7689_v42 = vpop.eup %5856  ;;  %5876 = vtanh.f32 %v3426_v13  ;;  %v3451_v13 = vrot.slane %v7644_v35, 3  ;;  %v3455_v35 = vrot.slane %v7650_v38, 3 }
 0x7a0   :  { %v5859_v49 = vpop.eup %5858  ;;  %5878 = vtanh.f32 %v3427_v14 }
 0x7a1   :  { %v5861_v57 = vpop.eup %5860  ;;  %v3406_v8 = vadd.f32 1.0, %v5859_v49  ;;  %5880 = vtanh.f32 %v3428_v10  ;;  %v3432_v10 = vrot.slane %v7654_v15, 2  ;;  %v4935_v51 = vmul.f32 -1.442695, %v3451_v13 }
 0x7a2   :  { %v5863_v22 = vpop.eup %5862  ;;  %v3407_v46 = vadd.f32 1.0, %v5861_v57  ;;  %5882 = vtanh.f32 %v3429_v3  ;;  %v3453_v57 = vrot.slane %v7642_v18, 3  ;;  %v4933_v3 = vmul.f32 -1.442695, %v3449_v4 }
 0x7a3   :  { %v5865_v24 = vpop.eup %5864  ;;  %v3408_v56 = vadd.f32 1.0, %v5863_v22  ;;  %5884 = vrcp.f32 %v3406_v8  ;;  %v4934_v8 = vmul.f32 -1.442695, %v3450_v0  ;;  %v4940_v15 = vmul.f32 -1.442695, %v3456_v50 }
 0x7a4   :  { %v5867_v14 = vpop.eup %5866  ;;  %5886 = vrcp.f32 %v3407_v46  ;;  %v3513_v18 = vmul.f32 %v5865_v24, %v7499_v2 }
 0x7a5   :  { %v5869_v49 = vpop.eup %5868  ;;  %5888 = vrcp.f32 %v3408_v56  ;;  %v4937_v56 = vmul.f32 -1.442695, %v3453_v57  ;;  %v3514_v7 = vmul.f32 %v5867_v14, %v7502_v33 }
 0x7a6   :  { %v5871_v48 = vpop.eup %5870  ;;  %5890 = vtanh.f32 %v3430_v19  ;;  %v4938_v19 = vmul.f32 -1.442695, %v3454_v32  ;;  %v3515_v38 = vmul.f32 %v5869_v49, %v7505_v28 }
 0x7a7   :  { %v5873_v22 = vpop.eup %5872  ;;  %5892 = vtanh.f32 %v3431_v12  ;;  %v4939_v12 = vmul.f32 -1.442695, %v3455_v35  ;;  %v3516_v27 = vmul.f32 %v5871_v48, %v7507_v61 }
 0x7a8   :  { %v5875_v46 = vpop.eup %5874  ;;  %5894 = vtanh.f32 %v3432_v10  ;;  %v3517_v24 = vmul.f32 %v5873_v22, %v7509_v43 }
 0x7a9   :  { %v5877_v37 = vpop.eup %5876  ;;  %5896 = vpow2.f32 %v4933_v3  ;;  %v3521_v13 = vmul.f32 %v5875_v46, %v7670_v40 }
 0x7aa   :  { %v5879_v4 = vpop.eup %5878  ;;  %5898 = vpow2.f32 %v4934_v8  ;;  %v3522_v57 = vmul.f32 %v5877_v37, %v7672_v53 }
 0x7ab   :  { %v5881_v0 = vpop.eup %5880  ;;  %5900 = vpow2.f32 %v4935_v51  ;;  %v3523_v33 = vmul.f32 %v5879_v4, %v7674_v55  ;;  %v7710_v14 = vadd.f32 %v3521_v13, %v3513_v18 }
 0x7ac   :  { %v5883_v10 = vpop.eup %5882  ;;  %5902 = vpow2.f32 %v4936_v41  ;;  %v3524_v28 = vmul.f32 %v5881_v0, %v7677_v54  ;;  %v7713_v40 = vadd.f32 %v3522_v57, %v3514_v7 }
 0x7ad   :  { %v5885_v2 = vpop.eup %5884  ;;  %5904 = vpow2.f32 %v4937_v56  ;;  %v3525_v61 = vmul.f32 %v5883_v10, %v7680_v63  ;;  %v7716_v50 = vadd.f32 %v3523_v33, %v3515_v38 }
 0x7ae   :  { %v5887_v51 = vpop.eup %5886  ;;  %5906 = vpow2.f32 %v4938_v19  ;;  %v7718_v48 = vadd.f32 %v3524_v28, %v3516_v27  ;;  %v3518_v46 = vmul.f32 %v5885_v2, %v7522_v60 }
 0x7af   :  { %v5889_v49 = vpop.eup %5888  ;;  %5908 = vpow2.f32 %v4939_v12  ;;  %v7720_v53 = vadd.f32 %v3525_v61, %v3517_v24  ;;  %v3519_v18 = vmul.f32 %v5887_v51, %v7524_v17 }
 0x7b0   :  { %v5891_v37 = vpop.eup %5890  ;;  %5910 = vpow2.f32 %v4940_v15  ;;  %v3520_v0 = vmul.f32 %v5889_v49, %v7526_v26 }
 0x7b1   :  { %v5893_v43 = vpop.eup %5892  ;;  %5912 = vtanh.f32 %v7710_v14  ;;  %v3526_v7 = vmul.f32 %v5891_v37, %v7683_v20 }
 0x7b2   :  { %v5895_v55 = vpop.eup %5894  ;;  %5914 = vtanh.f32 %v7713_v40  ;;  %v3527_v13 = vmul.f32 %v5893_v43, %v7686_v16 }
 0x7b3   :  { %v5897_v54 = vpop.eup %5896  ;;  %5916 = vtanh.f32 %v7716_v50  ;;  %v3528_v60 = vmul.f32 %v5895_v55, %v7689_v42  ;;  %v7733_v27 = vadd.f32 %v3526_v7, %v3518_v46 }
 0x7b4   :  { %v5899_v3 = vpop.eup %5898  ;;  %v3489_v32 = vadd.f32 1.0, %v5897_v54  ;;  %5918 = vtanh.f32 %v7718_v48  ;;  %v7735_v2 = vadd.f32 %v3527_v13, %v3519_v18 }
 0x7b5   :  { %v5901_v63 = vpop.eup %5900  ;;  %v3490_v8 = vadd.f32 1.0, %v5899_v3  ;;  %5920 = vtanh.f32 %v7720_v53  ;;  %v7737_v26 = vadd.f32 %v3528_v60, %v3520_v0 }
 0x7b6   :  { %v5903_v22 = vpop.eup %5902  ;;  %v3491_v35 = vadd.f32 1.0, %v5901_v63  ;;  %5922 = vrcp.f32 %v3489_v32 }
 0x7b7   :  { %v5905_v41 = vpop.eup %5904  ;;  %v3492_v56 = vadd.f32 1.0, %v5903_v22  ;;  %5924 = vrcp.f32 %v3490_v8 }
 0x7b8   :  { %v5907_v4 = vpop.eup %5906  ;;  %v3493_v19 = vadd.f32 1.0, %v5905_v41  ;;  %5926 = vrcp.f32 %v3491_v35 }
 0x7b9   :  { %v5909_v12 = vpop.eup %5908  ;;  %v3494_v38 = vadd.f32 1.0, %v5907_v4  ;;  %5928 = vrcp.f32 %v3492_v56 }
 0x7ba   :  { %v5911_v10 = vpop.eup %5910  ;;  %v3495_v15 = vadd.f32 1.0, %v5909_v12  ;;  %5930 = vrcp.f32 %v3493_v19 }
 0x7bb   :  { %v5913_v17 = vpop.eup %5912  ;;  %v3496_v57 = vadd.f32 1.0, %v5911_v10  ;;  %5932 = vrcp.f32 %v3494_v38 }
 0x7bc   :  { %v5915_v20 = vpop.eup %5914  ;;  %5934 = vrcp.f32 %v3495_v15 }
 0x7bd   :  { %v5917_v24 = vpop.eup %5916  ;;  %5936 = vrcp.f32 %v3496_v57 }
 0x7be   :  { %v5919_v33 = vpop.eup %5918  ;;  %5938 = vtanh.f32 %v7733_v27 }
 0x7bf   :  { %v5921_v16 = vpop.eup %5920  ;;  %5940 = vtanh.f32 %v7735_v2 }
 0x7c0   :  { %v5923_v42 = vpop.eup %5922  ;;  %5942 = vtanh.f32 %v7737_v26 }
 0x7c1   :  { %v5925_v51 = vpop.eup %5924  ;;  %v3545_v28 = vmul.f32 %v5923_v42, %v5913_v17 }
 0x7c2   :  { %v5927_v49 = vpop.eup %5926  ;;  %v3546_v61 = vmul.f32 %v5925_v51, %v5915_v20 }
 0x7c3   :  { %v5929_v37 = vpop.eup %5928  ;;  %v3547_v43 = vmul.f32 %v5927_v49, %v5917_v24  ;;  %v3569_v3 = vpack.c.bf16 %v3545_v28, %v3545_v28 }
 0x7c4   :  { %v5931_v55 = vpop.eup %5930  ;;  %v3548_v54 = vmul.f32 %v5929_v37, %v5919_v33  ;;  %v3570_v32 = vpack.c.bf16 %v3546_v61, %v3546_v61 }
 0x7c5   :  { %v5933_v63 = vpop.eup %5932  ;;  %v3549_v8 = vmul.f32 %v5931_v55, %v5921_v16  ;;  %v3571_v22 = vpack.c.bf16 %v3547_v43, %v3547_v43  ;;  %v3585_v7 = vunpack.c.l.b16 %v3569_v3 }
 0x7c6   :  { %v5935_v35 = vpop.eup %5934  ;;  %v3572_v46 = vpack.c.bf16 %v3548_v54, %v3548_v54  ;;  %v3586_v41 = vunpack.c.l.b16 %v3570_v32 }
 0x7c7   :  { %v5937_v56 = vpop.eup %5936  ;;  %v3573_v18 = vpack.c.bf16 %v3549_v8, %v3549_v8  ;;  %v3587_v4 = vunpack.c.l.b16 %v3571_v22 }
 0x7c8   :  { %v5939_v19 = vpop.eup %5938  ;;  %v3588_v0 = vunpack.c.l.b16 %v3572_v46  ;;  %v3593_v12 = vrot.slane %v3586_v41, 7 }
 0x7c9   :  { %v5941_v38 = vpop.eup %5940  ;;  %v3550_v13 = vmul.f32 %v5939_v19, %v5933_v63  ;;  %v3589_v10 = vunpack.c.l.b16 %v3573_v18  ;;  %v3595_v15 = vrot.slane %v3587_v4, 6 }
 0x7ca   :  { %v5943_v60 = vpop.eup %5942  ;;  %v3551_v17 = vmul.f32 %v5941_v38, %v5935_v35  ;;  %v3594_v57 = vsel %vm1217_vm0, %v3593_v12, %v3585_v7  ;;  %v3597_v20 = vrot.slane %v3588_v0, 5 }
 0x7cb   :  { %v3552_v24 = vmul.f32 %v5943_v60, %v5937_v56  ;;  %v3574_v33 = vpack.c.bf16 %v3550_v13, %v3550_v13  ;;  %v3596_v16 = vsel %vm1220_vm1, %v3595_v15, %v3594_v57  ;;  %v3599_v42 = vrot.slane %v3589_v10, 4  ;;  %v8138_v56 = vld [vmem:[#allocation18_spill] sm:$0xff] }
 0x7cc   :  { %v3575_v51 = vpack.c.bf16 %v3551_v17, %v3551_v17  ;;  %v3598_v28 = vsel %vm1223_vm2, %v3597_v20, %v3596_v16  ;;  %v3554_v57 = vld [vmem:[#allocation2 + $0x6] ss:$8 sm:$0xf] }
 0x7cd   :  { %v3576_v49 = vpack.c.bf16 %v3552_v24, %v3552_v24  ;;  %v3590_v61 = vunpack.c.l.b16 %v3574_v33  ;;  %v3600_v37 = vsel %vm1226_vm3, %v3599_v42, %v3598_v28  ;;  %v3556_v20 = vld [vmem:[#allocation2 + $0x26] ss:$8 sm:$0xf] }
 0x7ce   :  { %v3591_v43 = vunpack.c.l.b16 %v3575_v51  ;;  %v3558_v24 = vld [vmem:[#allocation2 + $0x46] ss:$8 sm:$0xf] }
 0x7cf   :  { %v3592_v55 = vunpack.c.l.b16 %v3576_v49  ;;  %v3601_v54 = vrot.slane %v3590_v61, 3  ;;  %v3562_v33 = vld [vmem:[#allocation2 + $0x86] ss:$8 sm:$0xf] }
 0x7d0   :  { %v3603_v3 = vrot.slane %v3591_v43, 2  ;;  %v3560_v49 = vld [vmem:[#allocation2 + $0x66] ss:$8 sm:$0xf] }
 0x7d1   :  { %v3602_v32 = vsel %vm1229_vm4, %v3601_v54, %v3600_v37  ;;  %v3605_v63 = vrot.slane %v3592_v55, 1  ;;  %v3564_v61 = vld [vmem:[#allocation2 + $0xa6] ss:$8 sm:$0xf] }
 0x7d2   :  { %v3604_v8 = vsel %vm1232_vm5, %v3603_v3, %v3602_v32  ;;  %v3566_v54 = vld [vmem:[#allocation2 + $0xc6] ss:$8 sm:$0xf] }
 0x7d3   :  { %v3606_v22 = vsel %vm1235_vm6, %v3605_v63, %v3604_v8  ;;  %v3568_v3 = vld [vmem:[#allocation2 + $0xe6] ss:$8 sm:$0xf] }
 0x7d4   :  { %v3607_v35 = vpack.c.b16 %v3606_v22, %v3606_v22 }
 0x7d6   :  { %3642 = vmatmul.mubr.bf16.vlgmr.msra.gmra.mrb[40].mxu0 %v3607_v35  ;;  %3683 = vmatmul.mubr.bf16.vlgmr.msra.gmra.mrb[40].mxu1 %v3607_v35 }
 0x7d7   :  { %4084 = vmatpush1.bf16.msra.mxu0 %v7538_v9  ;;  %4125 = vmatpush1.bf16.msra.mxu1 %v7541_v36  ;;  %v8128_v9 = vld [vmem:[#allocation20_spill] sm:$0xff]  ;;  %v8129_v36 = vld [vmem:[#allocation21_spill] sm:$0xff] }
 0x7d8   :  { %4085 = vmatprep.subr.bf16.mxu0 %v7544_v6  ;;  %4126 = vmatprep.subr.bf16.mxu1 %v7547_v59  ;;  %v8130_v6 = vld [vmem:[#allocation22_spill] sm:$0xff]  ;;  %v8131_v59 = vld [vmem:[#allocation23_spill] sm:$0xff] }
 0x7d9   :  { %4115 = vmatprep.mubr.bf16.mxu0 %v8079_v47  ;;  %4156 = vmatprep.mubr.bf16.mxu1 %v8079_v47  ;;  %v8127_v47 = vld [vmem:[#allocation19_spill] sm:$0xff] }
 0x7db   :  { %4086 = vmatpush1.bf16.msra.mxu0 %v7552_v30  ;;  %4127 = vmatpush1.bf16.msra.mxu1 %v7555_v31  ;;  %v8132_v30 = vld [vmem:[#allocation24_spill] sm:$0xff]  ;;  %v8133_v31 = vld [vmem:[#allocation25_spill] sm:$0xff] }
 0x7dc   :  { %4087 = vmatprep.subr.bf16.mxu0 %v7558_v58  ;;  %4128 = vmatprep.subr.bf16.mxu1 %v7561_v62  ;;  %v8134_v58 = vld [vmem:[#allocation26_spill] sm:$0xff]  ;;  %v8135_v62 = vld [vmem:[#allocation27_spill] sm:$0xff] }
 0x7df   :  { %4088 = vmatpush1.bf16.msra.mxu0 %v7564_v34  ;;  %4129 = vmatpush1.bf16.msra.mxu1 %v7567_v25  ;;  %v8136_v34 = vld [vmem:[#allocation28_spill] sm:$0xff]  ;;  %v8137_v25 = vmov 0.0|0.0  }
 0x7e0   :  { %4089 = vmatprep.subr.bf16.mxu0 %v7570_v11  ;;  %4130 = vmatprep.subr.bf16.mxu1 %v7573_v1 }
 0x7e3   :  { %4090 = vmatpush1.bf16.msra.mxu0 %v7576_v52  ;;  %4131 = vmatpush1.bf16.msra.mxu1 %v7579_v39 }
 0x7e4   :  { %4091 = vmatprep.subr.bf16.mxu0 %v7582_v44  ;;  %4132 = vmatprep.subr.bf16.mxu1 %v7585_v21 }
 0x7e7   :  { %4092 = vmatpush1.bf16.msra.mxu0 %v7588_v5  ;;  %4133 = vmatpush1.bf16.msra.mxu1 %v7591_v45 }
 0x7e8   :  { %4093 = vmatprep.subr.bf16.mxu0 %v7594_v29  ;;  %4134 = vmatprep.subr.bf16.mxu1 %v7597_v23 }
 0x7eb   :  { %4094 = vmatpush1.bf16.msra.mxu0 %v8127_v47  ;;  %4135 = vmatpush1.bf16.msra.mxu1 %v8128_v9 }
 0x7ec   :  { %4095 = vmatprep.subr.bf16.mxu0 %v8129_v36  ;;  %4136 = vmatprep.subr.bf16.mxu1 %v8130_v6 }
 0x7ef   :  { %4096 = vmatpush1.bf16.msra.mxu0 %v8131_v59  ;;  %4137 = vmatpush1.bf16.msra.mxu1 %v8132_v30 }
 0x7f0   :  { %4097 = vmatprep.subr.bf16.mxu0 %v8133_v31  ;;  %4138 = vmatprep.subr.bf16.mxu1 %v8134_v58 }
 0x7f3   :  { %4098 = vmatpush1.bf16.msra.mxu0 %v8135_v62  ;;  %4139 = vmatpush1.bf16.msra.mxu1 %v8136_v34 }
 0x7f4   :  { %5042 = vmatprep.subr.bf16.mxu0 %v8137_v25 }
 0x8a9   :  { %v3643_v11 = vpop.f32.mrb[40].mxu0  ;;  %v3684_v1 = vpop.f32.mrb[40].mxu1 }
 0x8aa   :  { %v3645_v52 = vpop.f32.mrb[41].mxu0  ;;  %v3686_v39 = vpop.f32.mrb[41].mxu1 }
 0x8ab   :  { %v3695_v44 = vcombine.low %v3643_v11, %v3645_v52  ;;  %v3696_v21 = vcombine.high %v3643_v11, %v3645_v52  ;;  %v3697_v5 = vcombine.low %v3684_v1, %v3686_v39  ;;  %v3698_v45 = vcombine.high %v3684_v1, %v3686_v39  ;;  %v3647_v29 = vpop.f32.mrb[42].mxu0  ;;  %v3688_v23 = vpop.f32.mrb[42].mxu1 }
 0x8ac   :  { %v3648_v46 = vpop.f32.mrb[43].mxu0  ;;  %v3689_v41 = vpop.f32.mrb[43].mxu1 }
 0x8ad   :  { %v3705_v18 = vrot.slane %v3695_v44, %v8138_v56  ;;  %v3712_v4 = vrot.slane %v3696_v21, %v8138_v56  ;;  %v3719_v19 = vrot.slane %v3697_v5, %v8138_v56  ;;  %v3726_v7 = vrot.slane %v3698_v45, %v8138_v56 }
 0x8af   :  { %v3727_v0 = vcombine.low %v3705_v18, %v3719_v19  ;;  %v3728_v12 = vcombine.high %v3705_v18, %v3719_v19  ;;  %v3729_v38 = vcombine.low %v3712_v4, %v3726_v7  ;;  %v3730_v13 = vcombine.high %v3712_v4, %v3726_v7 }
 0x8b1   :  { %v3737_v10 = vrot.slane %v3727_v0, %v8138_v56  ;;  %v3744_v15 = vrot.slane %v3729_v38, %v8138_v56  ;;  %v3751_v60 = vrot.slane %v3728_v12, %v8138_v56  ;;  %v3758_v17 = vrot.slane %v3730_v13, %v8138_v56 }
 0x8b3   :  { %v3759_v16 = vcombine.high %v3737_v10, %v3737_v10  ;;  %v3760_v42 = vcombine.high %v3744_v15, %v3744_v15  ;;  %v3761_v51 = vcombine.high %v3751_v60, %v3751_v60  ;;  %v3762_v28 = vcombine.high %v3758_v17, %v3758_v17 }
 0x8b4   :  { %v7790_v37 = vadd.f32 %v3737_v10, %v3554_v57  ;;  %v7792_v43 = vadd.f32 %v3751_v60, %v3556_v20  ;;  %v7794_v55 = vadd.f32 %v3744_v15, %v3562_v33  ;;  %v7800_v8 = vadd.f32 %v3758_v17, %v3564_v61 }
 0x8b5   :  { %v7796_v32 = vadd.f32 %v3759_v16, %v3558_v24  ;;  %v7798_v63 = vadd.f32 %v3761_v51, %v3560_v49  ;;  %v7802_v22 = vadd.f32 %v3760_v42, %v3566_v54  ;;  %v7806_v9 = vadd.f32 %v3762_v28, %v3568_v3 }
 0x8b6   :  { %v4941_v35 = vmul.f32 -1.442695, %v7790_v37  ;;  %v4942_v47 = vmul.f32 -1.442695, %v7792_v43  ;;  %v4945_v59 = vmul.f32 -1.442695, %v7794_v55 }
 0x8b7   :  { %v4943_v36 = vmul.f32 -1.442695, %v7796_v32  ;;  %v4944_v6 = vmul.f32 -1.442695, %v7798_v63  ;;  %v3835_v30 = vrot.slane %v7790_v37, 1  ;;  %v3836_v58 = vrot.slane %v7792_v43, 1 }
 0x8b8   :  { %5944 = vpow2.f32 %v4941_v35  ;;  %v4946_v31 = vmul.f32 -1.442695, %v7800_v8  ;;  %v4947_v62 = vmul.f32 -1.442695, %v7802_v22  ;;  %v3837_v34 = vrot.slane %v7796_v32, 1 }
 0x8b9   :  { %5946 = vpow2.f32 %v4942_v47  ;;  %v4948_v11 = vmul.f32 -1.442695, %v7806_v9  ;;  %v3838_v1 = vrot.slane %v7798_v63, 1  ;;  %v3839_v52 = vrot.slane %v7794_v55, 1 }
 0x8ba   :  { %5948 = vpow2.f32 %v4943_v36  ;;  %v4949_v39 = vmul.f32 -1.442695, %v3835_v30  ;;  %v4950_v44 = vmul.f32 -1.442695, %v3836_v58  ;;  %v4951_v21 = vmul.f32 -1.442695, %v3837_v34 }
 0x8bb   :  { %5950 = vpow2.f32 %v4944_v6  ;;  %v4952_v5 = vmul.f32 -1.442695, %v3838_v1  ;;  %v4953_v45 = vmul.f32 -1.442695, %v3839_v52  ;;  %v3840_v7 = vrot.slane %v7800_v8, 1 }
 0x8bc   :  { %5952 = vpow2.f32 %v4945_v59  ;;  %v3841_v38 = vrot.slane %v7802_v22, 1  ;;  %v3842_v15 = vrot.slane %v7806_v9, 1  ;;  %v3899_v58 = vrot.slane %v7790_v37, 2 }
 0x8bd   :  { %5954 = vpow2.f32 %v4946_v31  ;;  %v4954_v24 = vmul.f32 -1.442695, %v3840_v7  ;;  %v3900_v34 = vrot.slane %v7792_v43, 2  ;;  %v3901_v1 = vrot.slane %v7796_v32, 2 }
 0x8be   :  { %5956 = vpow2.f32 %v4947_v62  ;;  %v4955_v42 = vmul.f32 -1.442695, %v3841_v38  ;;  %v4956_v28 = vmul.f32 -1.442695, %v3842_v15  ;;  %v3925_v38 = vrot.slane %v7796_v32, 3 }
 0x8bf   :  { %5958 = vpow2.f32 %v4948_v11  ;;  %v3929_v32 = vrot.slane %v7802_v22, 3 }
 0x8c0   :  { %5960 = vpow2.f32 %v4949_v39  ;;  %v3902_v39 = vrot.slane %v7798_v63, 2 }
 0x8c1   :  { %5962 = vpow2.f32 %v4950_v44 }
 0x8c2   :  { %v5945_v29 = vpop.eup %5944  ;;  %5964 = vpow2.f32 %v4951_v21  ;;  %v3903_v21 = vrot.slane %v7794_v55, 2 }
 0x8c3   :  { %v5947_v23 = vpop.eup %5946  ;;  %v3803_v46 = vadd.f32 1.0, %v5945_v29  ;;  %5966 = vpow2.f32 %v4952_v5 }
 0x8c4   :  { %v5949_v41 = vpop.eup %5948  ;;  %v3804_v18 = vadd.f32 1.0, %v5947_v23  ;;  %5968 = vpow2.f32 %v4953_v45 }
 0x8c5   :  { %v5951_v4 = vpop.eup %5950  ;;  %v3805_v19 = vadd.f32 1.0, %v5949_v41  ;;  %5970 = vrcp.f32 %v3803_v46  ;;  %v3923_v46 = vrot.slane %v7790_v37, 3  ;;  %v3926_v37 = vrot.slane %v7798_v63, 3 }
 0x8c6   :  { %v5953_v0 = vpop.eup %5952  ;;  %v3806_v12 = vadd.f32 1.0, %v5951_v4  ;;  %5972 = vrcp.f32 %v3804_v18  ;;  %v3904_v4 = vrot.slane %v7800_v8, 2 }
 0x8c7   :  { %v5955_v13 = vpop.eup %5954  ;;  %v3807_v10 = vadd.f32 1.0, %v5953_v0  ;;  %5974 = vrcp.f32 %v3805_v19  ;;  %v3924_v19 = vrot.slane %v7792_v43, 3  ;;  %v3928_v43 = vrot.slane %v7800_v8, 3 }
 0x8c8   :  { %v5957_v60 = vpop.eup %5956  ;;  %v3808_v17 = vadd.f32 1.0, %v5955_v13  ;;  %5976 = vrcp.f32 %v3806_v12  ;;  %v3905_v12 = vrot.slane %v7802_v22, 2  ;;  %v4960_v63 = vmul.f32 -1.442695, %v3926_v37 }
 0x8c9   :  { %v5959_v57 = vpop.eup %5958  ;;  %v3809_v20 = vadd.f32 1.0, %v5957_v60  ;;  %5978 = vrcp.f32 %v3807_v10  ;;  %v3906_v10 = vrot.slane %v7806_v9, 2  ;;  %v3927_v60 = vrot.slane %v7794_v55, 3 }
 0x8ca   :  { %v5961_v33 = vpop.eup %5960  ;;  %v3810_v16 = vadd.f32 1.0, %v5959_v57  ;;  %5980 = vrcp.f32 %v3808_v17  ;;  %v4957_v17 = vmul.f32 -1.442695, %v3923_v46 }
 0x8cb   :  { %v5963_v51 = vpop.eup %5962  ;;  %5982 = vrcp.f32 %v3809_v20  ;;  %v3875_v61 = vadd.f32 1.0, %v5961_v33  ;;  %v4958_v20 = vmul.f32 -1.442695, %v3924_v19  ;;  %v4959_v33 = vmul.f32 -1.442695, %v3925_v38 }
 0x8cc   :  { %v5965_v49 = vpop.eup %5964  ;;  %5984 = vrcp.f32 %v3810_v16  ;;  %v3876_v3 = vadd.f32 1.0, %v5963_v51 }
 0x8cd   :  { %v5967_v54 = vpop.eup %5966  ;;  %5986 = vpow2.f32 %v4954_v24  ;;  %v3877_v47 = vadd.f32 1.0, %v5965_v49 }
 0x8ce   :  { %v5969_v35 = vpop.eup %5968  ;;  %5988 = vpow2.f32 %v4955_v42  ;;  %v3878_v6 = vadd.f32 1.0, %v5967_v54  ;;  %v3930_v42 = vrot.slane %v7806_v9, 3 }
 0x8cf   :  { %v7822_v36 = vpop.eup %5970  ;;  %5990 = vpow2.f32 %v4956_v28  ;;  %v3879_v30 = vadd.f32 1.0, %v5969_v35  ;;  %v4961_v28 = vmul.f32 -1.442695, %v3927_v60 }
 0x8d0   :  { %v7824_v59 = vpop.eup %5972  ;;  %5992 = vrcp.f32 %v3875_v61  ;;  %v4962_v61 = vmul.f32 -1.442695, %v3928_v43  ;;  %v4964_v9 = vmul.f32 -1.442695, %v3930_v42 }
 0x8d1   :  { %v7826_v31 = vpop.eup %5974  ;;  %5994 = vrcp.f32 %v3876_v3  ;;  %v4963_v3 = vmul.f32 -1.442695, %v3929_v32 }
 0x8d2   :  { %v7829_v62 = vpop.eup %5976  ;;  %5996 = vrcp.f32 %v3877_v47 }
 0x8d3   :  { %v7832_v11 = vpop.eup %5978  ;;  %5998 = vrcp.f32 %v3878_v6 }
 0x8d4   :  { %v7835_v52 = vpop.eup %5980  ;;  %6000 = vrcp.f32 %v3879_v30 }
 0x8d5   :  { %v7838_v44 = vpop.eup %5982  ;;  %6002 = vtanh.f32 %v3899_v58 }
 0x8d6   :  { %v7841_v5 = vpop.eup %5984  ;;  %6004 = vtanh.f32 %v3900_v34 }
 0x8d7   :  { %v5987_v45 = vpop.eup %5986  ;;  %6006 = vtanh.f32 %v3901_v1 }
 0x8d8   :  { %v5989_v29 = vpop.eup %5988  ;;  %v3880_v23 = vadd.f32 1.0, %v5987_v45  ;;  %6008 = vtanh.f32 %v3902_v39 }
 0x8d9   :  { %v5991_v41 = vpop.eup %5990  ;;  %v3881_v18 = vadd.f32 1.0, %v5989_v29  ;;  %6010 = vtanh.f32 %v3903_v21 }
 0x8da   :  { %v5993_v7 = vpop.eup %5992  ;;  %v3882_v0 = vadd.f32 1.0, %v5991_v41  ;;  %6012 = vrcp.f32 %v3880_v23 }
 0x8db   :  { %v5995_v13 = vpop.eup %5994  ;;  %6014 = vrcp.f32 %v3881_v18  ;;  %v3987_v55 = vmul.f32 %v5993_v7, %v7710_v14 }
 0x8dc   :  { %v5997_v15 = vpop.eup %5996  ;;  %6016 = vrcp.f32 %v3882_v0  ;;  %v3988_v8 = vmul.f32 %v5995_v13, %v7713_v40 }
 0x8dd   :  { %v5999_v57 = vpop.eup %5998  ;;  %6018 = vtanh.f32 %v3904_v4  ;;  %v3989_v22 = vmul.f32 %v5997_v15, %v7716_v50 }
 0x8de   :  { %v6001_v24 = vpop.eup %6000  ;;  %6020 = vtanh.f32 %v3905_v12  ;;  %v3990_v6 = vmul.f32 %v5999_v57, %v7718_v48 }
 0x8df   :  { %v6003_v16 = vpop.eup %6002  ;;  %6022 = vtanh.f32 %v3906_v10  ;;  %v3991_v58 = vmul.f32 %v6001_v24, %v7720_v53 }
 0x8e0   :  { %v6005_v51 = vpop.eup %6004  ;;  %6024 = vpow2.f32 %v4957_v17  ;;  %v3995_v35 = vmul.f32 %v6003_v16, %v7822_v36 }
 0x8e1   :  { %v6007_v49 = vpop.eup %6006  ;;  %6026 = vpow2.f32 %v4958_v20  ;;  %v3996_v30 = vmul.f32 %v6005_v51, %v7824_v59 }
 0x8e2   :  { %v6009_v54 = vpop.eup %6008  ;;  %6028 = vpow2.f32 %v4959_v33  ;;  %v3997_v40 = vmul.f32 %v6007_v49, %v7826_v31  ;;  %v7862_v34 = vadd.f32 %v3995_v35, %v3987_v55 }
 0x8e3   :  { %v6011_v47 = vpop.eup %6010  ;;  %6030 = vpow2.f32 %v4960_v63  ;;  %v3998_v50 = vmul.f32 %v6009_v54, %v7829_v62  ;;  %v7865_v36 = vadd.f32 %v3996_v30, %v3988_v8 }
 0x8e4   :  { %v6013_v14 = vpop.eup %6012  ;;  %6032 = vpow2.f32 %v4961_v28  ;;  %v3999_v48 = vmul.f32 %v6011_v47, %v7832_v11  ;;  %v7868_v21 = vadd.f32 %v3997_v40, %v3989_v22 }
 0x8e5   :  { %v6015_v1 = vpop.eup %6014  ;;  %6034 = vpow2.f32 %v4962_v61  ;;  %v7870_v45 = vadd.f32 %v3998_v50, %v3990_v6  ;;  %v3992_v19 = vmul.f32 %v6013_v14, %v7733_v27 }
 0x8e6   :  { %v6017_v39 = vpop.eup %6016  ;;  %6036 = vpow2.f32 %v4963_v3  ;;  %v7872_v31 = vadd.f32 %v3999_v48, %v3991_v58  ;;  %v3993_v12 = vmul.f32 %v6015_v1, %v7735_v2 }
 0x8e7   :  { %v6019_v59 = vpop.eup %6018  ;;  %6038 = vpow2.f32 %v4964_v9  ;;  %v3994_v37 = vmul.f32 %v6017_v39, %v7737_v26 }
 0x8e8   :  { %v6021_v53 = vpop.eup %6020  ;;  %6040 = vtanh.f32 %v7862_v34  ;;  %v4000_v10 = vmul.f32 %v6019_v59, %v7835_v52 }
 0x8e9   :  { %v6023_v29 = vpop.eup %6022  ;;  %6042 = vtanh.f32 %v7865_v36  ;;  %v4001_v17 = vmul.f32 %v6021_v53, %v7838_v44 }
 0x8ea   :  { %v6025_v62 = vpop.eup %6024  ;;  %6044 = vtanh.f32 %v7868_v21  ;;  %v4002_v27 = vmul.f32 %v6023_v29, %v7841_v5  ;;  %v7885_v20 = vadd.f32 %v4000_v10, %v3992_v19 }
 0x8eb   :  { %v6027_v23 = vpop.eup %6026  ;;  %v3963_v46 = vadd.f32 1.0, %v6025_v62  ;;  %6046 = vtanh.f32 %v7870_v45  ;;  %v7887_v32 = vadd.f32 %v4001_v17, %v3993_v12 }
 0x8ec   :  { %v6029_v11 = vpop.eup %6028  ;;  %v3964_v41 = vadd.f32 1.0, %v6027_v23  ;;  %6048 = vtanh.f32 %v7872_v31  ;;  %v7889_v26 = vadd.f32 %v4002_v27, %v3994_v37 }
 0x8ed   :  { %v6031_v18 = vpop.eup %6030  ;;  %v3965_v4 = vadd.f32 1.0, %v6029_v11  ;;  %6050 = vrcp.f32 %v3963_v46 }
 0x8ee   :  { %v6033_v7 = vpop.eup %6032  ;;  %v3966_v0 = vadd.f32 1.0, %v6031_v18  ;;  %6052 = vrcp.f32 %v3964_v41 }
 0x8ef   :  { %v6035_v38 = vpop.eup %6034  ;;  %v3967_v13 = vadd.f32 1.0, %v6033_v7  ;;  %6054 = vrcp.f32 %v3965_v4 }
 0x8f0   :  { %v6037_v15 = vpop.eup %6036  ;;  %v3968_v60 = vadd.f32 1.0, %v6035_v38  ;;  %6056 = vrcp.f32 %v3966_v0 }
 0x8f1   :  { %v6039_v57 = vpop.eup %6038  ;;  %v3969_v43 = vadd.f32 1.0, %v6037_v15  ;;  %6058 = vrcp.f32 %v3967_v13 }
 0x8f2   :  { %v6041_v2 = vpop.eup %6040  ;;  %v3970_v24 = vadd.f32 1.0, %v6039_v57  ;;  %6060 = vrcp.f32 %v3968_v60 }
 0x8f3   :  { %v6043_v52 = vpop.eup %6042  ;;  %6062 = vrcp.f32 %v3969_v43 }
 0x8f4   :  { %v6045_v33 = vpop.eup %6044  ;;  %6064 = vrcp.f32 %v3970_v24 }
 0x8f5   :  { %v6047_v16 = vpop.eup %6046  ;;  %6066 = vtanh.f32 %v7885_v20 }
 0x8f6   :  { %v6049_v44 = vpop.eup %6048  ;;  %6068 = vtanh.f32 %v7887_v32 }
 0x8f7   :  { %v6051_v5 = vpop.eup %6050  ;;  %6070 = vtanh.f32 %v7889_v26 }
 0x8f8   :  { %v6053_v42 = vpop.eup %6052  ;;  %v4019_v63 = vmul.f32 %v6051_v5, %v6041_v2  ;;  %v4625_v5 = vld [vmem:[#allocation11 + $0x18] sm:$0xff] }
 0x8f9   :  { %v6055_v51 = vpop.eup %6054  ;;  %v4020_v28 = vmul.f32 %v6053_v42, %v6043_v52  ;;  %v4622_v52 = vld [vmem:[#allocation11] sm:$0xff]  ;;  %v8139_v42 = vmov 0.0  }
 0x8fa   :  { %v6057_v55 = vpop.eup %6056  ;;  %v4021_v49 = vmul.f32 %v6055_v51, %v6045_v33  ;;  %v4043_v54 = vpack.c.bf16 %v4019_v63, %v4019_v63  ;;  %v4623_v33 = vld [vmem:[#allocation11 + $0x8] sm:$0xff]  ;;  %v4626_v51 = vld [vmem:[#allocation11 + $0x20] sm:$0xff] }
 0x8fb   :  { %v6059_v61 = vpop.eup %6058  ;;  %v4022_v8 = vmul.f32 %v6057_v55, %v6047_v16  ;;  %v4044_v3 = vpack.c.bf16 %v4020_v28, %v4020_v28  ;;  %v4624_v16 = vld [vmem:[#allocation11 + $0x10] sm:$0xff]  ;;  %v4627_v28 = vld [vmem:[#allocation11 + $0x28] sm:$0xff] }
 0x8fc   :  { %v6061_v22 = vpop.eup %6060  ;;  %v4023_v35 = vmul.f32 %v6059_v61, %v6049_v44  ;;  %v4045_v47 = vpack.c.bf16 %v4021_v49, %v4021_v49  ;;  %v4059_v50 = vunpack.c.l.b16 %v4043_v54  ;;  %v5043_v44 = vpack.c.bf16 %v4623_v33, %v4622_v52  ;;  %v4628_v49 = vld [vmem:[#allocation11 + $0x30] sm:$0xff]  ;;  %v4629_v61 = vld [vmem:[#allocation11 + $0x38] sm:$0xff]  ;;  %v4630_v54 = vld [vmem:[#allocation11 + $0x40] sm:$0xff] }
 0x8fd   :  { %v6063_v9 = vpop.eup %6062  ;;  %v4046_v6 = vpack.c.bf16 %v4022_v8, %v4022_v8  ;;  %v4060_v30 = vunpack.c.l.b16 %v4044_v3  ;;  %v5046_v63 = vpack.c.bf16 %v4625_v5, %v4624_v16  ;;  %v5049_v55 = vpack.c.bf16 %v4627_v28, %v4626_v51  ;;  %v4631_v3 = vld [vmem:[#allocation11 + $0x48] sm:$0xff] }
 0x8fe   :  { %v6065_v14 = vpop.eup %6064  ;;  %v4047_v58 = vpack.c.bf16 %v4023_v35, %v4023_v35  ;;  %v4061_v40 = vunpack.c.l.b16 %v4045_v47  ;;  %v5052_v8 = vpack.c.bf16 %v4629_v61, %v4628_v49  ;;  %v4632_v35 = vld [vmem:[#allocation11 + $0x50] sm:$0xff]  ;;  %v4633_v47 = vld [vmem:[#allocation11 + $0x58] sm:$0xff] }
 0x8ff   :  { %v6067_v1 = vpop.eup %6066  ;;  %v4062_v39 = vunpack.c.l.b16 %v4046_v6  ;;  %v4067_v48 = vrot.slane %v4060_v30, 7  ;;  %v4634_v6 = vld [vmem:[#allocation11 + $0x60] sm:$0xff]  ;;  %v4635_v30 = vld [vmem:[#allocation11 + $0x68] sm:$0xff] }
 0x900   :  { %v6069_v59 = vpop.eup %6068  ;;  %v4024_v53 = vmul.f32 %v6067_v1, %v6061_v22  ;;  %v4063_v29 = vunpack.c.l.b16 %v4047_v58  ;;  %v4069_v62 = vrot.slane %v4061_v40, 6  ;;  %v5055_v22 = vpack.c.bf16 %v4631_v3, %v4630_v54  ;;  %v4636_v58 = vld [vmem:[#allocation11 + $0x70] sm:$0xff]  ;;  %v4637_v40 = vld [vmem:[#allocation11 + $0x78] sm:$0xff] }
 0x901   :  { %v6071_v23 = vpop.eup %6070  ;;  %v4025_v46 = vmul.f32 %v6069_v59, %v6063_v9  ;;  %v4068_v11 = vsel %vm1217_vm0, %v4067_v48, %v4059_v50  ;;  %v4071_v41 = vrot.slane %v4062_v39, 5  ;;  %v5058_v9 = vpack.c.bf16 %v4633_v47, %v4632_v35  ;;  %v4034_v16 = vld [vmem:[#allocation2 + $0x67] ss:$8 sm:$0xf] }
 0x902   :  { %v4026_v18 = vmul.f32 %v6071_v23, %v6065_v14  ;;  %v4048_v4 = vpack.c.bf16 %v4024_v53, %v4024_v53  ;;  %v4070_v19 = vsel %vm1220_vm1, %v4069_v62, %v4068_v11  ;;  %v4073_v7 = vrot.slane %v4063_v29, 4  ;;  %v4040_v51 = vld [vmem:[#allocation2 + $0xc7] ss:$8 sm:$0xf] }
 0x903   :  { %v4049_v0 = vpack.c.bf16 %v4025_v46, %v4025_v46  ;;  %v4072_v12 = vsel %vm1223_vm2, %v4071_v41, %v4070_v19  ;;  %v5061_v14 = vpack.c.bf16 %v4635_v30, %v4634_v6  ;;  %v5064_v1 = vpack.c.bf16 %v4637_v40, %v4636_v58  ;;  %v4042_v28 = vld [vmem:[#allocation2 + $0xe7] ss:$8 sm:$0xf] }
 0x904   :  { %v4050_v38 = vpack.c.bf16 %v4026_v18, %v4026_v18  ;;  %v4064_v13 = vunpack.c.l.b16 %v4048_v4  ;;  %v4074_v10 = vsel %vm1226_vm3, %v4073_v7, %v4072_v12 }
 0x905   :  { %v4065_v37 = vunpack.c.l.b16 %v4049_v0 }
 0x906   :  { %v4066_v15 = vunpack.c.l.b16 %v4050_v38  ;;  %v4075_v60 = vrot.slane %v4064_v13, 3 }
 0x907   :  { %v4077_v17 = vrot.slane %v4065_v37, 2 }
 0x908   :  { %v4076_v57 = vsel %vm1229_vm4, %v4075_v60, %v4074_v10  ;;  %v4079_v43 = vrot.slane %v4066_v15, 1 }
 0x909   :  { %v4078_v27 = vsel %vm1232_vm5, %v4077_v17, %v4076_v57  ;;  %v4028_v17 = vld [vmem:[#allocation2 + $0x7] ss:$8 sm:$0xf] }
 0x90a   :  { %v4080_v2 = vsel %vm1235_vm6, %v4079_v43, %v4078_v27  ;;  %v4030_v57 = vld [vmem:[#allocation2 + $0x27] ss:$8 sm:$0xf] }
 0x90b   :  { %v4081_v24 = vpack.c.b16 %v4080_v2, %v4080_v2  ;;  %v4032_v43 = vld [vmem:[#allocation2 + $0x47] ss:$8 sm:$0xf] }
 0x90c   :  { %v4036_v27 = vld [vmem:[#allocation2 + $0x87] ss:$8 sm:$0xf] }
 0x90d   :  { %4116 = vmatmul.mubr.bf16.vlgmr.msra.gmra.mrb[44].mxu0 %v4081_v24  ;;  %4157 = vmatmul.mubr.bf16.vlgmr.msra.gmra.mrb[44].mxu1 %v4081_v24 }
 0x90e   :  { %5039 = vmatprep.mubr.msk.f32.mxu0 %vm6426_vm7, %v8139_v42  ;;  %5044 = vmatpush3.bf16.msra.mxu0 %v5043_v44  ;;  %v4038_v44 = vld [vmem:[#allocation2 + $0xa7] ss:$8 sm:$0xf] }
 0x90f   :  { %5045 = vmatprep.subr.bf16.mxu0 %v8137_v25 }
 0x912   :  { %5047 = vmatpush3.bf16.msra.mxu0 %v5046_v63 }
 0x913   :  { %5048 = vmatprep.subr.bf16.mxu0 %v8137_v25 }
 0x916   :  { %5050 = vmatpush3.bf16.msra.mxu0 %v5049_v55 }
 0x917   :  { %5051 = vmatprep.subr.bf16.mxu0 %v8137_v25 }
 0x91a   :  { %5053 = vmatpush3.bf16.msra.mxu0 %v5052_v8 }
 0x91b   :  { %5054 = vmatprep.subr.bf16.mxu0 %v8137_v25 }
 0x91e   :  { %5056 = vmatpush3.bf16.msra.mxu0 %v5055_v22 }
 0x91f   :  { %5057 = vmatprep.subr.bf16.mxu0 %v8137_v25 }
 0x922   :  { %5059 = vmatpush3.bf16.msra.mxu0 %v5058_v9 }
 0x923   :  { %5060 = vmatprep.subr.bf16.mxu0 %v8137_v25 }
 0x926   :  { %5062 = vmatpush3.bf16.msra.mxu0 %v5061_v14 }
 0x927   :  { %5063 = vmatprep.subr.bf16.mxu0 %v8137_v25 }
 0x92a   :  { %5065 = vmatpush3.bf16.msra.mxu0 %v5064_v1 }
 0x9e0   :  { %v4117_v50 = vpop.f32.mrb[44].mxu0  ;;  %v4158_v39 = vpop.f32.mrb[44].mxu1 }
 0x9e1   :  { %v4119_v48 = vpop.f32.mrb[45].mxu0  ;;  %v4160_v59 = vpop.f32.mrb[45].mxu1 }
 0x9e2   :  { %v4169_v53 = vcombine.low %v4117_v50, %v4119_v48  ;;  %v4170_v29 = vcombine.high %v4117_v50, %v4119_v48  ;;  %v4171_v62 = vcombine.low %v4158_v39, %v4160_v59  ;;  %v4172_v23 = vcombine.high %v4158_v39, %v4160_v59  ;;  %v4121_v46 = vpop.f32.mrb[46].mxu0  ;;  %v4162_v11 = vpop.f32.mrb[46].mxu1 }
 0x9e3   :  { %v4122_v41 = vpop.f32.mrb[47].mxu0  ;;  %v4163_v18 = vpop.f32.mrb[47].mxu1 }
 0x9e4   :  { %v4179_v4 = vrot.slane %v4169_v53, %v8138_v56  ;;  %v4186_v19 = vrot.slane %v4170_v29, %v8138_v56  ;;  %v4193_v7 = vrot.slane %v4171_v62, %v8138_v56  ;;  %v4200_v25 = vrot.slane %v4172_v23, %v8138_v56 }
 0x9e6   :  { %v4201_v0 = vcombine.low %v4179_v4, %v4193_v7  ;;  %v4202_v12 = vcombine.high %v4179_v4, %v4193_v7  ;;  %v4203_v38 = vcombine.low %v4186_v19, %v4200_v25  ;;  %v4204_v13 = vcombine.high %v4186_v19, %v4200_v25 }
 0x9e8   :  { %v4211_v10 = vrot.slane %v4201_v0, %v8138_v56  ;;  %v4218_v37 = vrot.slane %v4203_v38, %v8138_v56  ;;  %v4225_v15 = vrot.slane %v4202_v12, %v8138_v56  ;;  %v4232_v60 = vrot.slane %v4204_v13, %v8138_v56 }
 0x9ea   :  { %v4233_v2 = vcombine.high %v4211_v10, %v4211_v10  ;;  %v4234_v24 = vcombine.high %v4218_v37, %v4218_v37  ;;  %v4235_v52 = vcombine.high %v4225_v15, %v4225_v15  ;;  %v4236_v33 = vcombine.high %v4232_v60, %v4232_v60 }
 0x9eb   :  { %v7917_v5 = vadd.f32 %v4211_v10, %v4028_v17  ;;  %v7919_v42 = vadd.f32 %v4225_v15, %v4030_v57  ;;  %v7921_v63 = vadd.f32 %v4218_v37, %v4036_v27  ;;  %v7927_v61 = vadd.f32 %v4232_v60, %v4038_v44 }
 0x9ec   :  { %v7923_v55 = vadd.f32 %v4233_v2, %v4032_v43  ;;  %v7925_v49 = vadd.f32 %v4235_v52, %v4034_v16  ;;  %v7929_v8 = vadd.f32 %v4234_v24, %v4040_v51  ;;  %v7933_v22 = vadd.f32 %v4236_v33, %v4042_v28 }
 0x9ed   :  { %v4965_v54 = vmul.f32 -1.442695, %v7917_v5  ;;  %v4966_v3 = vmul.f32 -1.442695, %v7919_v42  ;;  %v4969_v9 = vmul.f32 -1.442695, %v7921_v63 }
 0x9ee   :  { %v4967_v35 = vmul.f32 -1.442695, %v7923_v55  ;;  %v4968_v47 = vmul.f32 -1.442695, %v7925_v49  ;;  %v4309_v6 = vrot.slane %v7917_v5, 1  ;;  %v4310_v14 = vrot.slane %v7919_v42, 1 }
 0x9ef   :  { %6072 = vpow2.f32 %v4965_v54  ;;  %v4970_v30 = vmul.f32 -1.442695, %v7927_v61  ;;  %v4971_v58 = vmul.f32 -1.442695, %v7929_v8  ;;  %v4311_v40 = vrot.slane %v7923_v55, 1 }
 0x9f0   :  { %6074 = vpow2.f32 %v4966_v3  ;;  %v4972_v1 = vmul.f32 -1.442695, %v7933_v22  ;;  %v4312_v50 = vrot.slane %v7925_v49, 1  ;;  %v4313_v39 = vrot.slane %v7921_v63, 1 }
 0x9f1   :  { %6076 = vpow2.f32 %v4967_v35  ;;  %v4973_v48 = vmul.f32 -1.442695, %v4309_v6  ;;  %v4974_v59 = vmul.f32 -1.442695, %v4310_v14  ;;  %v4975_v53 = vmul.f32 -1.442695, %v4311_v40 }
 0x9f2   :  { %6078 = vpow2.f32 %v4968_v47  ;;  %v4976_v29 = vmul.f32 -1.442695, %v4312_v50  ;;  %v4977_v62 = vmul.f32 -1.442695, %v4313_v39  ;;  %v4314_v7 = vrot.slane %v7927_v61, 1 }
 0x9f3   :  { %6080 = vpow2.f32 %v4969_v9  ;;  %v4315_v12 = vrot.slane %v7929_v8, 1  ;;  %v4316_v10 = vrot.slane %v7933_v22, 1  ;;  %v4376_v39 = vrot.slane %v7925_v49, 2 }
 0x9f4   :  { %6082 = vpow2.f32 %v4970_v30  ;;  %v4978_v57 = vmul.f32 -1.442695, %v4314_v7  ;;  %v4373_v30 = vrot.slane %v7917_v5, 2 }
 0x9f5   :  { %6084 = vpow2.f32 %v4971_v58  ;;  %v4979_v2 = vmul.f32 -1.442695, %v4315_v12  ;;  %v4980_v52 = vmul.f32 -1.442695, %v4316_v10  ;;  %v4374_v58 = vrot.slane %v7919_v42, 2 }
 0x9f6   :  { %6086 = vpow2.f32 %v4972_v1  ;;  %v4375_v1 = vrot.slane %v7923_v55, 2  ;;  %v4401_v10 = vrot.slane %v7921_v63, 3 }
 0x9f7   :  { %6088 = vpow2.f32 %v4973_v48 }
 0x9f8   :  { %6090 = vpow2.f32 %v4974_v59  ;;  %v4377_v59 = vrot.slane %v7921_v63, 2 }
 0x9f9   :  { %v6073_v23 = vpop.eup %6072  ;;  %6092 = vpow2.f32 %v4975_v53 }
 0x9fa   :  { %v6075_v46 = vpop.eup %6074  ;;  %v4277_v11 = vadd.f32 1.0, %v6073_v23  ;;  %6094 = vpow2.f32 %v4976_v29 }
 0x9fb   :  { %v6077_v41 = vpop.eup %6076  ;;  %v4278_v18 = vadd.f32 1.0, %v6075_v46  ;;  %6096 = vpow2.f32 %v4977_v62  ;;  %v4397_v46 = vrot.slane %v7917_v5, 3  ;;  %v4400_v5 = vrot.slane %v7925_v49, 3 }
 0x9fc   :  { %v6079_v4 = vpop.eup %6078  ;;  %v4279_v19 = vadd.f32 1.0, %v6077_v41  ;;  %6098 = vrcp.f32 %v4277_v11 }
 0x9fd   :  { %v6081_v25 = vpop.eup %6080  ;;  %v4280_v0 = vadd.f32 1.0, %v6079_v4  ;;  %6100 = vrcp.f32 %v4278_v18  ;;  %v4378_v18 = vrot.slane %v7927_v61, 2  ;;  %v4398_v4 = vrot.slane %v7919_v42, 3 }
 0x9fe   :  { %v6083_v38 = vpop.eup %6082  ;;  %v4281_v13 = vadd.f32 1.0, %v6081_v25  ;;  %6102 = vrcp.f32 %v4279_v19  ;;  %v4379_v25 = vrot.slane %v7929_v8, 2  ;;  %v4402_v42 = vrot.slane %v7927_v61, 3 }
 0x9ff   :  { %v6085_v37 = vpop.eup %6084  ;;  %v4282_v15 = vadd.f32 1.0, %v6083_v38  ;;  %6104 = vrcp.f32 %v4280_v0  ;;  %v4399_v0 = vrot.slane %v7923_v55, 3  ;;  %v4380_v38 = vrot.slane %v7933_v22, 2 }
 0xa00   :  { %v6087_v60 = vpop.eup %6086  ;;  %v4283_v17 = vadd.f32 1.0, %v6085_v37  ;;  %6106 = vrcp.f32 %v4281_v13  ;;  %v4981_v37 = vmul.f32 -1.442695, %v4397_v46  ;;  %v4403_v55 = vrot.slane %v7929_v8, 3 }
 0xa01   :  { %v6089_v43 = vpop.eup %6088  ;;  %v4284_v27 = vadd.f32 1.0, %v6087_v60  ;;  %6108 = vrcp.f32 %v4282_v15  ;;  %v4982_v60 = vmul.f32 -1.442695, %v4398_v4  ;;  %v4984_v49 = vmul.f32 -1.442695, %v4400_v5 }
 0xa02   :  { %v6091_v24 = vpop.eup %6090  ;;  %6110 = vrcp.f32 %v4283_v17  ;;  %v4349_v16 = vadd.f32 1.0, %v6089_v43 }
 0xa03   :  { %v6093_v33 = vpop.eup %6092  ;;  %6112 = vrcp.f32 %v4284_v27  ;;  %v4350_v51 = vadd.f32 1.0, %v6091_v24  ;;  %v4404_v27 = vrot.slane %v7933_v22, 3  ;;  %v4985_v24 = vmul.f32 -1.442695, %v4401_v10 }
 0xa04   :  { %v6095_v44 = vpop.eup %6094  ;;  %6114 = vpow2.f32 %v4978_v57  ;;  %v4351_v54 = vadd.f32 1.0, %v6093_v33  ;;  %v4983_v57 = vmul.f32 -1.442695, %v4399_v0  ;;  %v4986_v33 = vmul.f32 -1.442695, %v4402_v42 }
 0xa05   :  { %v6097_v28 = vpop.eup %6096  ;;  %6116 = vpow2.f32 %v4979_v2  ;;  %v4352_v35 = vadd.f32 1.0, %v6095_v44  ;;  %v4987_v44 = vmul.f32 -1.442695, %v4403_v55  ;;  %v4988_v22 = vmul.f32 -1.442695, %v4404_v27 }
 0xa06   :  { %v7949_v3 = vpop.eup %6098  ;;  %6118 = vpow2.f32 %v4980_v52  ;;  %v4353_v9 = vadd.f32 1.0, %v6097_v28 }
 0xa07   :  { %v7951_v47 = vpop.eup %6100  ;;  %6120 = vrcp.f32 %v4349_v16 }
 0xa08   :  { %v7953_v6 = vpop.eup %6102  ;;  %6122 = vrcp.f32 %v4350_v51 }
 0xa09   :  { %v7956_v14 = vpop.eup %6104  ;;  %6124 = vrcp.f32 %v4351_v54 }
 0xa0a   :  { %v7959_v40 = vpop.eup %6106  ;;  %6126 = vrcp.f32 %v4352_v35 }
 0xa0b   :  { %v7962_v50 = vpop.eup %6108  ;;  %6128 = vrcp.f32 %v4353_v9 }
 0xa0c   :  { %v7965_v48 = vpop.eup %6110  ;;  %6130 = vtanh.f32 %v4373_v30 }
 0xa0d   :  { %v7968_v53 = vpop.eup %6112  ;;  %6132 = vtanh.f32 %v4374_v58 }
 0xa0e   :  { %v6115_v29 = vpop.eup %6114  ;;  %6134 = vtanh.f32 %v4375_v1 }
 0xa0f   :  { %v6117_v62 = vpop.eup %6116  ;;  %v4354_v23 = vadd.f32 1.0, %v6115_v29  ;;  %6136 = vtanh.f32 %v4376_v39 }
 0xa10   :  { %v6119_v11 = vpop.eup %6118  ;;  %v4355_v41 = vadd.f32 1.0, %v6117_v62  ;;  %6138 = vtanh.f32 %v4377_v59 }
 0xa11   :  { %v6121_v19 = vpop.eup %6120  ;;  %v4356_v7 = vadd.f32 1.0, %v6119_v11  ;;  %6140 = vrcp.f32 %v4354_v23 }
 0xa12   :  { %v6123_v12 = vpop.eup %6122  ;;  %6142 = vrcp.f32 %v4355_v41  ;;  %v4461_v63 = vmul.f32 %v6121_v19, %v7862_v34 }
 0xa13   :  { %v6125_v13 = vpop.eup %6124  ;;  %6144 = vrcp.f32 %v4356_v7  ;;  %v4462_v61 = vmul.f32 %v6123_v12, %v7865_v36 }
 0xa14   :  { %v6127_v15 = vpop.eup %6126  ;;  %6146 = vtanh.f32 %v4378_v18  ;;  %v4463_v51 = vmul.f32 %v6125_v13, %v7868_v21 }
 0xa15   :  { %v6129_v17 = vpop.eup %6128  ;;  %6148 = vtanh.f32 %v4379_v25  ;;  %v4464_v35 = vmul.f32 %v6127_v15, %v7870_v45 }
 0xa16   :  { %v6131_v43 = vpop.eup %6130  ;;  %6150 = vtanh.f32 %v4380_v38  ;;  %v4465_v9 = vmul.f32 %v6129_v17, %v7872_v31 }
 0xa17   :  { %v6133_v2 = vpop.eup %6132  ;;  %6152 = vpow2.f32 %v4981_v37  ;;  %v4469_v8 = vmul.f32 %v6131_v43, %v7949_v3 }
 0xa18   :  { %v6135_v52 = vpop.eup %6134  ;;  %6154 = vpow2.f32 %v4982_v60  ;;  %v4470_v54 = vmul.f32 %v6133_v2, %v7951_v47 }
 0xa19   :  { %v6137_v16 = vpop.eup %6136  ;;  %6156 = vpow2.f32 %v4983_v57  ;;  %v4471_v36 = vmul.f32 %v6135_v52, %v7953_v6  ;;  %v4477_v30 = vadd.f32 %v4469_v8, %v4461_v63 }
 0xa1a   :  { %v6139_v28 = vpop.eup %6138  ;;  %6158 = vpow2.f32 %v4984_v49  ;;  %v4472_v3 = vmul.f32 %v6137_v16, %v7956_v14  ;;  %v4478_v1 = vadd.f32 %v4470_v54, %v4462_v61 }
 0xa1b   :  { %v6141_v34 = vpop.eup %6140  ;;  %6160 = vpow2.f32 %v4985_v24  ;;  %v4473_v39 = vmul.f32 %v6139_v28, %v7959_v40  ;;  %v4479_v59 = vadd.f32 %v4471_v36, %v4463_v51 }
 0xa1c   :  { %v6143_v58 = vpop.eup %6142  ;;  %6162 = vpow2.f32 %v4986_v33  ;;  %v4480_v45 = vadd.f32 %v4472_v3, %v4464_v35  ;;  %v4466_v40 = vmul.f32 %v6141_v34, %v7885_v20 }
 0xa1d   :  { %v6145_v21 = vpop.eup %6144  ;;  %6164 = vpow2.f32 %v4987_v44  ;;  %v4481_v62 = vadd.f32 %v4473_v39, %v4465_v9  ;;  %v4467_v7 = vmul.f32 %v6143_v58, %v7887_v32 }
 0xa1e   :  { %v6147_v47 = vpop.eup %6146  ;;  %6166 = vpow2.f32 %v4988_v22  ;;  %v4468_v38 = vmul.f32 %v6145_v21, %v7889_v26 }
 0xa1f   :  { %v6149_v29 = vpop.eup %6148  ;;  %6168 = vtanh.f32 %v4477_v30  ;;  %v4474_v12 = vmul.f32 %v6147_v47, %v7962_v50 }
 0xa20   :  { %v6151_v31 = vpop.eup %6150  ;;  %6170 = vtanh.f32 %v4478_v1  ;;  %v4475_v10 = vmul.f32 %v6149_v29, %v7965_v48 }
 0xa21   :  { %v6153_v6 = vpop.eup %6152  ;;  %6172 = vtanh.f32 %v4479_v59  ;;  %v4476_v20 = vmul.f32 %v6151_v31, %v7968_v53  ;;  %v4482_v42 = vadd.f32 %v4474_v12, %v4466_v40  ;;  %v4989_v31 = vld [vmem:[%s8023_s5] ss:$0 sm:$0xff] }
 0xa22   :  { %v6155_v23 = vpop.eup %6154  ;;  %v4437_v46 = vadd.f32 1.0, %v6153_v6  ;;  %6174 = vtanh.f32 %v4480_v45  ;;  %v4483_v17 = vadd.f32 %v4475_v10, %v4467_v7 }
 0xa23   :  { %v6157_v14 = vpop.eup %6156  ;;  %v4438_v11 = vadd.f32 1.0, %v6155_v23  ;;  %6176 = vtanh.f32 %v4481_v62  ;;  %v4484_v50 = vadd.f32 %v4476_v20, %v4468_v38 }
 0xa24   :  { %v6159_v41 = vpop.eup %6158  ;;  %v4439_v18 = vadd.f32 1.0, %v6157_v14  ;;  %6178 = vrcp.f32 %v4437_v46 }
 0xa25   :  { %v6161_v4 = vpop.eup %6160  ;;  %v4440_v19 = vadd.f32 1.0, %v6159_v41  ;;  %6180 = vrcp.f32 %v4438_v11 }
 0xa26   :  { %v6163_v25 = vpop.eup %6162  ;;  %v4441_v0 = vadd.f32 1.0, %v6161_v4  ;;  %6182 = vrcp.f32 %v4439_v18 }
 0xa27   :  { %v6165_v5 = vpop.eup %6164  ;;  %v4442_v13 = vadd.f32 1.0, %v6163_v25  ;;  %6184 = vrcp.f32 %v4440_v19 }
 0xa28   :  { %v6167_v37 = vpop.eup %6166  ;;  %v4443_v15 = vadd.f32 1.0, %v6165_v5  ;;  %6186 = vrcp.f32 %v4441_v0 }
 0xa29   :  { %v6169_v60 = vpop.eup %6168  ;;  %v4444_v32 = vadd.f32 1.0, %v6167_v37  ;;  %6188 = vrcp.f32 %v4442_v13 }
 0xa2a   :  { %v6171_v55 = vpop.eup %6170  ;;  %6190 = vrcp.f32 %v4443_v15 }
 0xa2b   :  { %v6173_v57 = vpop.eup %6172  ;;  %6192 = vrcp.f32 %v4444_v32 }
 0xa2c   :  { %v6175_v26 = vpop.eup %6174  ;;  %6194 = vtanh.f32 %v4482_v42 }
 0xa2d   :  { %v6177_v43 = vpop.eup %6176  ;;  %6196 = vtanh.f32 %v4483_v17 }
 0xa2e   :  { %v6179_v48 = vpop.eup %6178  ;;  %6198 = vtanh.f32 %v4484_v50 }
 0xa2f   :  { %v6181_v27 = vpop.eup %6180  ;;  %v4493_v49 = vmul.f32 %v6179_v48, %v6169_v60 }
 0xa30   :  { %v6183_v2 = vpop.eup %6182  ;;  %v4494_v53 = vmul.f32 %v6181_v27, %v6171_v55 }
 0xa31   :  { %v6185_v24 = vpop.eup %6184  ;;  %v4495_v63 = vmul.f32 %v6183_v2, %v6173_v57 }
 0xa32   :  { %v6187_v52 = vpop.eup %6186  ;;  %v4496_v33 = vmul.f32 %v6185_v24, %v6175_v26  ;;  %v4509_v61 = vcombine.low %v4493_v49, %v4494_v53 }
 0xa33   :  { %v6189_v16 = vpop.eup %6188  ;;  %v4497_v28 = vmul.f32 %v6187_v52, %v6177_v43 }
 0xa34   :  { %v6191_v44 = vpop.eup %6190  ;;  %v4510_v8 = vcombine.low %v4495_v63, %v4496_v33  ;;  %v4519_v54 = vrot.slane %v4509_v61, %v8138_v56 }
 0xa35   :  { %v6193_v51 = vpop.eup %6192 }
 0xa36   :  { %v6195_v22 = vpop.eup %6194  ;;  %v4526_v35 = vrot.slane %v4510_v8, %v8138_v56 }
 0xa37   :  { %v6197_v34 = vpop.eup %6196  ;;  %v4498_v9 = vmul.f32 %v6195_v22, %v6189_v16 }
 0xa38   :  { %v6199_v36 = vpop.eup %6198  ;;  %v4499_v30 = vmul.f32 %v6197_v34, %v6191_v44  ;;  %v4541_v58 = vcombine.low %v4519_v54, %v4526_v35 }
 0xa39   :  { %v4500_v3 = vmul.f32 %v6199_v36, %v6193_v51  ;;  %v4511_v1 = vcombine.low %v4497_v28, %v4498_v9 }
 0xa3a   :  { %v4549_v45 = vrot.slane %v4541_v58, %v8138_v56 }
 0xa3b   :  { %v4512_v21 = vcombine.low %v4499_v30, %v4500_v3  ;;  %v4533_v39 = vrot.slane %v4511_v1, %v8138_v56 }
 0xa3d   :  { %v4540_v59 = vrot.slane %v4512_v21, %v8138_v56 }
 0xa3f   :  { %v4542_v47 = vcombine.low %v4533_v39, %v4540_v59 }
 0xa41   :  { %v4556_v29 = vrot.slane %v4542_v47, %v8138_v56 }
 0xa43   :  { %v4557_v62 = vcombine.low %v4549_v45, %v4556_v29 }
 0xa45   :  { %5040 = vmatmul.mubr.f32.vlgmr.msra.gmra.mrb[48].mxu0 %v4557_v62 }
 0xb18   :  { %v4711_v6 = vpop.f32.mrb[48].mxu0 }
 0xb19   :  { %v4712_v23 = vadd.f32 %v4989_v31, %v4711_v6  ;;  %v5041_v46 = vpop.f32.mrb[49].mxu0 }
 0xb1b   :  { %4715 = vst [vmem:[#allocation13] sm:$0xff] %v4712_v23 }
 0xb1c   :  { %6395 = shalt.err (!%p6392_p8)
}
 0xb1d   :  { %s6396_s28 = scalar_lea.hbm %s8024_s6, 128 }
 0xb1e   :  { %p6397_p9 = scmp.ne.s32.totalorder %s8024_s6, %s6396_s28  ;;  %p6400_p10 = scmp.lt.u32.totalorder %s6396_s28, %s8024_s6 }
 0xb20   :  { %p6402_p11 = pnand %p6400_p10, %p6397_p9 }
 0xb22   :  { %6405 = shalt.err (!%p6402_p11)
}
 0xb23   :  { %4725 = dma.vmem_to_hbm [thread:$0]  %s4723_s24, 128, %s8024_s6, [#allocation7]  }
 0xb24   :  { %6412 = dma.done.wait [#allocation7], 128  }
 0xb25   :  { %6413 = vsyncadd [#allocation7], 4294967168 }
 0xb26   :  { %4729 = vsyncpa [#allocation6], 1 }
 0xb27   :  { %4730 = vsyncpa [#allocation9], 1 }
 0xb28   :  { %4731 = vsyncpa [#allocation12], 1 }
 0xb29   :  { %4732 = vsyncpa [#allocation7], 1 }

</bundles_post_ra>
